<compile_context>
chip_gen: v7x
topology: tpu7x:2x2x1
jax: 0.10.0
libtpu: 0.0.40
codegen_flags: <defaults>
</compile_context>

<pallas_src>
from functools import partial

import numpy as np
import jax
import jax.numpy as jnp
from jax.experimental import pallas as pl
from jax.experimental.pallas import tpu as pltpu


# ----------------------------------------------------------------------------
# Fused multi-step kernel. Grid = (B, num_steps); per grid step it does:
#   q_sample -> UNet (channel proj, cross-attn with optional batched CFG pos/neg, gelu, out
#   proj) -> CFG combine -> predict_start_from_noise, and carries pred_x0 to the next step.
# ----------------------------------------------------------------------------
def _fused_teacher_kernel(sched_ref, x_ref, noise_ref, tbias_ref, ctx_ref,
                          w_in_ref, wq_ref, wkv_ref, wo_ref, w_out_ref, b_out_ref,
                          out_ref, x_carry, *, use_cfg, S):
    f32, bf16 = jnp.float32, jnp.bfloat16
    b = pl.program_id(0)
    step = pl.program_id(1)
    row = step * pl.num_programs(0) + b          # sched rows are [step, batch] flattened

    # per-(step, batch) DDPM scalars from SMEM (scalar slot, no vector-lane extract)
    ca_q = sched_ref[row, 0]                      # sqrt(alphas_cumprod[t])
    cb_q = sched_ref[row, 1]                      # sqrt(1 - alphas_cumprod[t])
    ca_p = sched_ref[row, 2]                      # sqrt(1 / alphas_cumprod[t])
    cb_p = sched_ref[row, 3]                      # -sqrt(1 / alphas_cumprod[t] - 1)

    C = x_ref.shape[1]
    D = wq_ref.shape[0]
    N = x_ref.shape[2]

    # carry: x_start for step 0 comes from the input, later steps use previous pred_x0
    @pl.when(step == 0)
    def _():
        x_carry[...] = x_ref[0]

    x_cur = x_carry[...]                                               # (C, N) f32
    x_noisy = ca_q * x_cur + cb_q * noise_ref[0, 0]                    # q_sample, (C, N) f32

    # channel -> feature projection, feature-major; b_in + temb projection pre-folded host-side
    h = jnp.dot(w_in_ref[...], x_noisy, preferred_element_type=f32)    # (D, N) f32
    h = h + tbias_ref[0, 0]                                            # (D, 1) broadcast
    h_bf = h.astype(bf16)

    # query projection (1/sqrt(D) already folded into the weight)
    qT = jnp.dot(wq_ref[...], h_bf, preferred_element_type=f32).astype(bf16)   # (D, N)

    # packed K|V projection of the (possibly pos|neg stacked) context
    ctx = ctx_ref[0]                                                   # (S or 2S, Dc) bf16
    kv = jnp.dot(ctx, wkv_ref[...], preferred_element_type=f32)        # (·S, 2D) f32
    k = kv[:, :D].astype(bf16)
    v = kv[:, D:].astype(bf16)

    # dense scores: (·S, N) with S on the sublane axis, all 128 lanes live
    sT = jnp.dot(k, qT, preferred_element_type=f32)

    def softmax_over_rows(s):                                          # softmax over sublanes
        p = jnp.exp(s - jnp.max(s, axis=0, keepdims=True))
        return (p / jnp.sum(p, axis=0, keepdims=True)).astype(bf16)

    dn_t = (((0,), (0,)), ((), ()))                                    # contract over S: v^T @ p

    if use_cfg:
        w_pos = sched_ref[row, 4]                                      # cfg_scale
        w_neg = sched_ref[row, 5]                                      # -(cfg_scale - 1)
        p_pos = softmax_over_rows(sT[:S, :])
        p_neg = softmax_over_rows(sT[S:, :])
        a_pos = jax.lax.dot_general(v[:S, :], p_pos, dn_t, preferred_element_type=f32)
        a_neg = jax.lax.dot_general(v[S:, :], p_neg, dn_t, preferred_element_type=f32)
        # stack pos/neg along lanes so wo and w_out each run as one matmul on (., 2N)
        attnT = jnp.concatenate([a_pos.astype(bf16), a_neg.astype(bf16)], axis=1)   # (D, 2N)
        o = jnp.dot(wo_ref[...], attnT, preferred_element_type=f32)                 # (D, 2N)
        g = jnp.concatenate([jax.nn.gelu(h + o[:, :N]).astype(bf16),
                             jax.nn.gelu(h + o[:, N:]).astype(bf16)], axis=1)       # (D, 2N)
        out2 = jnp.dot(w_out_ref[...], g, preferred_element_type=f32)               # (C, 2N)
        # CFG combine; b_out added once since w_pos + w_neg == 1
        noise_pred = w_pos * out2[:, :N] + w_neg * out2[:, N:] + b_out_ref[...]
    else:
        p = softmax_over_rows(sT)
        attnT = jax.lax.dot_general(v, p, dn_t,
                                    preferred_element_type=f32).astype(bf16)        # (D, N)
        o = jnp.dot(wo_ref[...], attnT, preferred_element_type=f32)                 # (D, N)
        g = jax.nn.gelu(h + o).astype(bf16)
        noise_pred = jnp.dot(w_out_ref[...], g, preferred_element_type=f32) + b_out_ref[...]

    pred_x0 = ca_p * x_noisy + cb_p * noise_pred                       # predict_start_from_noise

    # single packed (2C, N) = (8, 256) store: rows [0,C) noise_pred, rows [C,2C) pred_x0
    out_ref[0, 0, :, :] = jnp.concatenate([noise_pred, pred_x0], axis=0)
    x_carry[...] = pred_x0                                             # carry to next step


def unet_teacher_denoise(unet, sched, x_cn, noise_cn_all, tbias_all, ctx, use_cfg):
    """All denoising steps in one fused pallas_call.

    sched:        (num_steps*B, 8) f32  (SMEM scalars)
    x_cn:         (B, C, N) f32         channel-major lane-dense x_start
    noise_cn_all: (num_steps, B, C, N) f32
    tbias_all:    (num_steps, B, D, 1) f32  = silu(temb) @ w_t + b_in (hoisted out of kernel)
    ctx:          (B, S, Dc) or (B, 2S, Dc) bf16 (pos, or pos|neg stacked along seq)
    Returns packed (num_steps, B, 2C, N): rows [0,C) noise_pred, rows [C,2C) pred_x0.
    """
    B, C, N = x_cn.shape
    num_steps = noise_cn_all.shape[0]
    Sc, Dc = ctx.shape[1], ctx.shape[2]
    S = Sc // 2 if use_cfg else Sc
    D = unet.D

    in_specs = [
        pl.BlockSpec(memory_space=pltpu.MemorySpace.SMEM),              # DDPM/CFG scalars
        pl.BlockSpec((1, C, N), lambda b, s: (b, 0, 0)),                # x_start (resident per b)
        pl.BlockSpec((1, 1, C, N), lambda b, s: (s, b, 0, 0)),          # per-step noise
        pl.BlockSpec((1, 1, D, 1), lambda b, s: (s, b, 0, 0)),          # temb bias (D, 1)
        pl.BlockSpec((1, Sc, Dc), lambda b, s: (b, 0, 0)),              # context (resident per b)
        pl.BlockSpec((D, C), lambda b, s: (0, 0)),                      # w_in    f32 (D, C)
        pl.BlockSpec((D, D), lambda b, s: (0, 0)),                      # wq^T/sqrt(D)  bf16
        pl.BlockSpec((Dc, 2 * D), lambda b, s: (0, 0)),                 # wkv     bf16 (packed)
        pl.BlockSpec((D, D), lambda b, s: (0, 0)),                      # wo^T    bf16
        pl.BlockSpec((C, D), lambda b, s: (0, 0)),                      # w_out   bf16
        pl.BlockSpec((C, 1), lambda b, s: (0, 0)),                      # b_out   f32
    ]
    return pl.pallas_call(
        partial(_fused_teacher_kernel, use_cfg=use_cfg, S=S),
        out_shape=jax.ShapeDtypeStruct((num_steps, B, 2 * C, N), jnp.float32),
        grid=(B, num_steps),
        in_specs=in_specs,
        out_specs=pl.BlockSpec((1, 1, 2 * C, N), lambda b, s: (s, b, 0, 0)),
        scratch_shapes=[pltpu.VMEM((C, N), jnp.float32)],               # pred_x0 carry
        compiler_params=pltpu.CompilerParams(
            dimension_semantics=("parallel", "arbitrary")),
    )(sched, x_cn, noise_cn_all, tbias_all, ctx,
      unet.w_in, unet.wq_fm, unet.wkv, unet.wo_fm, unet.w_out, unet.b_out)


# ----------------------------------------------------------------------------
# Synthetic UNet stand-in: weights pre-oriented / packed for the feature-major kernel.
# ----------------------------------------------------------------------------
class TinyUNet:
    def __init__(self, key, in_channels=4, d_model=128, ctx_dim=128):
        self.C, self.D, self.Dc = in_channels, d_model, ctx_dim
        ks = jax.random.split(key, 8)
        sc = 0.02
        f32, bf16 = jnp.float32, jnp.bfloat16
        self.w_in = sc * jax.random.normal(ks[0], (d_model, in_channels), f32)       # (D, C)
        self.b_in = jnp.zeros((1, d_model), f32)                                      # host-side only
        self.w_t = sc * jax.random.normal(ks[1], (d_model, d_model), f32)             # host-side only
        wq = sc * jax.random.normal(ks[2], (d_model, d_model), f32)
        self.wq_fm = (wq * (1.0 / np.sqrt(d_model))).T.astype(bf16)                   # pre-T, pre-scaled
        wk = sc * jax.random.normal(ks[3], (ctx_dim, d_model), f32)
        wv = sc * jax.random.normal(ks[4], (ctx_dim, d_model), f32)
        self.wkv = jnp.concatenate([wk, wv], axis=1).astype(bf16)                     # (Dc, 2D) packed
        wo = sc * jax.random.normal(ks[5], (d_model, d_model), f32)
        self.wo_fm = wo.T.astype(bf16)                                                # (D, D) pre-T
        self.w_out = (sc * jax.random.normal(ks[6], (in_channels, d_model), f32)).astype(bf16)
        self.b_out = jnp.zeros((in_channels, 1), f32)

    def temb_bias(self, t):
        """silu(timestep_embedding) @ w_t + b_in, hoisted to XLA. Returns (B, D, 1) f32."""
        temb = timestep_embedding(t, self.D)                     # (B, D)
        proj = jax.nn.silu(temb) @ self.w_t + self.b_in          # (B, D)
        return proj[:, :, None]


def timestep_embedding(t, dim):
    """Sinusoidal timestep embedding, [sin, cos] (diffusers convention). Returns (B, dim)."""
    half = dim // 2
    freqs = jnp.exp(-jnp.log(10000.0) * jnp.arange(half, dtype=jnp.float32) / half)
    args = t.astype(jnp.float32)[:, None] * freqs[None, :]
    return jnp.concatenate([jnp.sin(args), jnp.cos(args)], axis=-1)


# ----------------------------------------------------------------------------
# DDPM schedule — supplies the per-(step, batch) scalars read from SMEM by the kernel.
# ----------------------------------------------------------------------------
class DDPMSchedule:
    def __init__(self, timesteps=1000, beta_start=1e-4, beta_end=0.02):
        betas = jnp.linspace(beta_start, beta_end, timesteps, dtype=jnp.float32)
        acp = jnp.cumprod(1.0 - betas)
        self.sqrt_acp = jnp.sqrt(acp)
        self.sqrt_1macp = jnp.sqrt(1.0 - acp)
        self.sqrt_recip_acp = jnp.sqrt(1.0 / acp)
        self.sqrt_recipm1_acp = jnp.sqrt(1.0 / acp - 1.0)

    def step_coeffs(self, t, cfg_scale):
        """(B, 8): q_sample coeffs, predict_start coeffs, CFG combine weights, padding."""
        B = t.shape[0]
        cfg = jnp.full((B,), float(cfg_scale), jnp.float32)
        zeros = jnp.zeros((B,), jnp.float32)
        return jnp.stack(
            [self.sqrt_acp[t], self.sqrt_1macp[t],
             self.sqrt_recip_acp[t], -self.sqrt_recipm1_acp[t],
             cfg, -(cfg - 1.0), zeros, zeros], axis=1)


# ----------------------------------------------------------------------------
# UNetTeacher orchestration (mirrors the PyTorch forward semantics).
# ----------------------------------------------------------------------------
class UNetTeacher:
    def __init__(self, unet, p_uses_cfg=0.0, cfg_scale_range=(1.3, 2.0)):
        self.name = None
        self.unet = unet
        self.p_uses_cfg = p_uses_cfg
        self.cfg_scale_range = cfg_scale_range
        self.cfg_scale = 1

    def extract_pos_context(self, teacher_context, BS):
        if teacher_context.shape[0] == BS * 2:
            return teacher_context[:BS]
        elif teacher_context.shape[0] == BS:
            return teacher_context
        raise ValueError("unexpected teacher_context batch size")

    def forward(self, ddpm_model, x_start, noise, t, teacher_context,
                negative_context=None, num_denoising_steps=1, force_uses_cfg=False,
                same_t_noise_across_instances=False, global_t_lb=0, global_t_ub=1000,
                rng_key=None):
        assert num_denoising_steps <= 10
        BS, C, H, W = x_start.shape
        N = H * W

        if force_uses_cfg:
            self.uses_cfg = True
        elif self.p_uses_cfg > 0:
            self.uses_cfg = bool(np.random.rand() < self.p_uses_cfg)
        else:
            self.uses_cfg = False
            self.cfg_scale = 1

        if self.uses_cfg:
            self.cfg_scale = float(np.random.uniform(*self.cfg_scale_range))
            if negative_context is not None:
                negative_context = jnp.tile(negative_context[:1], (BS, 1, 1))
        else:
            self.cfg_scale = 1
            if negative_context is None:
                teacher_context = self.extract_pos_context(teacher_context, BS)

        is_context_doubled = 2 if (self.uses_cfg and negative_context is None) else 1
        assert teacher_context.shape[0] == BS * is_context_doubled

        if same_t_noise_across_instances:
            t = jnp.tile(t[:1], (BS,))
            noise = jnp.tile(noise[:1], (BS, 1, 1, 1))

        if rng_key is None:
            rng_key = jax.random.PRNGKey(0)

        do_cfg = self.uses_cfg and self.cfg_scale > 1
        if do_cfg:
            if negative_context is None:
                pos_ctx, neg_ctx = teacher_context[:BS], teacher_context[BS:]
            else:
                pos_ctx, neg_ctx = teacher_context, negative_context
            # pos|neg stacked along the sequence axis -> one wkv / scores matmul per grid step
            ctx = jnp.concatenate([pos_ctx, neg_ctx], axis=1)
        else:
            ctx = teacher_context if teacher_context.shape[0] == BS else teacher_context[:BS]

        # ts / noises for every step never depend on pred_x0 -> precompute them all so the
        # whole denoising chain runs as a single pallas_call.
        ts = [t]
        noises = [noise]
        expo = np.power(num_denoising_steps - 1, -0.3) if num_denoising_steps > 1 else 1.0
        for i in range(num_denoising_steps - 1):
            rng_key, k1, k2 = jax.random.split(rng_key, 3)
            t_i = ts[i]
            relative_ts = jax.random.uniform(k1, t_i.shape, jnp.float32)
            t_lb = t_i.astype(jnp.float32) * np.power(0.5, expo)
            t_ub = t_i.astype(jnp.float32) * np.power(0.7, expo)
            t_lb = jnp.maximum(t_lb, jnp.float32(global_t_lb))
            t_ub = jnp.minimum(t_ub, jnp.float32(global_t_ub))
            earlier_timesteps = ((t_ub - t_lb) * relative_ts + t_lb).astype(jnp.int32)
            noise_next = jax.random.normal(k2, x_start.shape, jnp.float32)
            if same_t_noise_across_instances:
                earlier_timesteps = jnp.tile(earlier_timesteps[:1], (BS,))
                noise_next = jnp.tile(noise_next[:1], (BS, 1, 1, 1))
            ts.append(earlier_timesteps)
            noises.append(noise_next)

        sched = jnp.concatenate(
            [ddpm_model.step_coeffs(t_i, self.cfg_scale) for t_i in ts], axis=0)  # (steps*BS, 8)
        tbias = jnp.stack([self.unet.temb_bias(t_i) for t_i in ts], axis=0)       # (steps,BS,D,1)
        noise_cn = jnp.stack([n.reshape(BS, C, N).astype(jnp.float32)
                              for n in noises], axis=0)                           # (steps,BS,C,N)
        x_cn = x_start.reshape(BS, C, N).astype(jnp.float32)

        packed = unet_teacher_denoise(self.unet, sched, x_cn, noise_cn, tbias,
                                      ctx.astype(jnp.bfloat16), do_cfg)           # (steps,BS,2C,N)

        noise_preds = [packed[i, :, :C].reshape(BS, C, H, W)
                       for i in range(num_denoising_steps)]
        x_starts = [x_start] + [packed[i, :, C:].reshape(BS, C, H, W)
                                for i in range(num_denoising_steps)]
        return noise_preds, x_starts, noises, ts


# ----------------------------------------------------------------------------
if __name__ == "__main__":
    np.random.seed(0)
    key = jax.random.PRNGKey(0)
    B, C, H, W = 2, 4, 16, 16
    S, D_CTX = 8, 128

    k_x, k_n, k_t, k_ctx, k_w, k_fwd = jax.random.split(key, 6)
    x_start = jax.random.normal(k_x, (B, C, H, W), jnp.float32)
    noise = jax.random.normal(k_n, (B, C, H, W), jnp.float32)
    t = jax.random.randint(k_t, (B,), 0, 1000)
    # With CFG + negative_context=None, teacher context holds pos|neg stacked -> batch = 2*B
    teacher_context = jax.random.normal(k_ctx, (2 * B, S, D_CTX), jnp.float32)

    unet = TinyUNet(k_w, in_channels=C, d_model=128, ctx_dim=D_CTX)
    ddpm = DDPMSchedule()

    # --- CFG path: pos + neg batched inside one grid step, 2 denoising steps in one call ---
    teacher = UNetTeacher(unet, p_uses_cfg=0.5, cfg_scale_range=(1.3, 2.0))
    noise_preds, x_starts, noises_out, ts_out = teacher.forward(
        ddpm, x_start, noise, t, teacher_context,
        negative_context=None, num_denoising_steps=2, force_uses_cfg=True,
        same_t_noise_across_instances=False, rng_key=k_fwd)
    jax.block_until_ready(noise_preds)
    jax.block_until_ready(x_starts)

    assert len(noise_preds) == 2 and len(x_starts) == 3
    assert len(noises_out) == 2 and len(ts_out) == 2
    for a in noise_preds:
        assert a.shape == (B, C, H, W) and a.dtype == jnp.float32
        assert bool(jnp.all(jnp.isfinite(a)))
    for a in x_starts:
        assert a.shape == (B, C, H, W)
        assert bool(jnp.all(jnp.isfinite(a)))

    # --- non-CFG path (single attention branch, single denoising step) ---
    teacher_nocfg = UNetTeacher(unet, p_uses_cfg=0.0)
    noise_preds2, x_starts2, _, _ = teacher_nocfg.forward(
        ddpm, x_start, noise, t, teacher_context,
        negative_context=None, num_denoising_steps=1, force_uses_cfg=False,
        rng_key=k_fwd)
    jax.block_until_ready(noise_preds2)
    assert noise_preds2[0].shape == (B, C, H, W)
    assert bool(jnp.all(jnp.isfinite(noise_preds2[0])))
    assert bool(jnp.all(jnp.isfinite(x_starts2[1])))

    print("KERNEL_OK")
</pallas_src>

<mosaic_0001>
module attributes {stable_mosaic.version = 11 : i64} {
  func.func @_fused_teacher_kernel(%arg0: i32, %arg1: i32, %arg2: memref<4x8xf32, #tpu.memory_space<smem>>, %arg3: memref<1x4x256xf32, #tpu.memory_space<vmem>>, %arg4: memref<1x1x4x256xf32, #tpu.memory_space<vmem>>, %arg5: memref<1x1x128x1xf32, #tpu.memory_space<vmem>>, %arg6: memref<1x16x128xbf16, #tpu.memory_space<vmem>>, %arg7: memref<128x4xf32, #tpu.memory_space<vmem>>, %arg8: memref<128x128xbf16, #tpu.memory_space<vmem>>, %arg9: memref<128x256xbf16, #tpu.memory_space<vmem>>, %arg10: memref<128x128xbf16, #tpu.memory_space<vmem>>, %arg11: memref<4x128xbf16, #tpu.memory_space<vmem>>, %arg12: memref<4x1xf32, #tpu.memory_space<vmem>>, %arg13: memref<1x1x8x256xf32, #tpu.memory_space<vmem>>, %arg14: memref<4x256xf32, #tpu.memory_space<vmem>>) attributes {dimension_semantics = [#tpu.dimension_semantics<parallel>, #tpu.dimension_semantics<arbitrary>], iteration_bounds = array<i64: 2, 2>, scalar_prefetch = 0 : i64, scratch_operands = 1 : i64, tpu.core_type = #tpu.core_type<tc>, window_params = [{transform_indices = @transform_0, window_bounds = array<i64: 4, 8>}, {transform_indices = @transform_1, window_bounds = array<i64: 1, 4, 256>}, {transform_indices = @transform_2, window_bounds = array<i64: 1, 1, 4, 256>}, {transform_indices = @transform_3, window_bounds = array<i64: 1, 1, 128, 1>}, {transform_indices = @transform_4, window_bounds = array<i64: 1, 16, 128>}, {pipeline_mode = #tpu.pipeline_mode<synchronous>, transform_indices = @transform_5, window_bounds = array<i64: 128, 4>}, {pipeline_mode = #tpu.pipeline_mode<synchronous>, transform_indices = @transform_6, window_bounds = array<i64: 128, 128>}, {pipeline_mode = #tpu.pipeline_mode<synchronous>, transform_indices = @transform_7, window_bounds = array<i64: 128, 256>}, {pipeline_mode = #tpu.pipeline_mode<synchronous>, transform_indices = @transform_8, window_bounds = array<i64: 128, 128>}, {pipeline_mode = #tpu.pipeline_mode<synchronous>, transform_indices = @transform_9, window_bounds = array<i64: 4, 128>}, {pipeline_mode = #tpu.pipeline_mode<synchronous>, transform_indices = @transform_10, window_bounds = array<i64: 4, 1>}, {transform_indices = @transform_11, window_bounds = array<i64: 1, 1, 8, 256>}]} {
    %c2_i32 = arith.constant 2 : i32
    %0 = arith.muli %arg1, %c2_i32 : i32
    %1 = arith.addi %0, %arg0 : i32
    %2 = arith.index_cast %1 : i32 to index
    %c0 = arith.constant 0 : index
    %3 = memref.load %arg2[%2, %c0] : memref<4x8xf32, #tpu.memory_space<smem>>
    %4 = arith.index_cast %1 : i32 to index
    %c1 = arith.constant 1 : index
    %5 = memref.load %arg2[%4, %c1] : memref<4x8xf32, #tpu.memory_space<smem>>
    %6 = arith.index_cast %1 : i32 to index
    %c2 = arith.constant 2 : index
    %7 = memref.load %arg2[%6, %c2] : memref<4x8xf32, #tpu.memory_space<smem>>
    %8 = arith.index_cast %1 : i32 to index
    %c3 = arith.constant 3 : index
    %9 = memref.load %arg2[%8, %c3] : memref<4x8xf32, #tpu.memory_space<smem>>
    %c0_i32 = arith.constant 0 : i32
    %10 = arith.cmpi eq, %arg1, %c0_i32 : i32
    %11 = arith.extui %10 : i1 to i32
    %c0_i32_0 = arith.constant 0 : i32
    %12 = arith.cmpi ne, %11, %c0_i32_0 : i32
    scf.if %12 {
      %c0_51 = arith.constant 0 : index
      %c0_52 = arith.constant 0 : index
      %c0_53 = arith.constant 0 : index
      %130 = vector.load %arg3[%c0_51, %c0_52, %c0_53] : memref<1x4x256xf32, #tpu.memory_space<vmem>>, vector<1x4x256xf32>
      %131 = vector.shape_cast %130 : vector<1x4x256xf32> to vector<4x256xf32>
      %c0_54 = arith.constant 0 : index
      %c0_55 = arith.constant 0 : index
      %132 = vector.load %arg14[%c0_54, %c0_55] : memref<4x256xf32, #tpu.memory_space<vmem>>, vector<4x256xf32>
      tpu.vector_store %arg14[%c0_54, %c0_55], %131 {strides = array<i32>} : memref<4x256xf32, #tpu.memory_space<vmem>>, vector<4x256xf32>,
    } else {
    }
    %c0_1 = arith.constant 0 : index
    %c0_2 = arith.constant 0 : index
    %13 = vector.load %arg14[%c0_1, %c0_2] : memref<4x256xf32, #tpu.memory_space<vmem>>, vector<4x256xf32>
    %14 = vector.broadcast %3 : f32 to vector<4x256xf32>
    %15 = arith.mulf %14, %13 : vector<4x256xf32>
    %c0_3 = arith.constant 0 : index
    %c0_4 = arith.constant 0 : index
    %c0_5 = arith.constant 0 : index
    %c0_6 = arith.constant 0 : index
    %16 = vector.load %arg4[%c0_3, %c0_4, %c0_5, %c0_6] : memref<1x1x4x256xf32, #tpu.memory_space<vmem>>, vector<1x1x4x256xf32>
    %17 = vector.shape_cast %16 : vector<1x1x4x256xf32> to vector<4x256xf32>
    %18 = vector.broadcast %5 : f32 to vector<4x256xf32>
    %19 = arith.mulf %18, %17 : vector<4x256xf32>
    %20 = arith.addf %15, %19 : vector<4x256xf32>
    %c0_7 = arith.constant 0 : index
    %c0_8 = arith.constant 0 : index
    %21 = vector.load %arg7[%c0_7, %c0_8] : memref<128x4xf32, #tpu.memory_space<vmem>>, vector<128x4xf32>
    %cst = arith.constant dense<0.000000e+00> : vector<128x256xf32>
    %22 = tpu.matmul %21, %20, %cst {dimension_numbers = #tpu.dot_dimension_numbers<[1], [0], [0], [1], [0, 0, 1, 1], [], []>} : vector<128x4xf32>, vector<4x256xf32>, vector<128x256xf32> -> vector<128x256xf32>
    %c0_9 = arith.constant 0 : index
    %c0_10 = arith.constant 0 : index
    %c0_11 = arith.constant 0 : index
    %c0_12 = arith.constant 0 : index
    %23 = vector.load %arg5[%c0_9, %c0_10, %c0_11, %c0_12] : memref<1x1x128x1xf32, #tpu.memory_space<vmem>>, vector<1x1x128x1xf32>
    %24 = vector.shape_cast %23 : vector<1x1x128x1xf32> to vector<128x1xf32>
    %25 = vector.broadcast %24 : vector<128x1xf32> to vector<128x256xf32>
    %26 = arith.addf %22, %25 : vector<128x256xf32>
    %27 = arith.truncf %26 : vector<128x256xf32> to vector<128x256xbf16>
    %c0_13 = arith.constant 0 : index
    %c0_14 = arith.constant 0 : index
    %28 = vector.load %arg8[%c0_13, %c0_14] : memref<128x128xbf16, #tpu.memory_space<vmem>>, vector<128x128xbf16>
    %cst_15 = arith.constant dense<0.000000e+00> : vector<128x256xf32>
    %29 = tpu.matmul %28, %27, %cst_15 {dimension_numbers = #tpu.dot_dimension_numbers<[1], [0], [0], [1], [0, 0, 1, 1], [], []>} : vector<128x128xbf16>, vector<128x256xbf16>, vector<128x256xf32> -> vector<128x256xf32>
    %30 = arith.truncf %29 : vector<128x256xf32> to vector<128x256xbf16>
    %c0_16 = arith.constant 0 : index
    %c0_17 = arith.constant 0 : index
    %c0_18 = arith.constant 0 : index
    %31 = vector.load %arg6[%c0_16, %c0_17, %c0_18] : memref<1x16x128xbf16, #tpu.memory_space<vmem>>, vector<1x16x128xbf16>
    %32 = vector.shape_cast %31 : vector<1x16x128xbf16> to vector<16x128xbf16>
    %c0_19 = arith.constant 0 : index
    %c0_20 = arith.constant 0 : index
    %33 = vector.load %arg9[%c0_19, %c0_20] : memref<128x256xbf16, #tpu.memory_space<vmem>>, vector<128x256xbf16>
    %cst_21 = arith.constant dense<0.000000e+00> : vector<16x256xf32>
    %34 = tpu.matmul %32, %33, %cst_21 {dimension_numbers = #tpu.dot_dimension_numbers<[1], [0], [0], [1], [0, 0, 1, 1], [], []>} : vector<16x128xbf16>, vector<128x256xbf16>, vector<16x256xf32> -> vector<16x256xf32>
    %35 = vector.extract_strided_slice %34 {offsets = [0, 0], sizes = [16, 128], strides = [1, 1]} : vector<16x256xf32> to vector<16x128xf32>
    %36 = arith.truncf %35 : vector<16x128xf32> to vector<16x128xbf16>
    %37 = vector.extract_strided_slice %34 {offsets = [0, 128], sizes = [16, 128], strides = [1, 1]} : vector<16x256xf32> to vector<16x128xf32>
    %38 = arith.truncf %37 : vector<16x128xf32> to vector<16x128xbf16>
    %cst_22 = arith.constant dense<0.000000e+00> : vector<16x256xf32>
    %39 = tpu.matmul %36, %30, %cst_22 {dimension_numbers = #tpu.dot_dimension_numbers<[1], [0], [0], [1], [0, 0, 1, 1], [], []>} : vector<16x128xbf16>, vector<128x256xbf16>, vector<16x256xf32> -> vector<16x256xf32>
    %40 = arith.index_cast %1 : i32 to index
    %c4 = arith.constant 4 : index
    %41 = memref.load %arg2[%40, %c4] : memref<4x8xf32, #tpu.memory_space<smem>>
    %42 = arith.index_cast %1 : i32 to index
    %c5 = arith.constant 5 : index
    %43 = memref.load %arg2[%42, %c5] : memref<4x8xf32, #tpu.memory_space<smem>>
    %44 = vector.extract_strided_slice %39 {offsets = [0, 0], sizes = [8, 256], strides = [1, 1]} : vector<16x256xf32> to vector<8x256xf32>
    %cst_23 = arith.constant dense<0xFF800000> : vector<256xf32>
    %45 = vector.multi_reduction <maximumf>, %44, %cst_23 [0] : vector<8x256xf32> to vector<256xf32>
    %46 = vector.shape_cast %45 : vector<256xf32> to vector<1x256xf32>
    %47 = vector.broadcast %46 : vector<1x256xf32> to vector<8x256xf32>
    %48 = arith.subf %44, %47 : vector<8x256xf32>
    %49 = math.exp %48 : vector<8x256xf32>
    %cst_24 = arith.constant dense<0.000000e+00> : vector<256xf32>
    %50 = vector.multi_reduction <add>, %49, %cst_24 [0] : vector<8x256xf32> to vector<256xf32>
    %51 = vector.shape_cast %50 : vector<256xf32> to vector<1x256xf32>
    %52 = vector.broadcast %51 : vector<1x256xf32> to vector<8x256xf32>
    %53 = arith.divf %49, %52 : vector<8x256xf32>
    %54 = arith.truncf %53 : vector<8x256xf32> to vector<8x256xbf16>
    %55 = vector.extract_strided_slice %39 {offsets = [8, 0], sizes = [8, 256], strides = [1, 1]} : vector<16x256xf32> to vector<8x256xf32>
    %cst_25 = arith.constant dense<0xFF800000> : vector<256xf32>
    %56 = vector.multi_reduction <maximumf>, %55, %cst_25 [0] : vector<8x256xf32> to vector<256xf32>
    %57 = vector.shape_cast %56 : vector<256xf32> to vector<1x256xf32>
    %58 = vector.broadcast %57 : vector<1x256xf32> to vector<8x256xf32>
    %59 = arith.subf %55, %58 : vector<8x256xf32>
    %60 = math.exp %59 : vector<8x256xf32>
    %cst_26 = arith.constant dense<0.000000e+00> : vector<256xf32>
    %61 = vector.multi_reduction <add>, %60, %cst_26 [0] : vector<8x256xf32> to vector<256xf32>
    %62 = vector.shape_cast %61 : vector<256xf32> to vector<1x256xf32>
    %63 = vector.broadcast %62 : vector<1x256xf32> to vector<8x256xf32>
    %64 = arith.divf %60, %63 : vector<8x256xf32>
    %65 = arith.truncf %64 : vector<8x256xf32> to vector<8x256xbf16>
    %66 = vector.extract_strided_slice %38 {offsets = [0, 0], sizes = [8, 128], strides = [1, 1]} : vector<16x128xbf16> to vector<8x128xbf16>
    %cst_27 = arith.constant dense<0.000000e+00> : vector<128x256xf32>
    %67 = tpu.matmul %66, %54, %cst_27 {dimension_numbers = #tpu.dot_dimension_numbers<[0], [0], [1], [1], [0, 1, 1, 1], [], []>} : vector<8x128xbf16>, vector<8x256xbf16>, vector<128x256xf32> -> vector<128x256xf32>
    %68 = vector.extract_strided_slice %38 {offsets = [8, 0], sizes = [8, 128], strides = [1, 1]} : vector<16x128xbf16> to vector<8x128xbf16>
    %cst_28 = arith.constant dense<0.000000e+00> : vector<128x256xf32>
    %69 = tpu.matmul %68, %65, %cst_28 {dimension_numbers = #tpu.dot_dimension_numbers<[0], [0], [1], [1], [0, 1, 1, 1], [], []>} : vector<8x128xbf16>, vector<8x256xbf16>, vector<128x256xf32> -> vector<128x256xf32>
    %70 = arith.truncf %67 : vector<128x256xf32> to vector<128x256xbf16>
    %71 = arith.truncf %69 : vector<128x256xf32> to vector<128x256xbf16>
    %72 = tpu.concatenate %70, %71 in 1 : vector<128x256xbf16>, vector<128x256xbf16> -> vector<128x512xbf16>
    %c0_29 = arith.constant 0 : index
    %c0_30 = arith.constant 0 : index
    %73 = vector.load %arg10[%c0_29, %c0_30] : memref<128x128xbf16, #tpu.memory_space<vmem>>, vector<128x128xbf16>
    %cst_31 = arith.constant dense<0.000000e+00> : vector<128x512xf32>
    %74 = tpu.matmul %73, %72, %cst_31 {dimension_numbers = #tpu.dot_dimension_numbers<[1], [0], [0], [1], [0, 0, 1, 1], [], []>} : vector<128x128xbf16>, vector<128x512xbf16>, vector<128x512xf32> -> vector<128x512xf32>
    %75 = vector.extract_strided_slice %74 {offsets = [0, 0], sizes = [128, 256], strides = [1, 1]} : vector<128x512xf32> to vector<128x256xf32>
    %76 = arith.addf %26, %75 : vector<128x256xf32>
    %77 = arith.mulf %76, %76 : vector<128x256xf32>
    %78 = arith.mulf %76, %77 : vector<128x256xf32>
    %cst_32 = arith.constant 4.471500e-02 : f32
    %79 = vector.broadcast %cst_32 : f32 to vector<128x256xf32>
    %80 = arith.mulf %79, %78 : vector<128x256xf32>
    %81 = arith.addf %76, %80 : vector<128x256xf32>
    %cst_33 = arith.constant 0.797884583 : f32
    %82 = vector.broadcast %cst_33 : f32 to vector<128x256xf32>
    %83 = arith.mulf %82, %81 : vector<128x256xf32>
    %84 = math.tanh %83 : vector<128x256xf32>
    %cst_34 = arith.constant 1.000000e+00 : f32
    %85 = vector.broadcast %cst_34 : f32 to vector<128x256xf32>
    %86 = arith.addf %85, %84 : vector<128x256xf32>
    %cst_35 = arith.constant 5.000000e-01 : f32
    %87 = vector.broadcast %cst_35 : f32 to vector<128x256xf32>
    %88 = arith.mulf %87, %86 : vector<128x256xf32>
    %89 = arith.mulf %76, %88 : vector<128x256xf32>
    %90 = arith.truncf %89 : vector<128x256xf32> to vector<128x256xbf16>
    %91 = vector.extract_strided_slice %74 {offsets = [0, 256], sizes = [128, 256], strides = [1, 1]} : vector<128x512xf32> to vector<128x256xf32>
    %92 = arith.addf %26, %91 : vector<128x256xf32>
    %93 = arith.mulf %92, %92 : vector<128x256xf32>
    %94 = arith.mulf %92, %93 : vector<128x256xf32>
    %cst_36 = arith.constant 4.471500e-02 : f32
    %95 = vector.broadcast %cst_36 : f32 to vector<128x256xf32>
    %96 = arith.mulf %95, %94 : vector<128x256xf32>
    %97 = arith.addf %92, %96 : vector<128x256xf32>
    %cst_37 = arith.constant 0.797884583 : f32
    %98 = vector.broadcast %cst_37 : f32 to vector<128x256xf32>
    %99 = arith.mulf %98, %97 : vector<128x256xf32>
    %100 = math.tanh %99 : vector<128x256xf32>
    %cst_38 = arith.constant 1.000000e+00 : f32
    %101 = vector.broadcast %cst_38 : f32 to vector<128x256xf32>
    %102 = arith.addf %101, %100 : vector<128x256xf32>
    %cst_39 = arith.constant 5.000000e-01 : f32
    %103 = vector.broadcast %cst_39 : f32 to vector<128x256xf32>
    %104 = arith.mulf %103, %102 : vector<128x256xf32>
    %105 = arith.mulf %92, %104 : vector<128x256xf32>
    %106 = arith.truncf %105 : vector<128x256xf32> to vector<128x256xbf16>
    %107 = tpu.concatenate %90, %106 in 1 : vector<128x256xbf16>, vector<128x256xbf16> -> vector<128x512xbf16>
    %c0_40 = arith.constant 0 : index
    %c0_41 = arith.constant 0 : index
    %108 = vector.load %arg11[%c0_40, %c0_41] : memref<4x128xbf16, #tpu.memory_space<vmem>>, vector<4x128xbf16>
    %cst_42 = arith.constant dense<0.000000e+00> : vector<4x512xf32>
    %109 = tpu.matmul %108, %107, %cst_42 {dimension_numbers = #tpu.dot_dimension_numbers<[1], [0], [0], [1], [0, 0, 1, 1], [], []>} : vector<4x128xbf16>, vector<128x512xbf16>, vector<4x512xf32> -> vector<4x512xf32>
    %110 = vector.extract_strided_slice %109 {offsets = [0, 0], sizes = [4, 256], strides = [1, 1]} : vector<4x512xf32> to vector<4x256xf32>
    %111 = vector.broadcast %41 : f32 to vector<4x256xf32>
    %112 = arith.mulf %111, %110 : vector<4x256xf32>
    %113 = vector.extract_strided_slice %109 {offsets = [0, 256], sizes = [4, 256], strides = [1, 1]} : vector<4x512xf32> to vector<4x256xf32>
    %114 = vector.broadcast %43 : f32 to vector<4x256xf32>
    %115 = arith.mulf %114, %113 : vector<4x256xf32>
    %116 = arith.addf %112, %115 : vector<4x256xf32>
    %c0_43 = arith.constant 0 : index
    %c0_44 = arith.constant 0 : index
    %117 = vector.load %arg12[%c0_43, %c0_44] : memref<4x1xf32, #tpu.memory_space<vmem>>, vector<4x1xf32>
    %118 = vector.broadcast %117 : vector<4x1xf32> to vector<4x256xf32>
    %119 = arith.addf %116, %118 : vector<4x256xf32>
    %120 = vector.broadcast %7 : f32 to vector<4x256xf32>
    %121 = arith.mulf %120, %20 : vector<4x256xf32>
    %122 = vector.broadcast %9 : f32 to vector<4x256xf32>
    %123 = arith.mulf %122, %119 : vector<4x256xf32>
    %124 = arith.addf %121, %123 : vector<4x256xf32>
    %125 = tpu.concatenate %119, %124 in 0 : vector<4x256xf32>, vector<4x256xf32> -> vector<8x256xf32>
    %c0_45 = arith.constant 0 : index
    %c0_46 = arith.constant 0 : index
    %c0_47 = arith.constant 0 : index
    %c0_48 = arith.constant 0 : index
    %126 = vector.load %arg13[%c0_45, %c0_46, %c0_47, %c0_48] : memref<1x1x8x256xf32, #tpu.memory_space<vmem>>, vector<1x1x8x256xf32>
    %127 = vector.shape_cast %126 : vector<1x1x8x256xf32> to vector<8x256xf32>
    %128 = vector.shape_cast %125 : vector<8x256xf32> to vector<1x1x8x256xf32>
    tpu.vector_store %arg13[%c0_45, %c0_46, %c0_47, %c0_48], %128 {strides = array<i32>} : memref<1x1x8x256xf32, #tpu.memory_space<vmem>>, vector<1x1x8x256xf32>,
    %c0_49 = arith.constant 0 : index
    %c0_50 = arith.constant 0 : index
    %129 = vector.load %arg14[%c0_49, %c0_50] : memref<4x256xf32, #tpu.memory_space<vmem>>, vector<4x256xf32>
    tpu.vector_store %arg14[%c0_49, %c0_50], %124 {strides = array<i32>} : memref<4x256xf32, #tpu.memory_space<vmem>>, vector<4x256xf32>,
    return
  }
  func.func @transform_0(%arg0: i32, %arg1: i32) -> (i32, i32) {
    %c0_i32 = arith.constant 0 : i32
    %c0_i32_0 = arith.constant 0 : i32
    %c0_i32_1 = arith.constant 0 : i32
    return %c0_i32, %c0_i32_0 : i32, i32
  }
  func.func @transform_1(%arg0: i32, %arg1: i32) -> (i32, i32, i32) {
    %c0_i32 = arith.constant 0 : i32
    %c0_i32_0 = arith.constant 0 : i32
    %c0_i32_1 = arith.constant 0 : i32
    return %arg0, %c0_i32, %c0_i32_0 : i32, i32, i32
  }
  func.func @transform_2(%arg0: i32, %arg1: i32) -> (i32, i32, i32, i32) {
    %c0_i32 = arith.constant 0 : i32
    %c0_i32_0 = arith.constant 0 : i32
    %c0_i32_1 = arith.constant 0 : i32
    return %arg1, %arg0, %c0_i32, %c0_i32_0 : i32, i32, i32, i32
  }
  func.func @transform_3(%arg0: i32, %arg1: i32) -> (i32, i32, i32, i32) {
    %c0_i32 = arith.constant 0 : i32
    %c0_i32_0 = arith.constant 0 : i32
    %c0_i32_1 = arith.constant 0 : i32
    return %arg1, %arg0, %c0_i32, %c0_i32_0 : i32, i32, i32, i32
  }
  func.func @transform_4(%arg0: i32, %arg1: i32) -> (i32, i32, i32) {
    %c0_i32 = arith.constant 0 : i32
    %c0_i32_0 = arith.constant 0 : i32
    %c0_i32_1 = arith.constant 0 : i32
    return %arg0, %c0_i32, %c0_i32_0 : i32, i32, i32
  }
  func.func @transform_5(%arg0: i32, %arg1: i32) -> (i32, i32) {
    %c0_i32 = arith.constant 0 : i32
    %c0_i32_0 = arith.constant 0 : i32
    %c0_i32_1 = arith.constant 0 : i32
    return %c0_i32, %c0_i32_0 : i32, i32
  }
  func.func @transform_6(%arg0: i32, %arg1: i32) -> (i32, i32) {
    %c0_i32 = arith.constant 0 : i32
    %c0_i32_0 = arith.constant 0 : i32
    %c0_i32_1 = arith.constant 0 : i32
    return %c0_i32, %c0_i32_0 : i32, i32
  }
  func.func @transform_7(%arg0: i32, %arg1: i32) -> (i32, i32) {
    %c0_i32 = arith.constant 0 : i32
    %c0_i32_0 = arith.constant 0 : i32
    %c0_i32_1 = arith.constant 0 : i32
    return %c0_i32, %c0_i32_0 : i32, i32
  }
  func.func @transform_8(%arg0: i32, %arg1: i32) -> (i32, i32) {
    %c0_i32 = arith.constant 0 : i32
    %c0_i32_0 = arith.constant 0 : i32
    %c0_i32_1 = arith.constant 0 : i32
    return %c0_i32, %c0_i32_0 : i32, i32
  }
  func.func @transform_9(%arg0: i32, %arg1: i32) -> (i32, i32) {
    %c0_i32 = arith.constant 0 : i32
    %c0_i32_0 = arith.constant 0 : i32
    %c0_i32_1 = arith.constant 0 : i32
    return %c0_i32, %c0_i32_0 : i32, i32
  }
  func.func @transform_10(%arg0: i32, %arg1: i32) -> (i32, i32) {
    %c0_i32 = arith.constant 0 : i32
    %c0_i32_0 = arith.constant 0 : i32
    %c0_i32_1 = arith.constant 0 : i32
    return %c0_i32, %c0_i32_0 : i32, i32
  }
  func.func @transform_11(%arg0: i32, %arg1: i32) -> (i32, i32, i32, i32) {
    %c0_i32 = arith.constant 0 : i32
    %c0_i32_0 = arith.constant 0 : i32
    %c0_i32_1 = arith.constant 0 : i32
    return %arg1, %arg0, %c0_i32, %c0_i32_0 : i32, i32, i32, i32
  }
}

</mosaic_0001>

<bundles_post_ra>
// kernel: tpu_custom_call.1
= control target key start
LH: loop header
LB: loop body
LE: loop exit
PB: predicated region body
PF: predicated region fallthrough
CT: control target
= control target key end

     0   :  { %s4872_s0 = inlined_call_operand.vmem [shape: f32[4,8], index: 0, kind: input, shape index: {}]   ;;  %s4873_s1 = inlined_call_operand.vmem [shape: f32[2,4,256], index: 1, kind: input, shape index: {}]   ;;  %s4874_s2 = inlined_call_operand.vmem [shape: f32[2,2,4,256], index: 2, kind: input, shape index: {}]   ;;  %s4875_s3 = inlined_call_operand.vmem [shape: f32[2,2,128,1], index: 3, kind: input, shape index: {}]   ;;  %s4876_s4 = inlined_call_operand.vmem [shape: bf16[2,16,128], index: 4, kind: input, shape index: {}]   ;;  %s4877_s5 = inlined_call_operand.vmem [shape: f32[128,4], index: 5, kind: input, shape index: {}]   ;;  %s4878_s6 = inlined_call_operand.vmem [shape: bf16[128,128], index: 6, kind: input, shape index: {}]   ;;  %s4879_s7 = inlined_call_operand.vmem [shape: bf16[128,256], index: 7, kind: input, shape index: {}]   ;;  %s4880_s8 = inlined_call_operand.vmem [shape: bf16[128,128], index: 8, kind: input, shape index: {}]   ;;  %s4881_s9 = inlined_call_operand.vmem [shape: bf16[4,128], index: 9, kind: input, shape index: {}]   ;;  %s4882_s10 = inlined_call_operand.vmem [shape: f32[4,1], index: 10, kind: input, shape index: {}]   ;;  %s4883_s11 = inlined_call_operand.hbm [shape: f32[2,2,8,256], index: 11, kind: output, shape index: {}]  }
   0x1   :  { %4946 = sst [smem:[#allocation74_spill]] %s4872_s0 }
   0x2   :  { %4947 = sst [smem:[#allocation75_spill]] %s4877_s5 }
   0x3   :  { %4948 = sst [smem:[#allocation76_spill]] %s4878_s6 }
   0x4   :  { %4949 = sst [smem:[#allocation77_spill]] %s4880_s8 }
   0x5   :  { %4950 = sst [smem:[#allocation78_spill]] %s4881_s9 }
   0x6   :  { %4951 = sst [smem:[#allocation79_spill]] %s4882_s10 }
   0x7   :  { %4952 = sst [smem:[#allocation80_spill]] %s4883_s11 }
   0x8   :  { %16 = vsyncpa [#allocation5], 0 }
   0x9   :  { %17 = vsyncpa [#allocation4], 0 }
   0xa   :  { %19 = vsyncpa [#allocation4 + $0x1], 0  ;;  %s3468_s17 = smov 0   ;;  %s3470_s18 = smov 0  }
   0xb   :  { %s3472_s19 = smov 0   ;;  %s3474_s20 = smov 0  }
   0xc   :  { %s3476_s21 = smov 0   ;;  %s3478_s22 = smov 0  }
   0xd   :  { %s3480_s23 = smov 0   ;;  %s3482_s24 = smov 0  }
   0xe LB: > { %4953 = sst [smem:[#allocation9_spill]] %s3374_s17  ;;  %s2920_s25 = sadd.s32 4294967295, %s3402_s24   ;;  %s3402_s24 = sphi %s3482_s24, %s25_s24   ;;  %s3398_s23 = sphi %s3480_s23, %s5111_s23   ;;  %s3394_s22 = sphi %s3478_s22, %s5110_s22   ;;  %s3390_s21 = sphi %s3476_s21, %s5109_s21   ;;  %s3386_s20 = sphi %s3474_s20, %s5108_s20   ;;  %s3382_s19 = sphi %s3472_s19, %s5107_s19   ;;  %s3378_s18 = sphi %s3470_s18, %s5106_s18   ;;  %s3374_s17 = sphi %s3468_s17, %s5105_s17  }
   0xf   : > { %4954 = sst [smem:[#allocation10_spill]] %s3378_s18  ;;  %s2921_s26 = sadd.s32 4294967294, %s3402_s24  }
  0x10   : > { %4955 = sst [smem:[#allocation11_spill]] %s3382_s19  ;;  %s34_s27 = sadd.s32 1, %s3394_s22 }
  0x11   : > { %4956 = sst [smem:[#allocation12_spill]] %s3394_s22  ;;  %s37_s28 = sadd.s32 1, %s3398_s23 }
  0x12   : > { %4957 = sst [smem:[#allocation13_spill]] %s3398_s23  ;;  %p35_p0 = scmp.ge.s32.totalorder %s34_s27, 2 }
  0x13   : > { %4958 = sst [smem:[#allocation14_spill]] %s3402_s24  ;;  %s301_s29 = sadd.s32 1, %s3382_s19 }
  0x14   : > { %p311_p1 = scmp.ne.s32.totalorder %s3382_s19, %s3378_s18  ;;  %p312_p2 = scmp.eq.s32.totalorder %s2920_s25, 3 }
  0x15   : > { %s5113_s27 = smov (%p35_p0, %s34_s27), 0  ;;  %s5115_s28 = smov (!%p35_p0, %s37_s28), %s3398_s23 }
  0x16   : > { %4959 = sst [smem:[#allocation15_spill]] %s5113_s27  ;;  %s296_s30 = ssub.s32 %s3394_s22, %s5113_s27 }
  0x17   : > { %p3520_p3 = por %p312_p2, %p311_p1  ;;  %p39_p4 = scmp.ge.s32.totalorder %s5115_s28, 2 }
  0x18   : > { %p317_p5 = scmp.ne.s32.totalorder %s3378_s18, %s3374_s17  ;;  %p318_p6 = scmp.eq.s32.totalorder %s2921_s26, 3 }
  0x19   : > { %s4960_s12 = scalar_select %p3520_p3, 1, 0 }
  0x1a   : > { %p2922_p7 = scmp.ge.s32.totalorder %s3402_s24, 1  ;;  %s5117_s28 = smov (%p39_p4, %s5115_s28), 0 }
  0x1b   : > { %4961 = sst [smem:[#allocation16_spill]] %s4960_s12  ;;  %p3529_p8 = por %p318_p6, %p317_p5 }
  0x1c   : > { %4962 = sst [smem:[#allocation17_spill]] %s5117_s28  ;;  %p325_p9 = scmp.lt.s32.totalorder %s3402_s24, 5 }
  0x1d   : > { %s4963_s13 = scalar_select %p3529_p8, 1, 0 }
  0x1e   : > { %s297_s14 = ssub.s32 %s3398_s23, %s5117_s28  ;;  %p3536_p10 = pnand %p2922_p7, %p325_p9 }
  0x1f   : > { %4964 = sst [smem:[#allocation18_spill]] %s4963_s13  ;;  %s298_s15 = sor.u32 %s297_s14, %s296_s30 }
  0x20   : > { %p299_p11 = scmp.eq.s32.totalorder %s298_s15, 0  ;;  %p3540_p12 = scmp.eq.s32.totalorder %s2920_s25, 0 }
  0x21   : > { %p3024_p13 = pneg %p3536_p10  ;;  %s4967_s0 = sld [smem:[#allocation74_spill]] }
  0x22   : > { %s3550_s17 = scalar_select %p299_p11, %s3382_s19, %s301_s29  }
  0x23   : > { %p3025_p0 = pnand %p3540_p12, %p3024_p13 }
  0x24   : > { %4968 = sst [smem:[#allocation19_spill]] %s3550_s17 }
  0x25   : > { %p3291_p2 = pneg %p3025_p0 }
  0x27   : > { %s338_s13 = sshll.u32 %s4967_s0, 4  ;;  %s339_s13 = int_to_ptr.vmem [resolvable:$true] %s338_s13 }
  0x28   : > { %s3289_s30 = scalar_lea.vmem %s339_s13, 64  ;;  %p3297_p6 = scmp.lt.s32.totalorder %s339_s13, %s339_s13 }
  0x29   : > { %p3290_p1 = scmp.ne.s32.totalorder %s339_s13, %s3289_s30  ;;  %p3298_p7 = scmp.lt.s32.totalorder %s3289_s30, %s3289_s30 }
  0x2b   : > { %p3292_p4 = pnand %p3291_p2, %p3290_p1  ;;  %p3299_p9 = por %p3298_p7, %p3297_p6 }
  0x2d   : > { %p3293_p5 = pneg %p3292_p4 }
  0x2f   : > { %p3300_p8 = pnand %p3299_p9, %p3293_p5 }
  0x31   : > { %3303 = shalt.err (!%p3300_p8)
}
  0x32   : > { %s3404_s25 = smov [#allocation3]   ;;  %409 = sbr.rel (%p3536_p10) target bundleno = 1832 (0x728), region = 64 }
  0x33   : > { %3027 = dma.vmem_to_smem (!%p3025_p0), %s339_s13, 64, %s3404_s25, [#allocation5]  }
  0x39   : > { %3365 = dma.done.wait (%p3540_p12), [#allocation5], 64  }
  0x3a   : > { %3367 = vsyncadd (%p3540_p12), [#allocation5], 4294967232 }
  0x3b   : > { %415 = sfence }
  0x3c   : > { %s4894_s22 = sand.u32 1, %s3378_s18   ;;  %p473_p8 = scmp.lt.s32.totalorder %s3390_s21, 1 }
  0x3d   : > { %s2927_s29 = sshll.u32 %s4894_s22, 4  ;;  %p478_p11 = scmp.lt.s32.totalorder %s3386_s20, 1 }
  0x3e   : > { %s2938_s13 = sshll.u32 %s3386_s20, 1  ;;  %p2940_p10 = scmp.ne.s32.totalorder %s3386_s20, 0 }
  0x3f   : > { %s474_s14 = scalar_select %p473_p8, %s3390_s21, 1 }
  0x40   : > { %s479_s15 = scalar_select %p478_p11, %s3386_s20, 1 }
  0x41   : > { %s3016_s16 = sshll.u32 %s474_s14, 3  ;;  %s2930_s27 = sshll.u32 %s474_s14, 1 }
  0x42   : > { %s477_s25 = scalar_lea.vmem %s4873_s1, %s3016_s16  ;;  %s2931_s0 = sshll.u32 %s479_s15, 2 }
  0x43   : > { %s484_s28 = sadd.s32 %s2931_s0, %s2930_s27  ;;  %s2933_s23 = sshll.u32 %s474_s14, 4  ;;  %v516_v0 = vld [vmem:[%s477_s25] sm:$0xff] (!%p2940_p10) }
  0x44   : > { %s2932_s17 = sshll.u32 %s484_s28, 2  ;;  %s2934_s19 = sshll.u32 %s479_s15, 5  ;;  %517 = vst [vmem:[#allocation2] sm:$0xff] (!%p2940_p10), %v516_v0 }
  0x45   : > { %s486_s22 = scalar_lea.vmem %s4874_s2, %s2932_s17  ;;  %s493_s12 = sadd.s32 %s2934_s19, %s2933_s23 }
  0x46   : > { %s2935_s18 = sshll.u32 %s493_s12, 3  ;;  %s3577_s10 = scalar_lea.vmem %s4876_s4, %s3016_s16 }
  0x47   : > { %s3582_s26 = scalar_lea.vmem %s4875_s3, %s2935_s18  ;;  %s503_s0 = sadd.s32 %s3390_s21, %s2938_s13 }
  0x48   : > { %s3585_s14 = sshll.u32 %s503_s0, 7  ;;  %s3595_s28 = scalar_lea.vmem [#allocation6], %s2927_s29 }
  0x49   : > { %s505_s11 = sld [smem:[#allocation3 + %s3585_s14]]  ;;  %s506_s17 = sadd.s32 1, %s3585_s14 }
  0x4a   : > { %s507_s19 = sld [smem:[#allocation3 + %s506_s17]]  ;;  %s508_s23 = sadd.s32 2, %s3585_s14 }
  0x4b   : > { %s3590_s24 = sld [smem:[#allocation3 + %s508_s23]]  ;;  %s510_s8 = sadd.s32 3, %s3585_s14 }
  0x4c   : > { %s3593_s9 = sld [smem:[#allocation3 + %s510_s8]]  ;;  %515 = sbr.rel (%p2940_p10) target bundleno = 83 (0x53), region = 72 }
  0x53 PF: > { %v518_v1 = vld [vmem:[#allocation2] sm:$0xff]  ;;  %v519_v2 = vstv %s505_s11  ;;  %v522_v4 = vstv %s507_s19  ;;  %v3405_v7 = vmov 0.0   ;;  %v3406_v9 = vmov 0   ;;  %v3109_v14 = vld [vmem:[%s4879_s7 + $0x14] ss:$8 sps:$4 sm:$0xff]   ;;  %v542_v26 = vld [vmem:[%s3582_s26 + $0x8] sm:$0xff] }
  0x54   : > { %v521_v3 = vld [vmem:[%s486_s22] sm:$0xff]  ;;  %v520_v5 = vmul.f32 %v519_v2, %v518_v1  ;;  %757 = vmatprep.mubr.f32.mxu0 %v3405_v7  ;;  %3102 = vset.pattern.permute.xlu0 %v3406_v9  ;;  %vm688_vm0 = vcmask 1043456   ;;  %s4970_s22 = sld [smem:[#allocation75_spill]]  ;;  %vm639_vm1 = vcmask 31744   ;;  %v3107_v16 = vld [vmem:[%s4879_s7 + $0x10] ss:$8 sps:$4 sm:$0xff]  }
  0x55   : > { %v523_v6 = vmul.f32 %v522_v4, %v521_v3  ;;  %3103 = vset.pattern.permute.xlu1 %v3406_v9  ;;  %966 = vmatprep.mubr.bf16.mxu1 %v3406_v9  ;;  %v3106_v11 = vld [vmem:[%s4879_s7 + $0x4] ss:$8 sps:$4 sm:$0xff]   ;;  %v3104_v13 = vld [vmem:[%s4879_s7] ss:$8 sps:$4 sm:$0xff]   ;;  %v3115_v20 = vld [vmem:[%s4879_s7 + $0x34] ss:$8 sps:$4 sm:$0xff]  }
  0x56   : > { %v3112_v17 = vld [vmem:[%s4879_s7 + $0x24] ss:$8 sps:$4 sm:$0xff]   ;;  %v3110_v19 = vld [vmem:[%s4879_s7 + $0x20] ss:$8 sps:$4 sm:$0xff]   ;;  %v3113_v22 = vld [vmem:[%s4879_s7 + $0x30] ss:$8 sps:$4 sm:$0xff]  }
  0x57   : > { %v3599_v8 = vadd.f32 %v523_v6, %v520_v5  ;;  %v541_v23 = vld [vmem:[%s3582_s26] sm:$0xff]  ;;  %v543_v24 = vld [vmem:[%s3582_s26 + $0x10] sm:$0xff]  ;;  %v544_v28 = vld [vmem:[%s3582_s26 + $0x18] sm:$0xff]  ;;  %s4984_s19 = sld [smem:[#allocation76_spill]]  ;;  %s4986_s27 = sld [smem:[#allocation79_spill]]  ;;  %vm1347_vm2 = vcmask 64512  }
  0x58   : > { %v3118_v25 = vld [vmem:[%s4879_s7 + $0x44] ss:$8 sps:$4 sm:$0xff]   ;;  %559 = vperm.xlu0 %3102, %v541_v23   ;;  %569 = vperm.xlu1 %3103, %v543_v24   ;;  %v3116_v29 = vld [vmem:[%s4879_s7 + $0x40] ss:$8 sps:$4 sm:$0xff]   ;;  %v3121_v30 = vld [vmem:[%s4879_s7 + $0x54] ss:$8 sps:$4 sm:$0xff]  }
  0x59   : > { %4969 = vst [vmem:[#allocation20_spill] sm:$0xff] %v3599_v8  ;;  %v638_v10 = vcombine.high %v3599_v8, %v3599_v8  ;;  %v545_v31 = vld [vmem:[%s3582_s26 + $0x20] sm:$0xff]  ;;  %v546_v32 = vld [vmem:[%s3582_s26 + $0x28] sm:$0xff]  ;;  %v3119_v34 = vld [vmem:[%s4879_s7 + $0x50] ss:$8 sps:$4 sm:$0xff]   ;;  %s4987_s5 = sld [smem:[#allocation77_spill]] }
  0x5a   : > { %s4971_s29 = smov %s4970_s22  ;;  %v525_v12 = vld [vmem:[%s4970_s22] sm:$0xff]  ;;  %v547_v36 = vld [vmem:[%s3582_s26 + $0x30] sm:$0xff]  ;;  %v548_v37 = vld [vmem:[%s3582_s26 + $0x38] sm:$0xff]  ;;  %s5094_s23 = sld [smem:[#allocation78_spill]] }
  0x5b   : > { %2941 = vmatprep.subr.msk.mxu0 %vm688_vm0, %v638_v10  ;;  %v526_v15 = vld [vmem:[%s4971_s29 + $0x8] sm:$0xff]  ;;  %v527_v18 = vld [vmem:[%s4971_s29 + $0x10] sm:$0xff]  ;;  %v528_v21 = vld [vmem:[%s4971_s29 + $0x18] sm:$0xff]  ;;  %s1255_s6 = sadd.s32 4, %s3585_s14  ;;  %s1257_s18 = sadd.s32 5, %s3585_s14 }
  0x5c   : > { %2942 = vmatpush1.msk.msra.mxu0 %vm688_vm0, %v3599_v8  ;;  %v529_v27 = vld [vmem:[%s4971_s29 + $0x20] sm:$0xff]  ;;  %564 = vperm.xlu0 %3102, %v542_v26   ;;  %v530_v33 = vld [vmem:[%s4971_s29 + $0x28] sm:$0xff]  ;;  %v531_v38 = vld [vmem:[%s4971_s29 + $0x30] sm:$0xff]  ;;  %s1256_s12 = sld [smem:[#allocation3 + %s1255_s6]]  ;;  %s3011_s14 = sshll.u32 %s3390_s21, 1 }
  0x5d   : > { %2943 = vmatmul.mubr.msk.f32.vlgmr.msra.gmra.mrb[0].mxu0 %vm639_vm1, %v525_v12  ;;  %1167 = vmatprep.subr.bf16.mxu0 %v3106_v11  ;;  %v3124_v35 = vld [vmem:[%s4879_s7 + $0x64] ss:$8 sps:$4 sm:$0xff]   ;;  %v3122_v39 = vld [vmem:[%s4879_s7 + $0x60] ss:$8 sps:$4 sm:$0xff]   ;;  %v3127_v40 = vld [vmem:[%s4879_s7 + $0x74] ss:$8 sps:$4 sm:$0xff]   ;;  %s4985_s8 = smov %s4984_s19 }
  0x5e   : > { %763 = vmatprep.mubr.f32.mxu0 %v3405_v7  ;;  %1168 = vmatpush1.bf16.msra.mxu0 %v3104_v13  ;;  %v549_v41 = vld [vmem:[%s3582_s26 + $0x40] sm:$0xff]  ;;  %v550_v42 = vld [vmem:[%s3582_s26 + $0x48] sm:$0xff]  ;;  %v532_v43 = vld [vmem:[%s4971_s29 + $0x38] sm:$0xff]  ;;  %s1258_s22 = sld [smem:[#allocation3 + %s1257_s18]]  ;;  %s3012_s13 = sshll.u32 %s3386_s20, 2 }
  0x5f   : > { %1169 = vmatprep.subr.bf16.mxu0 %v3109_v14  ;;  %574 = vperm.xlu1 %3103, %v544_v28   ;;  %v3125_v44 = vld [vmem:[%s4879_s7 + $0x70] ss:$8 sps:$4 sm:$0xff]   ;;  %v533_v47 = vld [vmem:[%s4971_s29 + $0x40] sm:$0xff]  ;;  %v554_v49 = vld [vmem:[%s3582_s26 + $0x68] sm:$0xff]  ;;  %s2777_s15 = sadd.s32 %s3012_s13, %s3011_s14  ;;  %s2781_s30 = sshll.u32 %s3595_s28, 4  ;;  %s4817_s30 = int_to_ptr.vmem [resolvable:$true] %s2781_s30 }
  0x60   : > { %579 = vperm.xlu0 %3102, %v545_v31   ;;  %v551_v45 = vld [vmem:[%s3582_s26 + $0x50] sm:$0xff]  ;;  %v552_v46 = vld [vmem:[%s3582_s26 + $0x58] sm:$0xff]  ;;  %v553_v48 = vld [vmem:[%s3582_s26 + $0x60] sm:$0xff]  ;;  %s5098_s20 = sld [smem:[#allocation80_spill]]  ;;  %s3407_s17 = smov [#allocation6]  }
  0x61   : > { %2944 = vmatmul.mubr.msk.f32.gmra.mrb[2].mxu0 %vm639_vm1, %v526_v15  ;;  %v534_v50 = vld [vmem:[%s4971_s29 + $0x48] sm:$0xff]  ;;  %v555_v51 = vld [vmem:[%s3582_s26 + $0x70] sm:$0xff]  ;;  %v556_v52 = vld [vmem:[%s3582_s26 + $0x78] sm:$0xff]  ;;  %s5096_s26 = sld [smem:[#allocation10_spill]] }
  0x62   : > { %769 = vmatprep.mubr.f32.mxu0 %v3405_v7  ;;  %1170 = vmatpush1.bf16.msra.mxu0 %v3107_v16  ;;  %v535_v53 = vld [vmem:[%s4971_s29 + $0x50] sm:$0xff]  ;;  %v536_v54 = vld [vmem:[%s4971_s29 + $0x58] sm:$0xff]  ;;  %v537_v55 = vld [vmem:[%s4971_s29 + $0x60] sm:$0xff] }
  0x63   : > { %1171 = vmatprep.subr.bf16.mxu0 %v3112_v17  ;;  %584 = vperm.xlu1 %3103, %v546_v32   ;;  %v538_v56 = vld [vmem:[%s4971_s29 + $0x68] sm:$0xff]  ;;  %v539_v57 = vld [vmem:[%s4971_s29 + $0x70] sm:$0xff]  ;;  %v540_v58 = vld [vmem:[%s4971_s29 + $0x78] sm:$0xff] }
  0x64   : > { %589 = vperm.xlu0 %3102, %v547_v36   ;;  %v3128_v59 = vld [vmem:[%s3577_s10] sm:$0xff]   ;;  %s3304_s10 = scalar_lea.vmem %s4817_s30, 256 }
  0x65   : > { %2945 = vmatmul.mubr.msk.f32.gmra.mrb[4].mxu0 %vm639_vm1, %v527_v18  ;;  %p3305_p12 = scmp.ne.s32.totalorder %s4817_s30, %s3304_s10 }
  0x66   : > { %775 = vmatprep.mubr.f32.mxu0 %v3405_v7  ;;  %1172 = vmatpush1.bf16.msra.mxu0 %v3110_v19 }
  0x67   : > { %1173 = vmatprep.subr.bf16.mxu0 %v3115_v20  ;;  %594 = vperm.xlu1 %3103, %v548_v37   ;;  %s5100_s0 = sand.u32 1, %s5096_s26   ;;  %p3306_p13 = pnand %p3305_p12, %p3520_p3 }
  0x68   : > { %599 = vperm.xlu0 %3102, %v549_v41   ;;  %s2765_s11 = scalar_lea.sflag [#allocation4], %s5100_s0 }
  0x69   : > { %2946 = vmatmul.mubr.msk.f32.gmra.mrb[6].mxu0 %vm639_vm1, %v528_v21  ;;  %p3307_p0 = pneg %p3306_p13 }
  0x6a   : > { %781 = vmatprep.mubr.f32.mxu0 %v3405_v7  ;;  %1174 = vmatpush1.bf16.msra.mxu0 %v3113_v22 }
  0x6b   : > { %1175 = vmatprep.subr.bf16.mxu0 %v3118_v25  ;;  %604 = vperm.xlu1 %3103, %v550_v42  }
  0x6c   : > { %609 = vperm.xlu0 %3102, %v551_v45  }
  0x6d   : > { %2947 = vmatmul.mubr.msk.f32.gmra.mrb[8].mxu0 %vm639_vm1, %v529_v27 }
  0x6e   : > { %787 = vmatprep.mubr.f32.mxu0 %v3405_v7  ;;  %1176 = vmatpush1.bf16.msra.mxu0 %v3116_v29 }
  0x6f   : > { %1177 = vmatprep.subr.bf16.mxu0 %v3121_v30  ;;  %614 = vperm.xlu1 %3103, %v552_v46  }
  0x70   : > { %619 = vperm.xlu0 %3102, %v553_v48  }
  0x71   : > { %2948 = vmatmul.mubr.msk.f32.gmra.mrb[10].mxu0 %vm639_vm1, %v530_v33 }
  0x72   : > { %793 = vmatprep.mubr.f32.mxu0 %v3405_v7  ;;  %1178 = vmatpush1.bf16.msra.mxu0 %v3119_v34 }
  0x73   : > { %1179 = vmatprep.subr.bf16.mxu0 %v3124_v35  ;;  %624 = vperm.xlu1 %3103, %v554_v49  }
  0x74   : > { %629 = vperm.xlu0 %3102, %v555_v51  }
  0x75   : > { %2949 = vmatmul.mubr.msk.f32.gmra.mrb[12].mxu0 %vm639_vm1, %v531_v38 }
  0x76   : > { %799 = vmatprep.mubr.f32.mxu0 %v3405_v7  ;;  %1180 = vmatpush1.bf16.msra.mxu0 %v3122_v39 }
  0x77   : > { %1181 = vmatprep.subr.bf16.mxu0 %v3127_v40  ;;  %634 = vperm.xlu1 %3103, %v556_v52  }
  0x79   : > { %2950 = vmatmul.mubr.msk.f32.gmra.mrb[14].mxu0 %vm639_vm1, %v532_v43 }
  0x7a   : > { %805 = vmatprep.mubr.f32.mxu0 %v3405_v7  ;;  %1182 = vmatpush1.bf16.msra.mxu0 %v3125_v44 }
  0x7d   : > { %2951 = vmatmul.mubr.msk.f32.gmra.mrb[16].mxu0 %vm639_vm1, %v533_v47 }
  0x7e   : > { %811 = vmatprep.mubr.f32.mxu0 %v3405_v7 }
  0x81   : > { %2952 = vmatmul.mubr.msk.f32.gmra.mrb[18].mxu0 %vm639_vm1, %v534_v50 }
  0x82   : > { %817 = vmatprep.mubr.f32.mxu0 %v3405_v7 }
  0x85   : > { %2953 = vmatmul.mubr.msk.f32.gmra.mrb[20].mxu0 %vm639_vm1, %v535_v53 }
  0x86   : > { %823 = vmatprep.mubr.f32.mxu0 %v3405_v7 }
  0x89   : > { %2954 = vmatmul.mubr.msk.f32.gmra.mrb[22].mxu0 %vm639_vm1, %v536_v54 }
  0x8a   : > { %829 = vmatprep.mubr.f32.mxu0 %v3405_v7 }
  0x8d   : > { %2955 = vmatmul.mubr.msk.f32.gmra.mrb[24].mxu0 %vm639_vm1, %v537_v55 }
  0x8e   : > { %835 = vmatprep.mubr.f32.mxu0 %v3405_v7 }
  0x91   : > { %2956 = vmatmul.mubr.msk.f32.gmra.mrb[26].mxu0 %vm639_vm1, %v538_v56 }
  0x92   : > { %841 = vmatprep.mubr.f32.mxu0 %v3405_v7 }
  0x95   : > { %2957 = vmatmul.mubr.msk.f32.gmra.mrb[28].mxu0 %vm639_vm1, %v539_v57 }
  0x96   : > { %847 = vmatprep.mubr.f32.mxu0 %v3405_v7 }
  0x99   : > { %2958 = vmatmul.mubr.msk.f32.gmra.mrb[30].mxu0 %vm639_vm1, %v540_v58 }
  0x9a   : > { %1199 = vmatprep.mubr.bf16.mxu0 %v3406_v9 }
  0x9d   : > { %1200 = vmatmul.mubr.bf16.vlgmr.msra.gmra.mrb[32].mxu0 %v3128_v59 }
  0x9e   : > { %1410 = vmatprep.mubr.bf16.mxu0 %v3406_v9 }
  0xd7   : > { %v560_v60 = vpop.permute.xlu0 %559  ;;  %v570_v4 = vpop.permute.xlu1 %569 }
  0xdb   : > { %v565_v63 = vpop.permute.xlu0 %564 }
  0xde   : > { %v575_v13 = vpop.permute.xlu1 %574 }
  0xdf   : > { %v580_v26 = vpop.permute.xlu0 %579 }
  0xe2   : > { %v585_v24 = vpop.permute.xlu1 %584 }
  0xe3   : > { %v590_v38 = vpop.permute.xlu0 %589 }
  0xe6   : > { %v595_v36 = vpop.permute.xlu1 %594 }
  0xe7   : > { %v600_v50 = vpop.permute.xlu0 %599 }
  0xea   : > { %v605_v48 = vpop.permute.xlu1 %604 }
 0x130   : > { %v759_v61 = vpop.f32.mrb[0].mxu0 }
 0x131   : > { %v761_v62 = vpop.f32.mrb[1].mxu0  ;;  %v3761_v6 = vadd.f32 %v759_v61, %v560_v60 }
 0x132   : > { %v3757_v3 = vadd.f32 %v761_v62, %v560_v60  ;;  %v615_v60 = vpop.permute.xlu1 %614  ;;  %v610_v62 = vpop.permute.xlu0 %609 }
 0x134   : > { %v765_v0 = vpop.f32.mrb[2].mxu0 }
 0x135   : > { %v3755_v1 = vadd.f32 %v765_v0, %v565_v63  ;;  %v767_v2 = vpop.f32.mrb[3].mxu0 }
 0x136   : > { %v3759_v5 = vadd.f32 %v767_v2, %v565_v63 }
 0x137   : > { %v854_v12 = vpack.c.bf16 %v3755_v1, %v3761_v6 }
 0x138   : > { %v771_v7 = vpop.f32.mrb[4].mxu0  ;;  %v855_v10 = vpack.c.bf16 %v3759_v5, %v3757_v3 }
 0x139   : > { %v773_v11 = vpop.f32.mrb[5].mxu0  ;;  %v3773_v19 = vadd.f32 %v771_v7, %v570_v4 }
 0x13a   : > { %934 = vmatprep.subr.bf16.mxu1 %v855_v10  ;;  %v3769_v17 = vadd.f32 %v773_v11, %v570_v4 }
 0x13b   : > { %935 = vmatpush1.bf16.msra.mxu1 %v854_v12 }
 0x13c   : > { %v777_v14 = vpop.f32.mrb[6].mxu0 }
 0x13d   : > { %v3767_v15 = vadd.f32 %v777_v14, %v575_v13  ;;  %v779_v16 = vpop.f32.mrb[7].mxu0  ;;  %v625_v14 = vpop.permute.xlu1 %624 }
 0x13e   : > { %v3771_v18 = vadd.f32 %v779_v16, %v575_v13 }
 0x13f   : > { %v856_v23 = vpack.c.bf16 %v3767_v15, %v3773_v19 }
 0x140   : > { %v783_v20 = vpop.f32.mrb[8].mxu0  ;;  %v857_v21 = vpack.c.bf16 %v3771_v18, %v3769_v17 }
 0x141   : > { %v785_v22 = vpop.f32.mrb[9].mxu0  ;;  %v3785_v31 = vadd.f32 %v783_v20, %v580_v26  ;;  %v620_v20 = vpop.permute.xlu0 %619 }
 0x142   : > { %936 = vmatprep.subr.bf16.mxu1 %v857_v21  ;;  %v3781_v29 = vadd.f32 %v785_v22, %v580_v26 }
 0x143   : > { %937 = vmatpush1.bf16.msra.mxu1 %v856_v23 }
 0x144   : > { %v789_v25 = vpop.f32.mrb[10].mxu0 }
 0x145   : > { %v3779_v27 = vadd.f32 %v789_v25, %v585_v24  ;;  %v791_v28 = vpop.f32.mrb[11].mxu0 }
 0x146   : > { %v3783_v30 = vadd.f32 %v791_v28, %v585_v24 }
 0x147   : > { %v858_v35 = vpack.c.bf16 %v3779_v27, %v3785_v31 }
 0x148   : > { %v795_v32 = vpop.f32.mrb[12].mxu0  ;;  %v859_v33 = vpack.c.bf16 %v3783_v30, %v3781_v29 }
 0x149   : > { %v797_v34 = vpop.f32.mrb[13].mxu0  ;;  %v3797_v43 = vadd.f32 %v795_v32, %v590_v38 }
 0x14a   : > { %938 = vmatprep.subr.bf16.mxu1 %v859_v33  ;;  %v3793_v41 = vadd.f32 %v797_v34, %v590_v38  ;;  %v635_v34 = vpop.permute.xlu1 %634 }
 0x14b   : > { %939 = vmatpush1.bf16.msra.mxu1 %v858_v35 }
 0x14c   : > { %v801_v37 = vpop.f32.mrb[14].mxu0 }
 0x14d   : > { %v3791_v39 = vadd.f32 %v801_v37, %v595_v36  ;;  %v803_v40 = vpop.f32.mrb[15].mxu0 }
 0x14e   : > { %v3795_v42 = vadd.f32 %v803_v40, %v595_v36  ;;  %v630_v36 = vpop.permute.xlu0 %629 }
 0x14f   : > { %v860_v47 = vpack.c.bf16 %v3791_v39, %v3797_v43 }
 0x150   : > { %v807_v44 = vpop.f32.mrb[16].mxu0  ;;  %v861_v45 = vpack.c.bf16 %v3795_v42, %v3793_v41 }
 0x151   : > { %v809_v46 = vpop.f32.mrb[17].mxu0  ;;  %v3809_v55 = vadd.f32 %v807_v44, %v600_v50 }
 0x152   : > { %940 = vmatprep.subr.bf16.mxu1 %v861_v45  ;;  %v3805_v53 = vadd.f32 %v809_v46, %v600_v50 }
 0x153   : > { %941 = vmatpush1.bf16.msra.mxu1 %v860_v47 }
 0x154   : > { %v813_v49 = vpop.f32.mrb[18].mxu0 }
 0x155   : > { %v3803_v51 = vadd.f32 %v813_v49, %v605_v48  ;;  %v815_v52 = vpop.f32.mrb[19].mxu0 }
 0x156   : > { %v3807_v54 = vadd.f32 %v815_v52, %v605_v48  ;;  %v3129_v52 = vld [vmem:[%s4984_s19] sm:$0xff]   ;;  %s3308_s19 = sshll.u32 %s3407_s17, 4  ;;  %s3309_s19 = int_to_ptr.vmem [resolvable:$false] %s3308_s19 }
 0x157   : > { %v862_v59 = vpack.c.bf16 %v3803_v51, %v3809_v55  ;;  %p3311_p1 = scmp.lt.s32.totalorder %s4817_s30, %s3309_s19 }
 0x158   : > { %v819_v56 = vpop.f32.mrb[20].mxu0  ;;  %v863_v57 = vpack.c.bf16 %v3807_v54, %v3805_v53 }
 0x159   : > { %v821_v58 = vpop.f32.mrb[21].mxu0  ;;  %v3821_v7 = vadd.f32 %v819_v56, %v610_v62 }
 0x15a   : > { %942 = vmatprep.subr.bf16.mxu1 %v863_v57  ;;  %v3817_v2 = vadd.f32 %v821_v58, %v610_v62  ;;  %v3132_v62 = vld [vmem:[%s4985_s8 + $0x18] sm:$0xff]  }
 0x15b   : > { %943 = vmatpush1.bf16.msra.mxu1 %v862_v59  ;;  %4975 = vst [vmem:[#allocation24_spill] sm:$0xff] %v3821_v7 }
 0x15c   : > { %v825_v61 = vpop.f32.mrb[22].mxu0  ;;  %4973 = vst [vmem:[#allocation22_spill] sm:$0xff] %v3817_v2 }
 0x15d   : > { %v3815_v63 = vadd.f32 %v825_v61, %v615_v60  ;;  %v827_v0 = vpop.f32.mrb[23].mxu0  ;;  %v3131_v61 = vld [vmem:[%s4985_s8 + $0x10] sm:$0xff]  }
 0x15e   : > { %v3819_v4 = vadd.f32 %v827_v0, %v615_v60  ;;  %v3130_v60 = vld [vmem:[%s4985_s8 + $0x8] sm:$0xff]   ;;  %v3133_v0 = vld [vmem:[%s4985_s8 + $0x20] sm:$0xff]  }
 0x15f   : > { %4972 = vst [vmem:[#allocation21_spill] sm:$0xff] %v3815_v63  ;;  %v864_v13 = vpack.c.bf16 %v3815_v63, %v3821_v7 }
 0x160   : > { %4974 = vst [vmem:[#allocation23_spill] sm:$0xff] %v3819_v4  ;;  %v831_v10 = vpop.f32.mrb[24].mxu0  ;;  %v865_v11 = vpack.c.bf16 %v3819_v4, %v3817_v2 }
 0x161   : > { %v833_v12 = vpop.f32.mrb[25].mxu0  ;;  %v3833_v25 = vadd.f32 %v831_v10, %v620_v20  ;;  %v2738_v10 = vld [vmem:[%s4986_s27] sm:$0xf]  ;;  %s3013_s27 = sshll.u32 %s2777_s15, 7 }
 0x162   : > { %944 = vmatprep.subr.bf16.mxu1 %v865_v11  ;;  %v3829_v23 = vadd.f32 %v833_v12, %v620_v20  ;;  %v3134_v11 = vld [vmem:[%s4985_s8 + $0x28] sm:$0xff]   ;;  %v3135_v12 = vld [vmem:[%s4985_s8 + $0x30] sm:$0xff]   ;;  %s4815_s25 = scalar_lea.hbm %s5098_s20, %s3013_s27 }
 0x163   : > { %945 = vmatpush1.bf16.msra.mxu1 %v864_v13  ;;  %4979 = vst [vmem:[#allocation28_spill] sm:$0xff] %v3833_v25  ;;  %v3136_v13 = vld [vmem:[%s4985_s8 + $0x38] sm:$0xff]  }
 0x164   : > { %v837_v16 = vpop.f32.mrb[26].mxu0  ;;  %4977 = vst [vmem:[#allocation26_spill] sm:$0xff] %v3829_v23 }
 0x165   : > { %v3827_v21 = vadd.f32 %v837_v16, %v625_v14  ;;  %v839_v22 = vpop.f32.mrb[27].mxu0 }
 0x166   : > { %v3831_v24 = vadd.f32 %v839_v22, %v625_v14 }
 0x167   : > { %4976 = vst [vmem:[#allocation25_spill] sm:$0xff] %v3827_v21  ;;  %v866_v33 = vpack.c.bf16 %v3827_v21, %v3833_v25 }
 0x168   : > { %4978 = vst [vmem:[#allocation27_spill] sm:$0xff] %v3831_v24  ;;  %v843_v26 = vpop.f32.mrb[28].mxu0  ;;  %v867_v28 = vpack.c.bf16 %v3831_v24, %v3829_v23 }
 0x169   : > { %v845_v32 = vpop.f32.mrb[29].mxu0  ;;  %v3845_v45 = vadd.f32 %v843_v26, %v630_v36 }
 0x16a   : > { %946 = vmatprep.subr.bf16.mxu1 %v867_v28  ;;  %v3841_v40 = vadd.f32 %v845_v32, %v630_v36 }
 0x16b   : > { %947 = vmatpush1.bf16.msra.mxu1 %v866_v33  ;;  %4983 = vst [vmem:[#allocation32_spill] sm:$0xff] %v3845_v45 }
 0x16c   : > { %v849_v35 = vpop.f32.mrb[30].mxu0  ;;  %4981 = vst [vmem:[#allocation30_spill] sm:$0xff] %v3841_v40 }
 0x16d   : > { %v3839_v37 = vadd.f32 %v849_v35, %v635_v34  ;;  %v851_v38 = vpop.f32.mrb[31].mxu0 }
 0x16e   : > { %v3843_v44 = vadd.f32 %v851_v38, %v635_v34 }
 0x16f   : > { %4980 = vst [vmem:[#allocation29_spill] sm:$0xff] %v3839_v37  ;;  %v868_v49 = vpack.c.bf16 %v3839_v37, %v3845_v45 }
 0x170   : > { %4982 = vst [vmem:[#allocation31_spill] sm:$0xff] %v3843_v44  ;;  %v3847_v46 = vpop.f32.mrb[32].mxu0  ;;  %v869_v47 = vpack.c.bf16 %v3843_v44, %v3841_v40 }
 0x171   : > { %v1203_v48 = vpop.f32.mrb[33].mxu0 }
 0x172   : > { %948 = vmatprep.subr.bf16.mxu1 %v869_v47  ;;  %v3853_v50 = vpop.f32.mrb[34].mxu0 }
 0x173   : > { %v1210_v56 = vpack.c.bf16 %v3853_v50, %v3847_v46  ;;  %949 = vmatpush1.bf16.msra.mxu1 %v868_v49  ;;  %v1207_v57 = vpop.f32.mrb[35].mxu0 }
 0x174   : > { %v1211_v58 = vpack.c.bf16 %v1207_v57, %v1203_v48 }
 0x176   : > { %v1492_v59 = vrot.slane %v1211_v58, 4  ;;  %1331 = vxpose.xlu0.c.b16.start.end [1/1] (short) %v1211_v58, 128  ;;  %967 = vmatmul.mubr.bf16.vlgmr.msra.gmra.mrb[0].mxu1 %v3129_v52 }
 0x177   : > { %976 = vmatprep.mubr.bf16.mxu1 %v3406_v9 }
 0x178   : > { %1494 = vxpose.xlu1.c.b16.start.end [1/1] (short) %v1492_v59, 128 }
 0x17e   : > { %977 = vmatmul.mubr.bf16.gmra.mrb[4].mxu1 %v3130_v60 }
 0x17f   : > { %986 = vmatprep.mubr.bf16.mxu1 %v3406_v9 }
 0x186   : > { %987 = vmatmul.mubr.bf16.gmra.mrb[8].mxu1 %v3131_v61 }
 0x187   : > { %996 = vmatprep.mubr.bf16.mxu1 %v3406_v9 }
 0x18e   : > { %997 = vmatmul.mubr.bf16.gmra.mrb[12].mxu1 %v3132_v62 }
 0x18f   : > { %1006 = vmatprep.mubr.bf16.mxu1 %v3406_v9 }
 0x196   : > { %1007 = vmatmul.mubr.bf16.gmra.mrb[16].mxu1 %v3133_v0 }
 0x197   : > { %1016 = vmatprep.mubr.bf16.mxu1 %v3406_v9 }
 0x19b   : > { %2741 = vperm.xlu0 %3102, %v2738_v10  }
 0x19e   : > { %1017 = vmatmul.mubr.bf16.gmra.mrb[20].mxu1 %v3134_v11 }
 0x19f   : > { %1026 = vmatprep.mubr.bf16.mxu1 %v3406_v9 }
 0x1a6   : > { %1027 = vmatmul.mubr.bf16.gmra.mrb[24].mxu1 %v3135_v12 }
 0x1a7   : > { %1036 = vmatprep.mubr.bf16.mxu1 %v3406_v9 }
 0x1ae   : > { %1037 = vmatmul.mubr.bf16.gmra.mrb[28].mxu1 %v3136_v13 }
 0x1af   : > { %1244 = vmatprep.mubr.bf16.mxu1 %v3406_v9 }
 0x249   : > { %v968_v14 = vpop.f32.mrb[0].mxu1 }
 0x24a   : > { %v970_v16 = vpop.f32.mrb[1].mxu1 }
 0x24b   : > { %v972_v20 = vpop.f32.mrb[2].mxu1 }
 0x24c   : > { %v1047_v22 = vpack.c.bf16 %v972_v20, %v968_v14  ;;  %v974_v26 = vpop.f32.mrb[3].mxu1 }
 0x24d   : > { %v1048_v28 = vpack.c.bf16 %v974_v26, %v970_v16 }
 0x24f   : > { %1212 = vmatprep.subr.bf16.mxu1 %v1048_v28 }
 0x250   : > { %1213 = vmatpush1.bf16.msra.mxu1 %v1047_v22 }
 0x251   : > { %v978_v32 = vpop.f32.mrb[4].mxu1 }
 0x252   : > { %v980_v33 = vpop.f32.mrb[5].mxu1 }
 0x253   : > { %v982_v34 = vpop.f32.mrb[6].mxu1 }
 0x254   : > { %v1049_v35 = vpack.c.bf16 %v982_v34, %v978_v32  ;;  %v984_v36 = vpop.f32.mrb[7].mxu1 }
 0x255   : > { %v1050_v38 = vpack.c.bf16 %v984_v36, %v980_v33 }
 0x257   : > { %1214 = vmatprep.subr.bf16.mxu1 %v1050_v38 }
 0x258   : > { %1215 = vmatpush1.bf16.msra.mxu1 %v1049_v35 }
 0x259   : > { %v988_v47 = vpop.f32.mrb[8].mxu1 }
 0x25a   : > { %v990_v48 = vpop.f32.mrb[9].mxu1 }
 0x25b   : > { %v992_v49 = vpop.f32.mrb[10].mxu1 }
 0x25c   : > { %v1051_v52 = vpack.c.bf16 %v992_v49, %v988_v47  ;;  %v994_v57 = vpop.f32.mrb[11].mxu1 }
 0x25d   : > { %v1052_v58 = vpack.c.bf16 %v994_v57, %v990_v48 }
 0x25f   : > { %1216 = vmatprep.subr.bf16.mxu1 %v1052_v58 }
 0x260   : > { %1217 = vmatpush1.bf16.msra.mxu1 %v1051_v52 }
 0x261   : > { %v998_v59 = vpop.f32.mrb[12].mxu1 }
 0x262   : > { %v1000_v60 = vpop.f32.mrb[13].mxu1 }
 0x263   : > { %v1002_v61 = vpop.f32.mrb[14].mxu1 }
 0x264   : > { %v1053_v62 = vpack.c.bf16 %v1002_v61, %v998_v59  ;;  %v1004_v0 = vpop.f32.mrb[15].mxu1 }
 0x265   : > { %v1054_v10 = vpack.c.bf16 %v1004_v0, %v1000_v60 }
 0x267   : > { %1218 = vmatprep.subr.bf16.mxu1 %v1054_v10 }
 0x268   : > { %1219 = vmatpush1.bf16.msra.mxu1 %v1053_v62 }
 0x269   : > { %v1008_v11 = vpop.f32.mrb[16].mxu1 }
 0x26a   : > { %v1010_v12 = vpop.f32.mrb[17].mxu1 }
 0x26b   : > { %v1012_v13 = vpop.f32.mrb[18].mxu1 }
 0x26c   : > { %v1055_v14 = vpack.c.bf16 %v1012_v13, %v1008_v11  ;;  %v1014_v16 = vpop.f32.mrb[19].mxu1 }
 0x26d   : > { %v1056_v20 = vpack.c.bf16 %v1014_v16, %v1010_v12 }
 0x26f   : > { %1220 = vmatprep.subr.bf16.mxu1 %v1056_v20 }
 0x270   : > { %1221 = vmatpush1.bf16.msra.mxu1 %v1055_v14 }
 0x271   : > { %v1018_v22 = vpop.f32.mrb[20].mxu1 }
 0x272   : > { %v1020_v26 = vpop.f32.mrb[21].mxu1 }
 0x273   : > { %v1022_v28 = vpop.f32.mrb[22].mxu1 }
 0x274   : > { %v1057_v32 = vpack.c.bf16 %v1022_v28, %v1018_v22  ;;  %v1024_v33 = vpop.f32.mrb[23].mxu1 }
 0x275   : > { %v1058_v34 = vpack.c.bf16 %v1024_v33, %v1020_v26 }
 0x277   : > { %1222 = vmatprep.subr.bf16.mxu1 %v1058_v34 }
 0x278   : > { %1223 = vmatpush1.bf16.msra.mxu1 %v1057_v32 }
 0x279   : > { %v1028_v35 = vpop.f32.mrb[24].mxu1 }
 0x27a   : > { %v1030_v36 = vpop.f32.mrb[25].mxu1 }
 0x27b   : > { %v1032_v38 = vpop.f32.mrb[26].mxu1 }
 0x27c   : > { %v1059_v47 = vpack.c.bf16 %v1032_v38, %v1028_v35  ;;  %v1034_v48 = vpop.f32.mrb[27].mxu1 }
 0x27d   : > { %v1060_v49 = vpack.c.bf16 %v1034_v48, %v1030_v36 }
 0x27f   : > { %1224 = vmatprep.subr.bf16.mxu1 %v1060_v49 }
 0x280   : > { %1225 = vmatpush1.bf16.msra.mxu1 %v1059_v47 }
 0x281   : > { %v1038_v52 = vpop.f32.mrb[28].mxu1 }
 0x282   : > { %v1040_v57 = vpop.f32.mrb[29].mxu1 }
 0x283   : > { %v1042_v58 = vpop.f32.mrb[30].mxu1 }
 0x284   : > { %v1061_v59 = vpack.c.bf16 %v1042_v58, %v1038_v52  ;;  %v1044_v60 = vpop.f32.mrb[31].mxu1 }
 0x285   : > { %v1062_v61 = vpack.c.bf16 %v1044_v60, %v1040_v57 }
 0x287   : > { %1226 = vmatprep.subr.bf16.mxu1 %v1062_v61 }
 0x288   : > { %1227 = vmatpush1.bf16.msra.mxu1 %v1061_v59 }
 0x28b   : > { %1245 = vmatmul.mubr.bf16.vlgmr.msra.gmra.mrb[32].mxu1 %v1210_v56 }
 0x28c   : > { %1572 = vmatprep.mubr.bf16.mxu1 %v3406_v9 }
 0x35e   : > { %v1246_v62 = vpop.f32.mrb[32].mxu1 }
 0x35f   : > { %v1259_v0 = vrot.slane %v1246_v62, 4  ;;  %v1248_v10 = vpop.f32.mrb[33].mxu1 }
 0x360   : > { %v1265_v11 = vrot.slane %v1248_v10, 4  ;;  %v1250_v12 = vpop.f32.mrb[34].mxu1 }
 0x361   : > { %v1260_v13 = vmax.f32 %v1246_v62, %v1259_v0  ;;  %v1295_v14 = vrot.slane %v1250_v12, 4  ;;  %v1252_v16 = vpop.f32.mrb[35].mxu1 }
 0x362   : > { %v1266_v20 = vmax.f32 %v1248_v10, %v1265_v11  ;;  %v1301_v22 = vrot.slane %v1252_v16, 4 }
 0x363   : > { %v1261_v26 = vrot.slane %v1260_v13, 2  ;;  %v1296_v28 = vmax.f32 %v1250_v12, %v1295_v14 }
 0x364   : > { %v1267_v32 = vrot.slane %v1266_v20, 2  ;;  %v1302_v33 = vmax.f32 %v1252_v16, %v1301_v22 }
 0x365   : > { %v1262_v34 = vmax.f32 %v1260_v13, %v1261_v26  ;;  %v1297_v35 = vrot.slane %v1296_v28, 2 }
 0x366   : > { %v1268_v46 = vmax.f32 %v1266_v20, %v1267_v32  ;;  %v1303_v50 = vrot.slane %v1302_v33, 2 }
 0x367   : > { %v1263_v56 = vrot.slane %v1262_v34, 1  ;;  %v1298_v36 = vmax.f32 %v1296_v28, %v1297_v35 }
 0x368   : > { %v1269_v38 = vrot.slane %v1268_v46, 1  ;;  %v1304_v47 = vmax.f32 %v1302_v33, %v1303_v50 }
 0x369   : > { %v1264_v48 = vmax.f32 %v1262_v34, %v1263_v56  ;;  %v1299_v49 = vrot.slane %v1298_v36, 1 }
 0x36a   : > { %v1270_v52 = vmax.f32 %v1268_v46, %v1269_v38  ;;  %v1305_v57 = vrot.slane %v1304_v47, 1 }
 0x36b   : > { %v1271_v58 = vsub.f32 %v1246_v62, %v1264_v48  ;;  %v1300_v59 = vmax.f32 %v1298_v36, %v1299_v49 }
 0x36c   : > { %v1272_v60 = vsub.f32 %v1248_v10, %v1270_v52  ;;  %v1306_v61 = vmax.f32 %v1304_v47, %v1305_v57 }
 0x36d   : > { %v1273_v0 = vmul.f32 1.442695, %v1271_v58  ;;  %v1307_v11 = vsub.f32 %v1250_v12, %v1300_v59 }
 0x36e   : > { %v1275_v14 = vmul.f32 1.442695, %v1272_v60  ;;  %v1308_v22 = vsub.f32 %v1252_v16, %v1306_v61 }
 0x36f   : > { %3145 = vpow2.f32 %v1273_v0  ;;  %v1309_v13 = vmul.f32 1.442695, %v1307_v11 }
 0x370   : > { %3147 = vpow2.f32 %v1275_v14  ;;  %v1311_v20 = vmul.f32 1.442695, %v1308_v22 }
 0x371   : > { %3149 = vpow2.f32 %v1309_v13 }
 0x372   : > { %3151 = vpow2.f32 %v1311_v20 }
 0x379   : > { %v3146_v26 = vpop.eup %3145 }
 0x37a   : > { %v3148_v28 = vpop.eup %3147  ;;  %v1277_v32 = vrot.slane %v3146_v26, 4 }
 0x37b   : > { %v3150_v33 = vpop.eup %3149  ;;  %v1283_v34 = vrot.slane %v3148_v28, 4 }
 0x37c   : > { %v3152_v35 = vpop.eup %3151  ;;  %v1278_v62 = vadd.f32 %v3146_v26, %v1277_v32  ;;  %v1313_v46 = vrot.slane %v3150_v33, 4 }
 0x37d   : > { %v1284_v10 = vadd.f32 %v3148_v28, %v1283_v34  ;;  %v1319_v50 = vrot.slane %v3152_v35, 4 }
 0x37e   : > { %v1279_v56 = vrot.slane %v1278_v62, 2  ;;  %v1314_v12 = vadd.f32 %v3150_v33, %v1313_v46 }
 0x37f   : > { %v1285_v36 = vrot.slane %v1284_v10, 2  ;;  %v1320_v16 = vadd.f32 %v3152_v35, %v1319_v50 }
 0x380   : > { %v1280_v38 = vadd.f32 %v1279_v56, %v1278_v62  ;;  %v1315_v47 = vrot.slane %v1314_v12, 2 }
 0x381   : > { %v1286_v48 = vadd.f32 %v1285_v36, %v1284_v10  ;;  %v1321_v49 = vrot.slane %v1320_v16, 2 }
 0x382   : > { %v1281_v52 = vrot.slane %v1280_v38, 1  ;;  %v1316_v57 = vadd.f32 %v1315_v47, %v1314_v12 }
 0x383   : > { %v1287_v58 = vrot.slane %v1286_v48, 1  ;;  %v1322_v59 = vadd.f32 %v1321_v49, %v1320_v16 }
 0x384   : > { %v1282_v60 = vadd.f32 %v1281_v52, %v1280_v38  ;;  %v1317_v61 = vrot.slane %v1316_v57, 1 }
 0x385   : > { %v1288_v0 = vadd.f32 %v1287_v58, %v1286_v48  ;;  %v1323_v11 = vrot.slane %v1322_v59, 1 }
 0x386   : > { %3153 = vrcp.f32 %v1282_v60  ;;  %v1318_v14 = vadd.f32 %v1317_v61, %v1316_v57 }
 0x387   : > { %3155 = vrcp.f32 %v1288_v0  ;;  %v1324_v22 = vadd.f32 %v1323_v11, %v1322_v59 }
 0x388   : > { %3157 = vrcp.f32 %v1318_v14 }
 0x389   : > { %3159 = vrcp.f32 %v1324_v22 }
 0x390   : > { %v3154_v13 = vpop.eup %3153 }
 0x391   : > { %v3156_v20 = vpop.eup %3155  ;;  %v1290_v32 = vmul.f32 %v3154_v13, %v3146_v26  ;;  %v1339_v26 = vpop.trf.xlu0 }
 0x392   : > { %v3158_v34 = vpop.eup %3157  ;;  %v1292_v62 = vmul.f32 %v3156_v20, %v3148_v28  ;;  %v1502_v28 = vpop.trf.xlu1 }
 0x393   : > { %v3160_v46 = vpop.eup %3159  ;;  %v1293_v10 = vpack.c.bf16 %v1290_v32, %v1290_v32  ;;  %v1326_v50 = vmul.f32 %v3158_v34, %v3150_v33 }
 0x394   : > { %v1294_v56 = vpack.c.bf16 %v1292_v62, %v1292_v62  ;;  %v1328_v12 = vmul.f32 %v3160_v46, %v3152_v35 }
 0x395   : > { %v1373_v36 = vsel %vm688_vm0, %v1293_v10, 0  ;;  %v1329_v16 = vpack.c.bf16 %v1326_v50, %v1326_v50  ;;  %v1340_v33 = vpop.trf.xlu0 }
 0x396   : > { %2984 = vmatprep.subr.msk.bf16.mxu0 %vm688_vm0, %v1294_v56  ;;  %v1330_v38 = vpack.c.bf16 %v1328_v12, %v1328_v12  ;;  %v1503_v35 = vpop.trf.xlu1 }
 0x397   : > { %1379 = vmatpush1.bf16.msra.mxu0 %v1373_v36  ;;  %v1535_v47 = vsel %vm688_vm0, %v1329_v16, 0 }
 0x398   : > { %2993 = vmatprep.subr.msk.bf16.mxu1 %vm688_vm0, %v1330_v38 }
 0x399   : > { %1541 = vmatpush1.bf16.msra.mxu1 %v1535_v47  ;;  %v1341_v48 = vpop.trf.xlu0 }
 0x39a   : > { %2985 = vmatmul.mubr.msk.bf16.vlgmr.msra.gmra.mrb[36].mxu0 %vm1347_vm2, %v1339_v26  ;;  %v1504_v49 = vpop.trf.xlu1 }
 0x39b   : > { %1420 = vmatprep.mubr.bf16.mxu0 %v3406_v9 }
 0x39c   : > { %2994 = vmatmul.mubr.msk.bf16.vlgmr.msra.gmra.mrb[36].mxu1 %vm1347_vm2, %v1502_v28 }
 0x39d   : > { %1582 = vmatprep.mubr.bf16.mxu1 %v3406_v9  ;;  %v1342_v52 = vpop.trf.xlu0 }
 0x39e   : > { %v1505_v57 = vpop.trf.xlu1 }
 0x3a1   : > { %v1343_v58 = vpop.trf.xlu0 }
 0x3a2   : > { %2986 = vmatmul.mubr.msk.bf16.gmra.mrb[40].mxu0 %vm1347_vm2, %v1340_v33  ;;  %v1506_v59 = vpop.trf.xlu1 }
 0x3a3   : > { %1430 = vmatprep.mubr.bf16.mxu0 %v3406_v9 }
 0x3a4   : > { %2995 = vmatmul.mubr.msk.bf16.gmra.mrb[40].mxu1 %vm1347_vm2, %v1503_v35 }
 0x3a5   : > { %1592 = vmatprep.mubr.bf16.mxu1 %v3406_v9  ;;  %v1344_v60 = vpop.trf.xlu0 }
 0x3a6   : > { %v1507_v61 = vpop.trf.xlu1 }
 0x3a9   : > { %v1345_v0 = vpop.trf.xlu0 }
 0x3aa   : > { %2987 = vmatmul.mubr.msk.bf16.gmra.mrb[44].mxu0 %vm1347_vm2, %v1341_v48  ;;  %v1508_v11 = vpop.trf.xlu1 }
 0x3ab   : > { %1440 = vmatprep.mubr.bf16.mxu0 %v3406_v9 }
 0x3ac   : > { %2996 = vmatmul.mubr.msk.bf16.gmra.mrb[44].mxu1 %vm1347_vm2, %v1504_v49 }
 0x3ad   : > { %1602 = vmatprep.mubr.bf16.mxu1 %v3406_v9  ;;  %v1346_v14 = vpop.trf.xlu0 }
 0x3ae   : > { %v1509_v22 = vpop.trf.xlu1 }
 0x3b2   : > { %2988 = vmatmul.mubr.msk.bf16.gmra.mrb[48].mxu0 %vm1347_vm2, %v1342_v52 }
 0x3b3   : > { %1450 = vmatprep.mubr.bf16.mxu0 %v3406_v9 }
 0x3b4   : > { %2997 = vmatmul.mubr.msk.bf16.gmra.mrb[48].mxu1 %vm1347_vm2, %v1505_v57 }
 0x3b5   : > { %1612 = vmatprep.mubr.bf16.mxu1 %v3406_v9 }
 0x3ba   : > { %2989 = vmatmul.mubr.msk.bf16.gmra.mrb[52].mxu0 %vm1347_vm2, %v1343_v58 }
 0x3bb   : > { %1460 = vmatprep.mubr.bf16.mxu0 %v3406_v9 }
 0x3bc   : > { %2998 = vmatmul.mubr.msk.bf16.gmra.mrb[52].mxu1 %vm1347_vm2, %v1506_v59 }
 0x3bd   : > { %1622 = vmatprep.mubr.bf16.mxu1 %v3406_v9 }
 0x3c2   : > { %2990 = vmatmul.mubr.msk.bf16.gmra.mrb[56].mxu0 %vm1347_vm2, %v1344_v60 }
 0x3c3   : > { %1470 = vmatprep.mubr.bf16.mxu0 %v3406_v9 }
 0x3c4   : > { %2999 = vmatmul.mubr.msk.bf16.gmra.mrb[56].mxu1 %vm1347_vm2, %v1507_v61 }
 0x3c5   : > { %1632 = vmatprep.mubr.bf16.mxu1 %v3406_v9 }
 0x3ca   : > { %2991 = vmatmul.mubr.msk.bf16.gmra.mrb[60].mxu0 %vm1347_vm2, %v1345_v0 }
 0x3cb   : > { %1480 = vmatprep.mubr.bf16.mxu0 %v3406_v9 }
 0x3cc   : > { %3000 = vmatmul.mubr.msk.bf16.gmra.mrb[60].mxu1 %vm1347_vm2, %v1508_v11 }
 0x3cd   : > { %1642 = vmatprep.mubr.bf16.mxu1 %v3406_v9 }
 0x3d2   : > { %2992 = vmatmul.mubr.msk.bf16.gmra.mrb[64].mxu0 %vm1347_vm2, %v1346_v14 }
 0x3d3   : > { %1781 = vmatprep.mubr.bf16.mxu0 %v3406_v9 }
 0x3d4   : > { %3001 = vmatmul.mubr.msk.bf16.gmra.mrb[64].mxu1 %vm1347_vm2, %v1509_v22 }
 0x3d5   : > { %1894 = vmatprep.mubr.bf16.mxu1 %v3406_v9 }
 0x46d   : > { %v1412_v13 = vpop.f32.mrb[36].mxu0 }
 0x46e   : > { %v1414_v20 = vpop.f32.mrb[37].mxu0 }
 0x46f   : > { %v1416_v32 = vpop.f32.mrb[38].mxu0  ;;  %v1574_v34 = vpop.f32.mrb[36].mxu1 }
 0x470   : > { %v1653_v62 = vpack.c.bf16 %v1416_v32, %v1412_v13  ;;  %v1418_v46 = vpop.f32.mrb[39].mxu0  ;;  %v1576_v10 = vpop.f32.mrb[37].mxu1 }
 0x471   : > { %v1654_v50 = vpack.c.bf16 %v1418_v46, %v1414_v20  ;;  %v1578_v56 = vpop.f32.mrb[38].mxu1 }
 0x472   : > { %v1669_v12 = vpack.c.bf16 %v1578_v56, %v1574_v34  ;;  %v1580_v36 = vpop.f32.mrb[39].mxu1 }
 0x473   : > { %v1670_v16 = vpack.c.bf16 %v1580_v36, %v1576_v10  ;;  %1749 = vmatprep.subr.bf16.mxu0 %v1654_v50 }
 0x474   : > { %1750 = vmatpush1.bf16.msra.mxu0 %v1653_v62 }
 0x475   : > { %v1422_v38 = vpop.f32.mrb[40].mxu0  ;;  %1862 = vmatprep.subr.bf16.mxu1 %v1670_v16 }
 0x476   : > { %v1424_v47 = vpop.f32.mrb[41].mxu0  ;;  %1863 = vmatpush1.bf16.msra.mxu1 %v1669_v12 }
 0x477   : > { %v1426_v26 = vpop.f32.mrb[42].mxu0  ;;  %v1584_v28 = vpop.f32.mrb[40].mxu1 }
 0x478   : > { %v1655_v33 = vpack.c.bf16 %v1426_v26, %v1422_v38  ;;  %v1428_v35 = vpop.f32.mrb[43].mxu0  ;;  %v1586_v48 = vpop.f32.mrb[41].mxu1 }
 0x479   : > { %v1656_v49 = vpack.c.bf16 %v1428_v35, %v1424_v47  ;;  %v1588_v52 = vpop.f32.mrb[42].mxu1 }
 0x47a   : > { %v1671_v57 = vpack.c.bf16 %v1588_v52, %v1584_v28  ;;  %v1590_v58 = vpop.f32.mrb[43].mxu1 }
 0x47b   : > { %v1672_v59 = vpack.c.bf16 %v1590_v58, %v1586_v48  ;;  %1751 = vmatprep.subr.bf16.mxu0 %v1656_v49 }
 0x47c   : > { %1752 = vmatpush1.bf16.msra.mxu0 %v1655_v33 }
 0x47d   : > { %v1432_v60 = vpop.f32.mrb[44].mxu0  ;;  %1864 = vmatprep.subr.bf16.mxu1 %v1672_v59 }
 0x47e   : > { %v1434_v61 = vpop.f32.mrb[45].mxu0  ;;  %1865 = vmatpush1.bf16.msra.mxu1 %v1671_v57 }
 0x47f   : > { %v1436_v0 = vpop.f32.mrb[46].mxu0  ;;  %v1594_v11 = vpop.f32.mrb[44].mxu1 }
 0x480   : > { %v1657_v14 = vpack.c.bf16 %v1436_v0, %v1432_v60  ;;  %v1438_v22 = vpop.f32.mrb[47].mxu0  ;;  %v1596_v13 = vpop.f32.mrb[45].mxu1 }
 0x481   : > { %v1658_v20 = vpack.c.bf16 %v1438_v22, %v1434_v61  ;;  %v1598_v32 = vpop.f32.mrb[46].mxu1 }
 0x482   : > { %v1673_v34 = vpack.c.bf16 %v1598_v32, %v1594_v11  ;;  %v1600_v62 = vpop.f32.mrb[47].mxu1 }
 0x483   : > { %v1674_v46 = vpack.c.bf16 %v1600_v62, %v1596_v13  ;;  %1753 = vmatprep.subr.bf16.mxu0 %v1658_v20 }
 0x484   : > { %1754 = vmatpush1.bf16.msra.mxu0 %v1657_v14 }
 0x485   : > { %v1442_v10 = vpop.f32.mrb[48].mxu0  ;;  %1866 = vmatprep.subr.bf16.mxu1 %v1674_v46 }
 0x486   : > { %v1444_v50 = vpop.f32.mrb[49].mxu0  ;;  %1867 = vmatpush1.bf16.msra.mxu1 %v1673_v34 }
 0x487   : > { %v1446_v56 = vpop.f32.mrb[50].mxu0  ;;  %v1604_v12 = vpop.f32.mrb[48].mxu1 }
 0x488   : > { %v1659_v36 = vpack.c.bf16 %v1446_v56, %v1442_v10  ;;  %v1448_v16 = vpop.f32.mrb[51].mxu0  ;;  %v1606_v38 = vpop.f32.mrb[49].mxu1 }
 0x489   : > { %v1660_v47 = vpack.c.bf16 %v1448_v16, %v1444_v50  ;;  %v1608_v26 = vpop.f32.mrb[50].mxu1 }
 0x48a   : > { %v1675_v28 = vpack.c.bf16 %v1608_v26, %v1604_v12  ;;  %v1610_v33 = vpop.f32.mrb[51].mxu1 }
 0x48b   : > { %v1676_v35 = vpack.c.bf16 %v1610_v33, %v1606_v38  ;;  %1755 = vmatprep.subr.bf16.mxu0 %v1660_v47 }
 0x48c   : > { %1756 = vmatpush1.bf16.msra.mxu0 %v1659_v36 }
 0x48d   : > { %v1452_v48 = vpop.f32.mrb[52].mxu0  ;;  %1868 = vmatprep.subr.bf16.mxu1 %v1676_v35 }
 0x48e   : > { %v1454_v49 = vpop.f32.mrb[53].mxu0  ;;  %1869 = vmatpush1.bf16.msra.mxu1 %v1675_v28 }
 0x48f   : > { %v1456_v52 = vpop.f32.mrb[54].mxu0  ;;  %v1614_v57 = vpop.f32.mrb[52].mxu1 }
 0x490   : > { %v1661_v58 = vpack.c.bf16 %v1456_v52, %v1452_v48  ;;  %v1458_v59 = vpop.f32.mrb[55].mxu0  ;;  %v1616_v60 = vpop.f32.mrb[53].mxu1 }
 0x491   : > { %v1662_v61 = vpack.c.bf16 %v1458_v59, %v1454_v49  ;;  %v1618_v0 = vpop.f32.mrb[54].mxu1 }
 0x492   : > { %v1677_v11 = vpack.c.bf16 %v1618_v0, %v1614_v57  ;;  %v1620_v14 = vpop.f32.mrb[55].mxu1 }
 0x493   : > { %v1678_v22 = vpack.c.bf16 %v1620_v14, %v1616_v60  ;;  %1757 = vmatprep.subr.bf16.mxu0 %v1662_v61 }
 0x494   : > { %1758 = vmatpush1.bf16.msra.mxu0 %v1661_v58 }
 0x495   : > { %v1462_v13 = vpop.f32.mrb[56].mxu0  ;;  %1870 = vmatprep.subr.bf16.mxu1 %v1678_v22 }
 0x496   : > { %v1464_v20 = vpop.f32.mrb[57].mxu0  ;;  %1871 = vmatpush1.bf16.msra.mxu1 %v1677_v11 }
 0x497   : > { %v1466_v32 = vpop.f32.mrb[58].mxu0  ;;  %v1624_v34 = vpop.f32.mrb[56].mxu1 }
 0x498   : > { %v1663_v62 = vpack.c.bf16 %v1466_v32, %v1462_v13  ;;  %v1468_v46 = vpop.f32.mrb[59].mxu0  ;;  %v1626_v10 = vpop.f32.mrb[57].mxu1 }
 0x499   : > { %v1664_v50 = vpack.c.bf16 %v1468_v46, %v1464_v20  ;;  %v1628_v56 = vpop.f32.mrb[58].mxu1 }
 0x49a   : > { %v1679_v12 = vpack.c.bf16 %v1628_v56, %v1624_v34  ;;  %v1630_v36 = vpop.f32.mrb[59].mxu1  ;;  %v3139_v56 = vld [vmem:[%s4987_s5 + $0x10] sm:$0xff]  }
 0x49b   : > { %v1680_v16 = vpack.c.bf16 %v1630_v36, %v1626_v10  ;;  %1759 = vmatprep.subr.bf16.mxu0 %v1664_v50  ;;  %v3137_v10 = vld [vmem:[%s4987_s5] sm:$0xff]   ;;  %v3138_v50 = vld [vmem:[%s4987_s5 + $0x8] sm:$0xff]  }
 0x49c   : > { %1760 = vmatpush1.bf16.msra.mxu0 %v1663_v62  ;;  %v3141_v36 = vld [vmem:[%s4987_s5 + $0x20] sm:$0xff]  }
 0x49d   : > { %v1472_v38 = vpop.f32.mrb[60].mxu0  ;;  %1872 = vmatprep.subr.bf16.mxu1 %v1680_v16  ;;  %v3142_v16 = vld [vmem:[%s4987_s5 + $0x28] sm:$0xff]  }
 0x49e   : > { %v1474_v47 = vpop.f32.mrb[61].mxu0  ;;  %1873 = vmatpush1.bf16.msra.mxu1 %v1679_v12  ;;  %v3140_v12 = vld [vmem:[%s4987_s5 + $0x18] sm:$0xff]  }
 0x49f   : > { %v1476_v26 = vpop.f32.mrb[62].mxu0  ;;  %v1634_v28 = vpop.f32.mrb[60].mxu1 }
 0x4a0   : > { %v1665_v33 = vpack.c.bf16 %v1476_v26, %v1472_v38  ;;  %v1478_v35 = vpop.f32.mrb[63].mxu0  ;;  %v1636_v48 = vpop.f32.mrb[61].mxu1  ;;  %v3143_v38 = vld [vmem:[%s4987_s5 + $0x30] sm:$0xff]  }
 0x4a1   : > { %v1666_v49 = vpack.c.bf16 %v1478_v35, %v1474_v47  ;;  %v1638_v52 = vpop.f32.mrb[62].mxu1  ;;  %v3144_v47 = vld [vmem:[%s4987_s5 + $0x38] sm:$0xff]  }
 0x4a2   : > { %v1681_v57 = vpack.c.bf16 %v1638_v52, %v1634_v28  ;;  %v1640_v58 = vpop.f32.mrb[63].mxu1 }
 0x4a3   : > { %v1682_v59 = vpack.c.bf16 %v1640_v58, %v1636_v48  ;;  %1761 = vmatprep.subr.bf16.mxu0 %v1666_v49 }
 0x4a4   : > { %1762 = vmatpush1.bf16.msra.mxu0 %v1665_v33 }
 0x4a5   : > { %v1482_v60 = vpop.f32.mrb[64].mxu0  ;;  %1874 = vmatprep.subr.bf16.mxu1 %v1682_v59 }
 0x4a6   : > { %v1484_v61 = vpop.f32.mrb[65].mxu0  ;;  %1875 = vmatpush1.bf16.msra.mxu1 %v1681_v57 }
 0x4a7   : > { %v1486_v0 = vpop.f32.mrb[66].mxu0  ;;  %v1644_v11 = vpop.f32.mrb[64].mxu1 }
 0x4a8   : > { %v1667_v14 = vpack.c.bf16 %v1486_v0, %v1482_v60  ;;  %v1488_v22 = vpop.f32.mrb[67].mxu0  ;;  %v1646_v13 = vpop.f32.mrb[65].mxu1 }
 0x4a9   : > { %v1668_v20 = vpack.c.bf16 %v1488_v22, %v1484_v61  ;;  %v1648_v32 = vpop.f32.mrb[66].mxu1 }
 0x4aa   : > { %v1683_v34 = vpack.c.bf16 %v1648_v32, %v1644_v11  ;;  %v1650_v62 = vpop.f32.mrb[67].mxu1 }
 0x4ab   : > { %v1684_v46 = vpack.c.bf16 %v1650_v62, %v1646_v13  ;;  %1763 = vmatprep.subr.bf16.mxu0 %v1668_v20 }
 0x4ac   : > { %1764 = vmatpush1.bf16.msra.mxu0 %v1667_v14 }
 0x4ad   : > { %1876 = vmatprep.subr.bf16.mxu1 %v1684_v46 }
 0x4ae   : > { %1877 = vmatpush1.bf16.msra.mxu1 %v1683_v34 }
 0x4af   : > { %1782 = vmatmul.mubr.bf16.vlgmr.msra.gmra.mrb[68].mxu0 %v3137_v10 }
 0x4b0   : > { %1791 = vmatprep.mubr.bf16.mxu0 %v3406_v9 }
 0x4b1   : > { %1895 = vmatmul.mubr.bf16.vlgmr.msra.gmra.mrb[68].mxu1 %v3137_v10 }
 0x4b2   : > { %1904 = vmatprep.mubr.bf16.mxu1 %v3406_v9 }
 0x4b7   : > { %1792 = vmatmul.mubr.bf16.gmra.mrb[72].mxu0 %v3138_v50 }
 0x4b8   : > { %1801 = vmatprep.mubr.bf16.mxu0 %v3406_v9 }
 0x4b9   : > { %1905 = vmatmul.mubr.bf16.gmra.mrb[72].mxu1 %v3138_v50 }
 0x4ba   : > { %1914 = vmatprep.mubr.bf16.mxu1 %v3406_v9 }
 0x4bf   : > { %1802 = vmatmul.mubr.bf16.gmra.mrb[76].mxu0 %v3139_v56 }
 0x4c0   : > { %1811 = vmatprep.mubr.bf16.mxu0 %v3406_v9 }
 0x4c1   : > { %1915 = vmatmul.mubr.bf16.gmra.mrb[76].mxu1 %v3139_v56 }
 0x4c2   : > { %1924 = vmatprep.mubr.bf16.mxu1 %v3406_v9 }
 0x4c7   : > { %1812 = vmatmul.mubr.bf16.gmra.mrb[80].mxu0 %v3140_v12 }
 0x4c8   : > { %1821 = vmatprep.mubr.bf16.mxu0 %v3406_v9 }
 0x4c9   : > { %1925 = vmatmul.mubr.bf16.gmra.mrb[80].mxu1 %v3140_v12 }
 0x4ca   : > { %1934 = vmatprep.mubr.bf16.mxu1 %v3406_v9 }
 0x4cf   : > { %1822 = vmatmul.mubr.bf16.gmra.mrb[84].mxu0 %v3141_v36 }
 0x4d0   : > { %1831 = vmatprep.mubr.bf16.mxu0 %v3406_v9 }
 0x4d1   : > { %1935 = vmatmul.mubr.bf16.gmra.mrb[84].mxu1 %v3141_v36 }
 0x4d2   : > { %1944 = vmatprep.mubr.bf16.mxu1 %v3406_v9 }
 0x4d7   : > { %1832 = vmatmul.mubr.bf16.gmra.mrb[88].mxu0 %v3142_v16 }
 0x4d8   : > { %1841 = vmatprep.mubr.bf16.mxu0 %v3406_v9 }
 0x4d9   : > { %1945 = vmatmul.mubr.bf16.gmra.mrb[88].mxu1 %v3142_v16 }
 0x4da   : > { %1954 = vmatprep.mubr.bf16.mxu1 %v3406_v9 }
 0x4df   : > { %1842 = vmatmul.mubr.bf16.gmra.mrb[92].mxu0 %v3143_v38 }
 0x4e0   : > { %1851 = vmatprep.mubr.bf16.mxu0 %v3406_v9 }
 0x4e1   : > { %1955 = vmatmul.mubr.bf16.gmra.mrb[92].mxu1 %v3143_v38 }
 0x4e2   : > { %1964 = vmatprep.mubr.bf16.mxu1 %v3406_v9 }
 0x4e7   : > { %1852 = vmatmul.mubr.bf16.gmra.mrb[96].mxu0 %v3144_v47 }
 0x4e8   : > { %2680 = vmatprep.mubr.bf16.mxu0 %v3406_v9 }
 0x4e9   : > { %1965 = vmatmul.mubr.bf16.gmra.mrb[96].mxu1 %v3144_v47 }
 0x4ea   : > { %2721 = vmatprep.mubr.bf16.mxu1 %v3406_v9 }
 0x582   : > { %v1783_v26 = vpop.f32.mrb[68].mxu0 }
 0x583   : > { %v3973_v28 = vadd.f32 %v1783_v26, %v3761_v6  ;;  %v1785_v33 = vpop.f32.mrb[69].mxu0 }
 0x584   : > { %v3976_v35 = vadd.f32 %v1785_v33, %v3757_v3  ;;  %v1787_v48 = vpop.f32.mrb[70].mxu0  ;;  %v1896_v49 = vpop.f32.mrb[68].mxu1 }
 0x585   : > { %v2007_v52 = vmul.f32 %v3973_v28, %v3973_v28  ;;  %v3981_v57 = vadd.f32 %v1787_v48, %v3755_v1  ;;  %v3984_v58 = vadd.f32 %v1896_v49, %v3761_v6  ;;  %v1789_v9 = vpop.f32.mrb[71].mxu0  ;;  %v1898_v59 = vpop.f32.mrb[69].mxu1 }
 0x586   : > { %4988 = vst [vmem:[#allocation33_spill] sm:$0xff] %v3976_v35  ;;  %v2008_v60 = vmul.f32 %v3976_v35, %v3976_v35  ;;  %v3989_v61 = vadd.f32 %v1789_v9, %v3759_v5  ;;  %v3992_v0 = vadd.f32 %v1898_v59, %v3757_v3  ;;  %v1900_v11 = vpop.f32.mrb[70].mxu1 }
 0x587   : > { %v2039_v14 = vmul.f32 %v2007_v52, %v3973_v28  ;;  %v2009_v22 = vmul.f32 %v3981_v57, %v3981_v57  ;;  %v2343_v6 = vmul.f32 %v3984_v58, %v3984_v58  ;;  %v4000_v13 = vadd.f32 %v1900_v11, %v3755_v1  ;;  %v1902_v20 = vpop.f32.mrb[71].mxu1 }
 0x588   : > { %4989 = vst [vmem:[#allocation34_spill] sm:$0xff] %v3989_v61  ;;  %4990 = vst [vmem:[#allocation35_spill] sm:$0xff] %v3992_v0  ;;  %v2040_v32 = vmul.f32 %v2008_v60, %v3976_v35  ;;  %v2010_v34 = vmul.f32 %v3989_v61, %v3989_v61  ;;  %v2344_v3 = vmul.f32 %v3992_v0, %v3992_v0 }
 0x589   : > { %v4008_v62 = vadd.f32 %v1902_v20, %v3759_v5  ;;  %v2071_v46 = vmul.f32 0.044715, %v2039_v14  ;;  %v2041_v10 = vmul.f32 %v2009_v22, %v3981_v57  ;;  %v2375_v50 = vmul.f32 %v2343_v6, %v3984_v58 }
 0x58a   : > { %v2345_v1 = vmul.f32 %v4000_v13, %v4000_v13  ;;  %v2072_v56 = vmul.f32 0.044715, %v2040_v32  ;;  %v2042_v12 = vmul.f32 %v2010_v34, %v3989_v61  ;;  %v2376_v36 = vmul.f32 %v2344_v3, %v3992_v0  ;;  %v1793_v38 = vpop.f32.mrb[72].mxu0 }
 0x58b   : > { %4991 = vst [vmem:[#allocation36_spill] sm:$0xff] %v4008_v62  ;;  %v2346_v16 = vmul.f32 %v4008_v62, %v4008_v62  ;;  %v2103_v5 = vadd.f32 %v2071_v46, %v3973_v28  ;;  %v2073_v47 = vmul.f32 0.044715, %v2041_v10  ;;  %v2407_v26 = vmul.f32 0.044715, %v2375_v50  ;;  %v1795_v48 = vpop.f32.mrb[73].mxu0 }
 0x58c   : > { %v2377_v33 = vmul.f32 %v2345_v1, %v4000_v13  ;;  %v2104_v49 = vadd.f32 %v2072_v56, %v3976_v35  ;;  %v2074_v52 = vmul.f32 0.044715, %v2042_v12  ;;  %v2408_v9 = vmul.f32 0.044715, %v2376_v36  ;;  %v1797_v60 = vpop.f32.mrb[74].mxu0  ;;  %v1906_v11 = vpop.f32.mrb[72].mxu1 }
 0x58d   : > { %v2378_v59 = vmul.f32 %v2346_v16, %v4008_v62  ;;  %v2135_v14 = vmul.f32 0.7978846, %v2103_v5  ;;  %v2105_v22 = vadd.f32 %v2073_v47, %v3981_v57  ;;  %v2439_v6 = vadd.f32 %v2407_v26, %v3984_v58  ;;  %v1799_v32 = vpop.f32.mrb[75].mxu0  ;;  %v1908_v34 = vpop.f32.mrb[73].mxu1 }
 0x58e   : > { %v2409_v20 = vmul.f32 0.044715, %v2377_v33  ;;  %v2136_v3 = vmul.f32 0.7978846, %v2104_v49  ;;  %v2106_v46 = vadd.f32 %v2074_v52, %v3989_v61  ;;  %v2440_v10 = vadd.f32 %v2408_v9, %v3992_v0  ;;  %v1910_v1 = vpop.f32.mrb[74].mxu1 }
 0x58f   : > { %v2410_v50 = vmul.f32 0.044715, %v2378_v59  ;;  %3161 = vtanh.f32 %v2135_v14  ;;  %v2137_v56 = vmul.f32 0.7978846, %v2105_v22  ;;  %v2471_v12 = vmul.f32 0.7978846, %v2439_v6 }
 0x590   : > { %v2441_v36 = vadd.f32 %v2409_v20, %v4000_v13  ;;  %v1912_v16 = vpop.f32.mrb[75].mxu1  ;;  %3163 = vtanh.f32 %v2136_v3  ;;  %v2138_v5 = vmul.f32 0.7978846, %v2106_v46  ;;  %v2472_v47 = vmul.f32 0.7978846, %v2440_v10 }
 0x591   : > { %v2442_v26 = vadd.f32 %v2410_v50, %v4008_v62  ;;  %3165 = vtanh.f32 %v2137_v56  ;;  %v4029_v49 = vadd.f32 %v1793_v38, %v3773_v19  ;;  %v4032_v52 = vadd.f32 %v1795_v48, %v3769_v17 }
 0x592   : > { %v2473_v33 = vmul.f32 0.7978846, %v2441_v36  ;;  %3167 = vtanh.f32 %v2471_v12  ;;  %v4035_v59 = vadd.f32 %v1797_v60, %v3767_v15  ;;  %v4038_v14 = vadd.f32 %v1906_v11, %v3773_v19  ;;  %v4040_v22 = vpop.f32.mrb[76].mxu0 }
 0x593   : > { %4992 = vst [vmem:[#allocation37_spill] sm:$0xff] %v4032_v52  ;;  %v2474_v9 = vmul.f32 0.7978846, %v2442_v26  ;;  %3169 = vtanh.f32 %v2138_v5  ;;  %v2011_v6 = vmul.f32 %v4029_v49, %v4029_v49  ;;  %v2012_v38 = vmul.f32 %v4032_v52, %v4032_v52  ;;  %v4049_v20 = vpop.f32.mrb[77].mxu0 }
 0x594   : > { %v4047_v48 = vadd.f32 %v1799_v32, %v3771_v18  ;;  %3171 = vtanh.f32 %v2472_v47  ;;  %v2013_v60 = vmul.f32 %v4035_v59, %v4035_v59  ;;  %v2347_v19 = vmul.f32 %v4038_v14, %v4038_v14  ;;  %v4058_v3 = vpop.f32.mrb[78].mxu0  ;;  %v4060_v46 = vpop.f32.mrb[76].mxu1 }
 0x595   : > { %v4056_v11 = vadd.f32 %v1908_v34, %v3769_v17  ;;  %3173 = vtanh.f32 %v2473_v33  ;;  %v2043_v32 = vmul.f32 %v2011_v6, %v4029_v49  ;;  %v2044_v10 = vmul.f32 %v2012_v38, %v4032_v52  ;;  %v4066_v56 = vpop.f32.mrb[79].mxu0  ;;  %v4068_v12 = vpop.f32.mrb[77].mxu1 }
 0x596   : > { %4993 = vst [vmem:[#allocation38_spill] sm:$0xff] %v4047_v48  ;;  %v2014_v50 = vmul.f32 %v4047_v48, %v4047_v48  ;;  %3175 = vtanh.f32 %v2474_v9  ;;  %v2045_v17 = vmul.f32 %v2013_v60, %v4035_v59  ;;  %v2379_v34 = vmul.f32 %v2347_v19, %v4038_v14  ;;  %v4074_v5 = vpop.f32.mrb[78].mxu1 }
 0x597   : > { %4994 = vst [vmem:[#allocation39_spill] sm:$0xff] %v4056_v11  ;;  %v2348_v36 = vmul.f32 %v4056_v11, %v4056_v11  ;;  %v2075_v47 = vmul.f32 0.044715, %v2043_v32  ;;  %v2076_v26 = vmul.f32 0.044715, %v2044_v10  ;;  %v4078_v6 = vadd.f32 %v1910_v1, %v3767_v15  ;;  %v4080_v38 = vpop.f32.mrb[79].mxu1 }
 0x598   : > { %v2046_v33 = vmul.f32 %v2014_v50, %v4047_v48  ;;  %v2077_v8 = vmul.f32 0.044715, %v2045_v17  ;;  %v2411_v9 = vmul.f32 0.044715, %v2379_v34  ;;  %v4084_v19 = vadd.f32 %v1912_v16, %v3771_v18 }
 0x599   : > { %v2380_v60 = vmul.f32 %v2348_v36, %v4056_v11  ;;  %v3162_v44 = vpop.eup %3161  ;;  %v2107_v37 = vadd.f32 %v2075_v47, %v4029_v49  ;;  %v2108_v32 = vadd.f32 %v2076_v26, %v4032_v52  ;;  %v2349_v50 = vmul.f32 %v4078_v6, %v4078_v6 }
 0x59a   : > { %4995 = vst [vmem:[#allocation40_spill] sm:$0xff] %v4084_v19  ;;  %v2078_v10 = vmul.f32 0.044715, %v2046_v33  ;;  %v4090_v15 = vpop.eup %3163  ;;  %v2199_v1 = vadd.f32 1.0, %v3162_v44  ;;  %v2109_v17 = vadd.f32 %v2077_v8, %v4035_v59  ;;  %v2443_v34 = vadd.f32 %v2411_v9, %v4038_v14  ;;  %v4094_v40 = vpop.f32.mrb[80].mxu0 }
 0x59b   : > { %v2412_v36 = vmul.f32 0.044715, %v2380_v60  ;;  %v3166_v18 = vpop.eup %3165  ;;  %v2139_v16 = vmul.f32 0.7978846, %v2107_v37  ;;  %v2140_v45 = vmul.f32 0.7978846, %v2108_v32  ;;  %v2381_v26 = vmul.f32 %v2349_v50, %v4078_v6 }
 0x59c   : > { %v2110_v47 = vadd.f32 %v2078_v10, %v4047_v48  ;;  %v4098_v33 = vpop.f32.mrb[81].mxu0  ;;  %v3168_v24 = vpop.eup %3167  ;;  %v2231_v21 = vmul.f32 0.5, %v2199_v1  ;;  %v2201_v23 = vadd.f32 1.0, %v3166_v18  ;;  %v2141_v44 = vmul.f32 0.7978846, %v2109_v17 }
 0x59d   : > { %v2475_v25 = vmul.f32 0.7978846, %v2443_v34  ;;  %v4100_v8 = vpop.eup %3169  ;;  %v2535_v9 = vadd.f32 1.0, %v3168_v24  ;;  %3177 = vtanh.f32 %v2139_v16  ;;  %v2444_v52 = vadd.f32 %v2412_v36, %v4056_v11  ;;  %v4103_v37 = vpop.f32.mrb[82].mxu0 }
 0x59e   : > { %v2142_v60 = vmul.f32 0.7978846, %v2110_v47  ;;  %v4105_v32 = vpop.f32.mrb[80].mxu1  ;;  %v4107_v10 = vpop.eup %3171  ;;  %v2233_v50 = vmul.f32 0.5, %v2201_v23  ;;  %3179 = vtanh.f32 %v2140_v45  ;;  %v2413_v48 = vmul.f32 0.044715, %v2381_v26 }
 0x59f   : > { %4996 = vst [vmem:[#allocation41_spill] sm:$0xff] %v4107_v10  ;;  %v4109_v1 = vpop.f32.mrb[83].mxu0  ;;  %v4111_v17 = vpop.f32.mrb[81].mxu1  ;;  %v4114_v24 = vmul.f32 %v2231_v21, %v3973_v28  ;;  %3181 = vtanh.f32 %v2141_v44  ;;  %v2476_v18 = vmul.f32 0.7978846, %v2444_v52  ;;  %v2350_v36 = vmul.f32 %v4084_v19, %v4084_v19 }
 0x5a0   : > { %v3174_v34 = vpop.eup %3173  ;;  %v4118_v16 = vpop.f32.mrb[82].mxu1  ;;  %v2567_v23 = vmul.f32 0.5, %v2535_v9  ;;  %3183 = vtanh.f32 %v2475_v25  ;;  %v2445_v26 = vadd.f32 %v2413_v48, %v4078_v6  ;;  %v4126_v4 = vmul.f32 %v2233_v50, %v3981_v57 }
 0x5a1   : > { %v4120_v47 = vpop.eup %3175  ;;  %v2537_v45 = vadd.f32 1.0, %v3174_v34  ;;  %v4123_v11 = vpop.f32.mrb[83].mxu1  ;;  %3185 = vtanh.f32 %v2142_v60  ;;  %v2382_v21 = vmul.f32 %v2350_v36, %v4084_v19  ;;  %v4131_v28 = vadd.f32 %v4040_v22, %v3785_v31 }
 0x5a2   : > { %4997 = vst [vmem:[#allocation42_spill] sm:$0xff] %v4120_v47  ;;  %3187 = vtanh.f32 %v2476_v18  ;;  %v2477_v44 = vmul.f32 0.7978846, %v2445_v26  ;;  %v4135_v25 = vadd.f32 %v4049_v20, %v3781_v29  ;;  %v4137_v48 = vpop.f32.mrb[84].mxu0  ;;  %v4143_v60 = vadd.f32 %v4058_v3, %v3779_v27 }
 0x5a3   : > { %v2569_v52 = vmul.f32 0.5, %v2537_v45  ;;  %v2414_v9 = vmul.f32 0.044715, %v2382_v21  ;;  %v2015_v57 = vmul.f32 %v4131_v28, %v4131_v28  ;;  %v4147_v22 = vadd.f32 %v4060_v46, %v3785_v31  ;;  %v4149_v50 = vpop.f32.mrb[85].mxu0 }
 0x5a4   : > { %4998 = vst [vmem:[#allocation43_spill] sm:$0xff] %v4135_v25  ;;  %v4152_v34 = vmul.f32 %v2567_v23, %v3984_v58  ;;  %3189 = vtanh.f32 %v2477_v44  ;;  %v2016_v20 = vmul.f32 %v4135_v25, %v4135_v25  ;;  %v4158_v18 = vadd.f32 %v4066_v56, %v3783_v30  ;;  %v4160_v36 = vpop.f32.mrb[86].mxu0  ;;  %v4162_v3 = vpop.f32.mrb[84].mxu1 }
 0x5a5   : > { %v2446_v31 = vadd.f32 %v2414_v9, %v4084_v19  ;;  %v2047_v46 = vmul.f32 %v2015_v57, %v4131_v28  ;;  %v2017_v58 = vmul.f32 %v4143_v60, %v4143_v60  ;;  %v2351_v23 = vmul.f32 %v4147_v22, %v4147_v22  ;;  %v4170_v45 = vpop.f32.mrb[87].mxu0  ;;  %v4172_v26 = vpop.f32.mrb[85].mxu1 }
 0x5a6   : > { %4999 = vst [vmem:[#allocation44_spill] sm:$0xff] %v4152_v34  ;;  %5000 = vst [vmem:[#allocation45_spill] sm:$0xff] %v4158_v18  ;;  %v4175_v56 = vmul.f32 %v2569_v52, %v4000_v13  ;;  %v2048_v21 = vmul.f32 %v2016_v20, %v4135_v25  ;;  %v2018_v44 = vmul.f32 %v4158_v18, %v4158_v18  ;;  %v4184_v57 = vpop.f32.mrb[86].mxu1 }
 0x5a7   : > { %v4182_v9 = vadd.f32 %v4068_v12, %v3781_v29  ;;  %v3178_v19 = vpop.eup %3177  ;;  %v2079_v63 = vmul.f32 0.044715, %v2047_v46  ;;  %v2049_v2 = vmul.f32 %v2017_v58, %v4143_v60  ;;  %v2383_v7 = vmul.f32 %v2351_v23, %v4147_v22  ;;  %v4192_v52 = vpop.f32.mrb[87].mxu1 }
 0x5a8   : > { %5001 = vst [vmem:[#allocation46_spill] sm:$0xff] %v4175_v56  ;;  %v4190_v13 = vadd.f32 %v4074_v5, %v3779_v27  ;;  %v4194_v20 = vpop.eup %3179  ;;  %v2203_v0 = vadd.f32 1.0, %v3178_v19  ;;  %v2478_v62 = vmul.f32 0.7978846, %v2446_v31  ;;  %v2080_v29 = vmul.f32 0.044715, %v2048_v21 }
 0x5a9   : > { %5002 = vst [vmem:[#allocation47_spill] sm:$0xff] %v4182_v9  ;;  %5003 = vst [vmem:[#allocation48_spill] sm:$0xff] %v4194_v20  ;;  %v2050_v12 = vmul.f32 %v2018_v44, %v4158_v18  ;;  %v3182_v56 = vpop.eup %3181  ;;  %v2111_v46 = vadd.f32 %v2079_v63, %v4131_v28  ;;  %v2081_v34 = vmul.f32 0.044715, %v2049_v2  ;;  %v2415_v58 = vmul.f32 0.044715, %v2383_v7 }
 0x5aa   : > { %v2352_v23 = vmul.f32 %v4182_v9, %v4182_v9  ;;  %v3184_v47 = vpop.eup %3183  ;;  %v2235_v27 = vmul.f32 0.5, %v2203_v0  ;;  %v2205_v5 = vadd.f32 1.0, %v3182_v56  ;;  %v2112_v61 = vadd.f32 %v2080_v29, %v4135_v25  ;;  %v4201_v20 = vpop.f32.mrb[88].mxu0 }
 0x5ab   : > { %v2082_v10 = vmul.f32 0.044715, %v2050_v12  ;;  %v4203_v19 = vpop.eup %3185  ;;  %v2539_v31 = vadd.f32 1.0, %v3184_v47  ;;  %v2143_v21 = vmul.f32 0.7978846, %v2111_v46  ;;  %v2113_v44 = vadd.f32 %v2081_v34, %v4143_v60  ;;  %v4207_v2 = vpop.f32.mrb[89].mxu0 }
 0x5ac   : > { %5004 = vst [vmem:[#allocation49_spill] sm:$0xff] %v4203_v19  ;;  %v2447_v63 = vadd.f32 %v2415_v58, %v4147_v22  ;;  %v4209_v7 = vpop.eup %3187  ;;  %v2237_v35 = vmul.f32 0.5, %v2205_v5  ;;  %3191 = vtanh.f32 %v2478_v62  ;;  %v2144_v0 = vmul.f32 0.7978846, %v2112_v61  ;;  %v4212_v29 = vpop.f32.mrb[90].mxu0 }
 0x5ad   : > { %5005 = vst [vmem:[#allocation50_spill] sm:$0xff] %v4209_v7  ;;  %v2114_v56 = vadd.f32 %v2082_v10, %v4158_v18  ;;  %v4214_v12 = vpop.f32.mrb[88].mxu1  ;;  %v2571_v25 = vmul.f32 0.5, %v2539_v31  ;;  %3193 = vtanh.f32 %v2143_v21  ;;  %v2145_v47 = vmul.f32 0.7978846, %v2113_v44  ;;  %v4216_v34 = vpop.f32.mrb[91].mxu0 }
 0x5ae   : > { %v2479_v46 = vmul.f32 0.7978846, %v2447_v63  ;;  %v3190_v58 = vpop.eup %3189  ;;  %v4219_v19 = vmul.f32 %v2235_v27, %v4029_v49  ;;  %v4222_v5 = vmul.f32 %v2237_v35, %v4035_v59  ;;  %3195 = vtanh.f32 %v2144_v0  ;;  %v4225_v62 = vpop.f32.mrb[89].mxu1 }
 0x5af   : > { %v2384_v61 = vmul.f32 %v2352_v23, %v4182_v9  ;;  %v2541_v10 = vadd.f32 1.0, %v3190_v58  ;;  %3197 = vtanh.f32 %v2145_v47  ;;  %v2146_v31 = vmul.f32 0.7978846, %v2114_v56  ;;  %v4229_v44 = vpop.f32.mrb[90].mxu1 }
 0x5b0   : > { %5006 = vst [vmem:[#allocation51_spill] sm:$0xff] %v4219_v19  ;;  %5007 = vst [vmem:[#allocation52_spill] sm:$0xff] %v4222_v5  ;;  %v2353_v21 = vmul.f32 %v4190_v13, %v4190_v13  ;;  %3199 = vtanh.f32 %v2479_v46  ;;  %v4233_v49 = vadd.f32 %v4080_v38, %v3783_v30  ;;  %v4237_v35 = vadd.f32 %v4094_v40, %v3797_v43  ;;  %v4239_v59 = vpop.f32.mrb[91].mxu1 }
 0x5b1   : > { %v2416_v63 = vmul.f32 0.044715, %v2384_v61  ;;  %5008 = vst [vmem:[#allocation53_spill] sm:$0xff] %v4239_v59  ;;  %v4242_v23 = vmul.f32 %v2571_v25, %v4038_v14  ;;  %v2573_v27 = vmul.f32 0.5, %v2541_v10  ;;  %v4247_v56 = vadd.f32 %v4098_v33, %v3793_v41 }
 0x5b2   : > { %v2385_v0 = vmul.f32 %v2353_v21, %v4190_v13  ;;  %v2354_v30 = vmul.f32 %v4233_v49, %v4233_v49  ;;  %v2019_v40 = vmul.f32 %v4237_v35, %v4237_v35  ;;  %v4256_v38 = vadd.f32 %v4103_v37, %v3791_v39  ;;  %v4258_v14 = vpop.f32.mrb[92].mxu0 }
 0x5b3   : > { %5009 = vst [vmem:[#allocation54_spill] sm:$0xff] %v4242_v23  ;;  %5010 = vst [vmem:[#allocation55_spill] sm:$0xff] %v4247_v56  ;;  %v2448_v47 = vadd.f32 %v2416_v63, %v4182_v9  ;;  %3201 = vtanh.f32 %v2146_v31  ;;  %v2020_v33 = vmul.f32 %v4247_v56, %v4247_v56  ;;  %v4264_v46 = vadd.f32 %v4105_v32, %v3797_v43  ;;  %v4266_v58 = vpop.f32.mrb[93].mxu0 }
 0x5b4   : > { %5011 = vst [vmem:[#allocation56_spill] sm:$0xff] %v4258_v14  ;;  %v2417_v25 = vmul.f32 0.044715, %v2385_v0  ;;  %5012 = vst [vmem:[#allocation57_spill] sm:$0xff] %v4266_v58  ;;  %v2386_v10 = vmul.f32 %v2354_v30, %v4233_v49  ;;  %v2051_v21 = vmul.f32 %v2019_v40, %v4237_v35  ;;  %v2021_v37 = vmul.f32 %v4256_v38, %v4256_v38  ;;  %v4272_v63 = vpop.f32.mrb[94].mxu0  ;;  %v4274_v31 = vpop.f32.mrb[92].mxu1 }
 0x5b5   : > { %v2480_v61 = vmul.f32 0.7978846, %v2448_v47  ;;  %5013 = vst [vmem:[#allocation58_spill] sm:$0xff] %v4272_v63  ;;  %5014 = vst [vmem:[#allocation59_spill] sm:$0xff] %v4274_v31  ;;  %v2052_v9 = vmul.f32 %v2020_v33, %v4247_v56  ;;  %v2355_v43 = vmul.f32 %v4264_v46, %v4264_v46  ;;  %v4282_v32 = vadd.f32 %v4109_v1, %v3795_v42  ;;  %v4284_v47 = vpop.f32.mrb[95].mxu0  ;;  %v4286_v30 = vpop.f32.mrb[93].mxu1 }
 0x5b6   : > { %v2449_v0 = vadd.f32 %v2417_v25, %v4190_v13  ;;  %5016 = vst [vmem:[#allocation61_spill] sm:$0xff] %v4284_v47  ;;  %5017 = vst [vmem:[#allocation62_spill] sm:$0xff] %v4286_v30  ;;  %v4288_v40 = vpop.eup %3191  ;;  %v2418_v18 = vmul.f32 0.044715, %v2386_v10  ;;  %v2083_v31 = vmul.f32 0.044715, %v2051_v21  ;;  %v2053_v25 = vmul.f32 %v2021_v37, %v4256_v38 }
 0x5b7   : > { %5015 = vst [vmem:[#allocation60_spill] sm:$0xff] %v4282_v32  ;;  %5018 = vst [vmem:[#allocation63_spill] sm:$0xff] %v4288_v40  ;;  %3203 = vtanh.f32 %v2480_v61  ;;  %v4291_v63 = vpop.f32.mrb[94].mxu1  ;;  %v3194_v33 = vpop.eup %3193  ;;  %v2084_v14 = vmul.f32 0.044715, %v2052_v9  ;;  %v2387_v23 = vmul.f32 %v2355_v43, %v4264_v46  ;;  %v2022_v1 = vmul.f32 %v4282_v32, %v4282_v32 }
 0x5b8   : > { %5019 = vst [vmem:[#allocation64_spill] sm:$0xff] %v4291_v63  ;;  %v2481_v58 = vmul.f32 0.7978846, %v2449_v0  ;;  %v4296_v47 = vpop.f32.mrb[95].mxu1  ;;  %v4298_v30 = vpop.eup %3195  ;;  %v2207_v40 = vadd.f32 1.0, %v3194_v33  ;;  %v2450_v61 = vadd.f32 %v2418_v18, %v4233_v49  ;;  %v2115_v10 = vadd.f32 %v2083_v31, %v4237_v35 }
 0x5b9   : > { %5020 = vst [vmem:[#allocation65_spill] sm:$0xff] %v4296_v47  ;;  %5021 = vst [vmem:[#allocation66_spill] sm:$0xff] %v4298_v30  ;;  %v2085_v21 = vmul.f32 0.044715, %v2053_v25  ;;  %v3198_v37 = vpop.eup %3197  ;;  %v2116_v0 = vadd.f32 %v2084_v14, %v4247_v56  ;;  %v2419_v9 = vmul.f32 0.044715, %v2387_v23  ;;  %v2054_v43 = vmul.f32 %v2022_v1, %v4282_v32 }
 0x5ba   : > { %3205 = vtanh.f32 %v2481_v58  ;;  %v3200_v63 = vpop.eup %3199  ;;  %v2239_v7 = vmul.f32 0.5, %v2207_v40  ;;  %v2209_v59 = vadd.f32 1.0, %v3198_v37  ;;  %v2482_v5 = vmul.f32 0.7978846, %v2450_v61  ;;  %v4306_v31 = vpop.f32.mrb[96].mxu0 }
 0x5bb   : > { %v2147_v47 = vmul.f32 0.7978846, %v2115_v10  ;;  %v2543_v19 = vadd.f32 1.0, %v3200_v63  ;;  %v2148_v30 = vmul.f32 0.7978846, %v2116_v0  ;;  %v2117_v33 = vadd.f32 %v2085_v21, %v4256_v38  ;;  %v4311_v25 = vpop.f32.mrb[97].mxu0 }
 0x5bc   : > { %v2451_v18 = vadd.f32 %v2419_v9, %v4264_v46  ;;  %v4309_v58 = vmul.f32 %v2573_v27, %v4078_v6  ;;  %v2241_v14 = vmul.f32 0.5, %v2209_v59  ;;  %3207 = vtanh.f32 %v2482_v5  ;;  %v4313_v40 = vpop.f32.mrb[96].mxu1  ;;  %v4317_v21 = vpop.f32.mrb[98].mxu0 }
 0x5bd   : > { %v2086_v23 = vmul.f32 0.044715, %v2054_v43  ;;  %v4315_v1 = vpop.eup %3201  ;;  %v2575_v63 = vmul.f32 0.5, %v2543_v19  ;;  %3209 = vtanh.f32 %v2147_v47  ;;  %v2149_v61 = vmul.f32 0.7978846, %v2117_v33  ;;  %v4327_v59 = vpop.f32.mrb[99].mxu0 }
 0x5be   : > { %v2483_v10 = vmul.f32 0.7978846, %v2451_v18  ;;  %v4320_v37 = vmul.f32 %v2239_v7, %v4131_v28  ;;  %3211 = vtanh.f32 %v2148_v30  ;;  %v4325_v5 = vadd.f32 %v4111_v17, %v3793_v41  ;;  %5023 = vst [vmem:[#allocation68_spill] sm:$0xff] %v4327_v59  ;;  %v4329_v27 = vpop.f32.mrb[97].mxu1 }
 0x5bf   : > { %v2118_v6 = vadd.f32 %v2086_v23, %v4282_v32  ;;  %5024 = vst [vmem:[#allocation69_spill] sm:$0xff] %v4329_v27  ;;  %v4332_v19 = vmul.f32 %v2241_v14, %v4143_v60  ;;  %3213 = vtanh.f32 %v2149_v61  ;;  %v4336_v47 = vadd.f32 %v4118_v16, %v3791_v39  ;;  %v4342_v7 = vpop.f32.mrb[98].mxu1 }
 0x5c0   : > { %5022 = vst [vmem:[#allocation67_spill] sm:$0xff] %v4325_v5  ;;  %v4340_v28 = vadd.f32 %v4123_v11, %v3795_v42  ;;  %5025 = vst [vmem:[#allocation70_spill] sm:$0xff] %v4342_v7  ;;  %v4347_v17 = vmul.f32 %v2575_v63, %v4147_v22  ;;  %3215 = vtanh.f32 %v2483_v10  ;;  %v2356_v60 = vmul.f32 %v4325_v5, %v4325_v5  ;;  %v4355_v39 = vpop.f32.mrb[99].mxu1 }
 0x5c1   : > { %v4344_v41 = vpop.eup %3203  ;;  %v4353_v30 = vadd.f32 %v4137_v48, %v3809_v55  ;;  %5026 = vst [vmem:[#allocation71_spill] sm:$0xff] %v4355_v39  ;;  %v2357_v42 = vmul.f32 %v4336_v47, %v4336_v47  ;;  %v4363_v16 = vadd.f32 %v4149_v50, %v3805_v53  ;;  %v4367_v22 = vadd.f32 %v4160_v36, %v3803_v51 }
 0x5c2   : > { %v2358_v11 = vmul.f32 %v4340_v28, %v4340_v28  ;;  %v2150_v0 = vmul.f32 0.7978846, %v2118_v6  ;;  %v2388_v48 = vmul.f32 %v2356_v60, %v4325_v5  ;;  %v4374_v43 = vadd.f32 %v4162_v3, %v3809_v55 }
 0x5c3   : > { %v2023_v9 = vmul.f32 %v4353_v30, %v4353_v30  ;;  %v2389_v18 = vmul.f32 %v2357_v42, %v4336_v47  ;;  %v2024_v14 = vmul.f32 %v4363_v16, %v4363_v16  ;;  %v2025_v36 = vmul.f32 %v4367_v22, %v4367_v22 }
 0x5c4   : > { %v3206_v33 = vpop.eup %3205  ;;  %v2390_v50 = vmul.f32 %v2358_v11, %v4340_v28  ;;  %v2420_v63 = vmul.f32 0.044715, %v2388_v48  ;;  %v2359_v10 = vmul.f32 %v4374_v43, %v4374_v43  ;;  %3217 = vtanh.f32 %v2150_v0 }
 0x5c5   : > { %v2545_v23 = vadd.f32 1.0, %v3206_v33  ;;  %v2055_v61 = vmul.f32 %v2023_v9, %v4353_v30  ;;  %v2421_v55 = vmul.f32 0.044715, %v2389_v18  ;;  %v2056_v6 = vmul.f32 %v2024_v14, %v4363_v16 }
 0x5c6   : > { %v2422_v3 = vmul.f32 0.044715, %v2390_v50  ;;  %v2057_v60 = vmul.f32 %v2025_v36, %v4367_v22  ;;  %v4387_v42 = vpop.eup %3207  ;;  %v2452_v39 = vadd.f32 %v2420_v63, %v4325_v5  ;;  %v2391_v27 = vmul.f32 %v2359_v10, %v4374_v43 }
 0x5c7   : > { %v2577_v11 = vmul.f32 0.5, %v2545_v23  ;;  %v2087_v32 = vmul.f32 0.044715, %v2055_v61  ;;  %v3210_v33 = vpop.eup %3209  ;;  %v2453_v48 = vadd.f32 %v2421_v55, %v4336_v47  ;;  %v2088_v7 = vmul.f32 0.044715, %v2056_v6 }
 0x5c8   : > { %v2454_v9 = vadd.f32 %v2422_v3, %v4340_v28  ;;  %v2089_v56 = vmul.f32 0.044715, %v2057_v60  ;;  %v4392_v18 = vpop.eup %3211  ;;  %v2211_v50 = vadd.f32 1.0, %v3210_v33  ;;  %v2484_v14 = vmul.f32 0.7978846, %v2452_v39 }
 0x5c9   : > { %v2119_v36 = vadd.f32 %v2087_v32, %v4353_v30  ;;  %v3214_v23 = vpop.eup %3213  ;;  %v2485_v0 = vmul.f32 0.7978846, %v2453_v48  ;;  %v2120_v63 = vadd.f32 %v2088_v7, %v4363_v16  ;;  %v4399_v32 = vmul.f32 %v2577_v11, %v4190_v13 }
 0x5ca   : > { %v2486_v59 = vmul.f32 0.7978846, %v2454_v9  ;;  %v2121_v61 = vadd.f32 %v2089_v56, %v4367_v22  ;;  %v3216_v55 = vpop.eup %3215  ;;  %v2243_v5 = vmul.f32 0.5, %v2211_v50  ;;  %v2213_v3 = vadd.f32 1.0, %v3214_v23 }
 0x5cb   : > { %3219 = vtanh.f32 %v2484_v14  ;;  %v2151_v6 = vmul.f32 0.7978846, %v2119_v36  ;;  %v2547_v60 = vadd.f32 1.0, %v3216_v55  ;;  %v2152_v33 = vmul.f32 0.7978846, %v2120_v63  ;;  %v5029_v63 = vld [vmem:[#allocation33_spill] sm:$0xff] }
 0x5cc   : > { %3221 = vtanh.f32 %v2485_v0  ;;  %v2153_v39 = vmul.f32 0.7978846, %v2121_v61  ;;  %v2245_v10 = vmul.f32 0.5, %v2213_v3  ;;  %v2423_v48 = vmul.f32 0.044715, %v2391_v27  ;;  %v5030_v3 = vld [vmem:[#allocation41_spill] sm:$0xff] }
 0x5cd   : > { %3223 = vtanh.f32 %v2486_v59  ;;  %v4402_v9 = vmul.f32 %v2243_v5, %v4237_v35  ;;  %v4406_v56 = vadd.f32 %v4170_v45, %v3807_v54  ;;  %v4410_v7 = vadd.f32 %v4172_v26, %v3805_v53 }
 0x5ce   : > { %3225 = vtanh.f32 %v2151_v6  ;;  %v2579_v50 = vmul.f32 0.5, %v2547_v60  ;;  %v2455_v13 = vadd.f32 %v2423_v48, %v4374_v43  ;;  %v2200_v11 = vadd.f32 1.0, %v4090_v15  ;;  %v4421_v5 = vpop.eup %3217 }
 0x5cf   : > { %5027 = vst [vmem:[#allocation72_spill] sm:$0xff] %v4410_v7  ;;  %3227 = vtanh.f32 %v2152_v33  ;;  %v4415_v59 = vmul.f32 %v2245_v10, %v4256_v38  ;;  %v2026_v35 = vmul.f32 %v4406_v56, %v4406_v56  ;;  %v2360_v45 = vmul.f32 %v4410_v7, %v4410_v7  ;;  %v5034_v10 = vld [vmem:[#allocation46_spill] sm:$0xff] }
 0x5d0   : > { %3229 = vtanh.f32 %v2153_v39  ;;  %v2487_v53 = vmul.f32 0.7978846, %v2455_v13  ;;  %v2202_v26 = vadd.f32 1.0, %v4100_v8  ;;  %v2232_v27 = vmul.f32 0.5, %v2200_v11  ;;  %v5033_v39 = vld [vmem:[#allocation44_spill] sm:$0xff] }
 0x5d1   : > { %v4426_v14 = vadd.f32 %v4184_v57, %v3803_v51  ;;  %v2058_v15 = vmul.f32 %v2026_v35, %v4406_v56  ;;  %v2392_v38 = vmul.f32 %v2360_v45, %v4410_v7  ;;  %v2295_v36 = vpack.c.bf16 %v4126_v4, %v4114_v24  ;;  %v5031_v4 = vld [vmem:[#allocation34_spill] sm:$0xff] }
 0x5d2   : > { %v4434_v23 = vadd.f32 %v4192_v52, %v3807_v54  ;;  %3231 = vtanh.f32 %v2487_v53  ;;  %v2234_v0 = vmul.f32 0.5, %v2202_v26  ;;  %v2264_v8 = vmul.f32 %v2232_v27, %v5029_v63  ;;  %v5032_v52 = vld [vmem:[#allocation42_spill] sm:$0xff] }
 0x5d3   : > { %v2361_v61 = vmul.f32 %v4426_v14, %v4426_v14  ;;  %v2090_v51 = vmul.f32 0.044715, %v2058_v15  ;;  %v2424_v57 = vmul.f32 0.044715, %v2392_v38  ;;  %v2536_v6 = vadd.f32 1.0, %v5030_v3 }
 0x5d4   : > { %5028 = vst [vmem:[#allocation73_spill] sm:$0xff] %v4434_v23  ;;  %v2362_v55 = vmul.f32 %v4434_v23, %v4434_v23  ;;  %v2266_v24 = vmul.f32 %v2234_v0, %v5031_v4  ;;  %v2538_v33 = vadd.f32 1.0, %v5032_v52  ;;  %v2631_v48 = vpack.c.bf16 %v5034_v10, %v5033_v39 }
 0x5d5   : > { %v4442_v60 = vpop.eup %3219  ;;  %v2393_v54 = vmul.f32 %v2361_v61, %v4426_v14  ;;  %v2122_v11 = vadd.f32 %v2090_v51, %v4406_v56  ;;  %v2456_v35 = vadd.f32 %v2424_v57, %v4410_v7  ;;  %v2568_v53 = vmul.f32 0.5, %v2536_v6  ;;  %v5035_v6 = vld [vmem:[#allocation36_spill] sm:$0xff] }
 0x5d6   : > { %v3222_v13 = vpop.eup %3221  ;;  %v2394_v45 = vmul.f32 %v2362_v55, %v4434_v23  ;;  %v2296_v15 = vpack.c.bf16 %v2266_v24, %v2264_v8  ;;  %v2570_v0 = vmul.f32 0.5, %v2538_v33  ;;  %v4455_v61 = vmul.f32 %v2579_v50, %v4264_v46  ;;  %v5036_v24 = vld [vmem:[#allocation35_spill] sm:$0xff]  ;;  %v5037_v46 = vld [vmem:[#allocation24_spill] sm:$0xff]  ;;  %v5038_v33 = vld [vmem:[#allocation22_spill] sm:$0xff] }
 0x5d7   : > { %v4452_v26 = vpop.eup %3223  ;;  %v2549_v27 = vadd.f32 1.0, %v3222_v13  ;;  %v2425_v38 = vmul.f32 0.044715, %v2393_v54  ;;  %v2154_v3 = vmul.f32 0.7978846, %v2122_v11  ;;  %v2600_v54 = vmul.f32 %v2568_v53, %v5036_v24 }
 0x5d8   : > { %v3226_v63 = vpop.eup %3225  ;;  %v2488_v4 = vmul.f32 0.7978846, %v2456_v35  ;;  %v2426_v52 = vmul.f32 0.044715, %v2394_v45  ;;  %2648 = vmatprep.subr.bf16.mxu0 %v2296_v15  ;;  %v2602_v10 = vmul.f32 %v2570_v0, %v5035_v6  ;;  %v4465_v50 = vadd.f32 %v4201_v20, %v5037_v46 }
 0x5d9   : > { %v4457_v39 = vpop.eup %3227  ;;  %v2581_v51 = vmul.f32 0.5, %v2549_v27  ;;  %v2215_v57 = vadd.f32 1.0, %v3226_v63  ;;  %v2457_v55 = vadd.f32 %v2425_v38, %v4426_v14  ;;  %2649 = vmatpush1.bf16.msra.mxu0 %v2295_v36  ;;  %v4469_v11 = vadd.f32 %v4207_v2, %v5038_v33  ;;  %v5040_v2 = vld [vmem:[#allocation21_spill] sm:$0xff] }
 0x5da   : > { %v3230_v13 = vpop.eup %3229  ;;  %v2458_v8 = vadd.f32 %v2426_v52, %v4434_v23  ;;  %3233 = vtanh.f32 %v2154_v3  ;;  %v2632_v15 = vpack.c.bf16 %v2602_v10, %v2600_v54  ;;  %v2027_v53 = vmul.f32 %v4465_v50, %v4465_v50 }
 0x5db   : > { %5039 = vst [vmem:[#allocation33_spill] sm:$0xff] %v4469_v11  ;;  %v4472_v35 = vmul.f32 %v2581_v51, %v4336_v47  ;;  %v2247_v45 = vmul.f32 0.5, %v2215_v57  ;;  %v2217_v27 = vadd.f32 1.0, %v3230_v13  ;;  %3235 = vtanh.f32 %v2488_v4 }
 0x5dc   : > { %v2489_v36 = vmul.f32 0.7978846, %v2457_v55  ;;  %v3232_v38 = vpop.eup %3231  ;;  %v2490_v20 = vmul.f32 0.7978846, %v2458_v8  ;;  %v2028_v63 = vmul.f32 %v4469_v11, %v4469_v11  ;;  %v4480_v52 = vadd.f32 %v4212_v29, %v5040_v2  ;;  %2689 = vmatprep.subr.bf16.mxu1 %v2632_v15  ;;  %v5041_v8 = vld [vmem:[#allocation23_spill] sm:$0xff] }
 0x5dd   : > { %v2249_v0 = vmul.f32 0.5, %v2217_v27  ;;  %v2551_v47 = vadd.f32 1.0, %v3232_v38  ;;  %v2059_v3 = vmul.f32 %v2027_v53, %v4465_v50  ;;  %v4485_v4 = vadd.f32 %v4214_v12, %v5037_v46  ;;  %2690 = vmatpush1.bf16.msra.mxu1 %v2631_v48  ;;  %v5044_v48 = vld [vmem:[#allocation48_spill] sm:$0xff]  ;;  %v5045_v53 = vld [vmem:[#allocation49_spill] sm:$0xff] }
 0x5de   : > { %3237 = vtanh.f32 %v2489_v36  ;;  %v4488_v51 = vmul.f32 %v2247_v45, %v4353_v30  ;;  %v2060_v55 = vmul.f32 %v2028_v63, %v4469_v11  ;;  %v2029_v29 = vmul.f32 %v4480_v52, %v4480_v52 }
 0x5df   : > { %v4491_v57 = vmul.f32 %v2249_v0, %v4367_v22  ;;  %v2583_v6 = vmul.f32 0.5, %v2551_v47  ;;  %v2091_v10 = vmul.f32 0.044715, %v2059_v3  ;;  %v2363_v13 = vmul.f32 %v4485_v4, %v4485_v4 }
 0x5e0   : > { %v4500_v12 = vadd.f32 %v4216_v34, %v5041_v8  ;;  %v2092_v30 = vmul.f32 0.044715, %v2060_v55  ;;  %v2061_v24 = vmul.f32 %v2029_v29, %v4480_v52  ;;  %v4505_v22 = vadd.f32 %v4225_v62, %v5038_v33 }
 0x5e1   : > { %v2204_v54 = vadd.f32 1.0, %v5044_v48  ;;  %3239 = vtanh.f32 %v2490_v20  ;;  %v2123_v46 = vadd.f32 %v2091_v10, %v4465_v50  ;;  %v2395_v45 = vmul.f32 %v2363_v13, %v4485_v4 }
 0x5e2   : > { %5042 = vst [vmem:[#allocation41_spill] sm:$0xff] %v4500_v12  ;;  %5043 = vst [vmem:[#allocation34_spill] sm:$0xff] %v4505_v22  ;;  %v2030_v27 = vmul.f32 %v4500_v12, %v4500_v12  ;;  %v2124_v34 = vadd.f32 %v2092_v30, %v4469_v11  ;;  %v2093_v36 = vmul.f32 0.044715, %v2061_v24  ;;  %v2364_v15 = vmul.f32 %v4505_v22, %v4505_v22 }
 0x5e3   : > { %v2206_v38 = vadd.f32 1.0, %v5045_v53  ;;  %v2155_v62 = vmul.f32 0.7978846, %v2123_v46  ;;  %v2427_v33 = vmul.f32 0.044715, %v2395_v45  ;;  %v2236_v20 = vmul.f32 0.5, %v2204_v54 }
 0x5e4   : > { %v2062_v0 = vmul.f32 %v2030_v27, %v4500_v12  ;;  %v4517_v63 = vpop.eup %3233  ;;  %v4520_v47 = vmul.f32 %v2583_v6, %v4374_v43  ;;  %v2125_v3 = vadd.f32 %v2093_v36, %v4480_v52  ;;  %v2396_v55 = vmul.f32 %v2364_v15, %v4505_v22  ;;  %v5047_v54 = vld [vmem:[#allocation37_spill] sm:$0xff]  ;;  %v5048_v27 = vld [vmem:[#allocation38_spill] sm:$0xff] }
 0x5e5   : > { %v2238_v29 = vmul.f32 0.5, %v2206_v38  ;;  %v4524_v10 = vpop.eup %3235  ;;  %3241 = vtanh.f32 %v2155_v62  ;;  %v2156_v13 = vmul.f32 0.7978846, %v2124_v34  ;;  %v2459_v30 = vadd.f32 %v2427_v33, %v4485_v4  ;;  %v5049_v38 = vld [vmem:[#allocation51_spill] sm:$0xff]  ;;  %v5050_v62 = vld [vmem:[#allocation52_spill] sm:$0xff] }
 0x5e6   : > { %5046 = vst [vmem:[#allocation42_spill] sm:$0xff] %v4520_v47  ;;  %v2094_v24 = vmul.f32 0.044715, %v2062_v0  ;;  %v2157_v48 = vmul.f32 0.7978846, %v2125_v3  ;;  %v2268_v45 = vmul.f32 %v2236_v20, %v5047_v54  ;;  %v4532_v15 = vadd.f32 %v4229_v44, %v5040_v2  ;;  %v5053_v44 = vld [vmem:[#allocation50_spill] sm:$0xff] }
 0x5e7   : > { %v2428_v46 = vmul.f32 0.044715, %v2396_v55  ;;  %v2270_v53 = vmul.f32 %v2238_v29, %v5048_v27  ;;  %v2491_v6 = vmul.f32 0.7978846, %v2459_v30  ;;  %v2297_v34 = vpack.c.bf16 %v5050_v62, %v5049_v38  ;;  %v5051_v55 = vld [vmem:[#allocation53_spill] sm:$0xff]  ;;  %v5057_v38 = vld [vmem:[#allocation28_spill] sm:$0xff] }
 0x5e8   : > { %v3238_v43 = vpop.eup %3237  ;;  %v2126_v36 = vadd.f32 %v2094_v24, %v4500_v12  ;;  %3243 = vtanh.f32 %v2157_v48  ;;  %v2365_v3 = vmul.f32 %v4532_v15, %v4532_v15  ;;  %v4541_v29 = vadd.f32 %v5051_v55, %v5041_v8  ;;  %v5054_v24 = vld [vmem:[#allocation63_spill] sm:$0xff]  ;;  %v5058_v62 = vld [vmem:[#allocation56_spill] sm:$0xff] }
 0x5e9   : > { %v2553_v11 = vadd.f32 1.0, %v3238_v43  ;;  %v2460_v33 = vadd.f32 %v2428_v46, %v4505_v22  ;;  %v2298_v0 = vpack.c.bf16 %v2270_v53, %v2268_v45  ;;  %3245 = vtanh.f32 %v2491_v6  ;;  %v5055_v53 = vld [vmem:[#allocation54_spill] sm:$0xff]  ;;  %v5061_v55 = vld [vmem:[#allocation39_spill] sm:$0xff] }
 0x5ea   : > { %v2158_v20 = vmul.f32 0.7978846, %v2126_v36  ;;  %5052 = vst [vmem:[#allocation44_spill] sm:$0xff] %v4541_v29  ;;  %3247 = vtanh.f32 %v2156_v13  ;;  %v2540_v2 = vadd.f32 1.0, %v5053_v44  ;;  %v2542_v54 = vadd.f32 1.0, %v5054_v24 }
 0x5eb   : > { %v2585_v30 = vmul.f32 0.5, %v2553_v11  ;;  %2650 = vmatprep.subr.bf16.mxu0 %v2298_v0  ;;  %v4545_v48 = vpop.eup %3239  ;;  %v2492_v46 = vmul.f32 0.7978846, %v2460_v33  ;;  %v2397_v45 = vmul.f32 %v2365_v3, %v4532_v15  ;;  %v2366_v27 = vmul.f32 %v4541_v29, %v4541_v29  ;;  %v5060_v0 = vld [vmem:[#allocation57_spill] sm:$0xff] }
 0x5ec   : > { %2651 = vmatpush1.bf16.msra.mxu0 %v2297_v34  ;;  %v2633_v8 = vpack.c.bf16 %v4309_v58, %v5055_v53  ;;  %3249 = vtanh.f32 %v2158_v20  ;;  %v2572_v13 = vmul.f32 0.5, %v2540_v2  ;;  %v2574_v43 = vmul.f32 0.5, %v2542_v54  ;;  %v5059_v34 = vld [vmem:[#allocation26_spill] sm:$0xff]  ;;  %v5062_v58 = vld [vmem:[#allocation40_spill] sm:$0xff]  ;;  %v5065_v2 = vld [vmem:[#allocation59_spill] sm:$0xff] }
 0x5ed   : > { %v4553_v11 = vmul.f32 %v2585_v30, %v4426_v14  ;;  %v2429_v6 = vmul.f32 0.044715, %v2397_v45  ;;  %v2398_v36 = vmul.f32 %v2366_v27, %v4541_v29  ;;  %v4558_v33 = vadd.f32 %v5058_v62, %v5057_v38  ;;  %v5063_v14 = vld [vmem:[#allocation25_spill] sm:$0xff]  ;;  %v5064_v30 = vld [vmem:[#allocation58_spill] sm:$0xff] }
 0x5ee   : > { %v4562_v3 = vadd.f32 %v5060_v0, %v5059_v34  ;;  %v2604_v44 = vmul.f32 %v2572_v13, %v5061_v55  ;;  %v2606_v24 = vmul.f32 %v2574_v43, %v5062_v58  ;;  %v4568_v20 = vadd.f32 %v5064_v30, %v5063_v14 }
 0x5ef   : > { %5056 = vst [vmem:[#allocation46_spill] sm:$0xff] %v4553_v11  ;;  %v4572_v54 = vadd.f32 %v5065_v2, %v5057_v38  ;;  %v3242_v45 = vpop.eup %3241  ;;  %v2461_v27 = vadd.f32 %v2429_v6, %v4532_v15  ;;  %v2430_v53 = vmul.f32 0.044715, %v2398_v36  ;;  %v2031_v62 = vmul.f32 %v4558_v33, %v4558_v33 }
 0x5f0   : > { %v2032_v13 = vmul.f32 %v4562_v3, %v4562_v3  ;;  %v2219_v0 = vadd.f32 1.0, %v3242_v45  ;;  %v2634_v43 = vpack.c.bf16 %v2606_v24, %v2604_v44  ;;  %v2033_v55 = vmul.f32 %v4568_v20, %v4568_v20  ;;  %v5066_v24 = vld [vmem:[#allocation27_spill] sm:$0xff]  ;;  %v5067_v45 = vld [vmem:[#allocation61_spill] sm:$0xff] }
 0x5f1   : > { %v2367_v58 = vmul.f32 %v4572_v54, %v4572_v54  ;;  %v2493_v38 = vmul.f32 0.7978846, %v2461_v27  ;;  %v2462_v30 = vadd.f32 %v2430_v53, %v4541_v29  ;;  %v2063_v6 = vmul.f32 %v2031_v62, %v4558_v33 }
 0x5f2   : > { %v2064_v36 = vmul.f32 %v2032_v13, %v4562_v3  ;;  %v3244_v2 = vpop.eup %3243  ;;  %v2251_v22 = vmul.f32 0.5, %v2219_v0  ;;  %2691 = vmatprep.subr.bf16.mxu1 %v2634_v43  ;;  %v2065_v12 = vmul.f32 %v2033_v55, %v4568_v20  ;;  %v4590_v11 = vadd.f32 %v5067_v45, %v5066_v24 }
 0x5f3   : > { %v2399_v44 = vmul.f32 %v2367_v58, %v4572_v54  ;;  %v3246_v47 = vpop.eup %3245  ;;  %v2221_v23 = vadd.f32 1.0, %v3244_v2  ;;  %3251 = vtanh.f32 %v2493_v38  ;;  %v2494_v27 = vmul.f32 0.7978846, %v2462_v30  ;;  %2692 = vmatpush1.bf16.msra.mxu1 %v2633_v8 }
 0x5f4   : > { %v2095_v53 = vmul.f32 0.044715, %v2063_v6  ;;  %v4592_v62 = vpop.eup %3247  ;;  %v2555_v13 = vadd.f32 1.0, %v3246_v47  ;;  %3253 = vtanh.f32 %v2492_v46  ;;  %v2096_v0 = vmul.f32 0.044715, %v2064_v36 }
 0x5f5   : > { %v2097_v43 = vmul.f32 0.044715, %v2065_v12  ;;  %v4595_v55 = vmul.f32 %v2251_v22, %v4465_v50  ;;  %v2253_v58 = vmul.f32 0.5, %v2221_v23  ;;  %v2431_v45 = vmul.f32 0.044715, %v2399_v44  ;;  %v5068_v50 = vld [vmem:[#allocation62_spill] sm:$0xff] }
 0x5f6   : > { %v2127_v29 = vadd.f32 %v2095_v53, %v4558_v33  ;;  %v4598_v7 = vpop.eup %3249  ;;  %v2587_v2 = vmul.f32 0.5, %v2555_v13  ;;  %v2128_v38 = vadd.f32 %v2096_v0, %v4562_v3  ;;  %v2034_v47 = vmul.f32 %v4590_v11, %v4590_v11 }
 0x5f7   : > { %v2129_v8 = vadd.f32 %v2097_v43, %v4568_v20  ;;  %3255 = vtanh.f32 %v2494_v27  ;;  %v2463_v12 = vadd.f32 %v2431_v45, %v4572_v54  ;;  %v4607_v23 = vadd.f32 %v5068_v50, %v5059_v34  ;;  %v5069_v27 = vld [vmem:[#allocation66_spill] sm:$0xff] }
 0x5f8   : > { %v2159_v46 = vmul.f32 0.7978846, %v2127_v29  ;;  %v4610_v22 = vmul.f32 %v2253_v58, %v4480_v52  ;;  %v4613_v30 = vmul.f32 %v2587_v2, %v4485_v4  ;;  %v2066_v36 = vmul.f32 %v2034_v47, %v4590_v11  ;;  %v5070_v52 = vld [vmem:[#allocation64_spill] sm:$0xff] }
 0x5f9   : > { %v2161_v6 = vmul.f32 0.7978846, %v2129_v8  ;;  %v2495_v44 = vmul.f32 0.7978846, %v2463_v12  ;;  %v2368_v29 = vmul.f32 %v4607_v23, %v4607_v23  ;;  %v2208_v53 = vadd.f32 1.0, %v5069_v27 }
 0x5fa   : > { %3257 = vtanh.f32 %v2159_v46  ;;  %v2160_v13 = vmul.f32 0.7978846, %v2128_v38  ;;  %v2098_v0 = vmul.f32 0.044715, %v2066_v36  ;;  %v2210_v34 = vadd.f32 1.0, %v4315_v1  ;;  %v5071_v46 = vld [vmem:[#allocation43_spill] sm:$0xff] }
 0x5fb   : > { %v4622_v43 = vadd.f32 %v5070_v52, %v5063_v14  ;;  %3259 = vtanh.f32 %v2161_v6  ;;  %v2400_v4 = vmul.f32 %v2368_v29, %v4607_v23  ;;  %v2240_v58 = vmul.f32 0.5, %v2208_v53  ;;  %v5072_v14 = vld [vmem:[#allocation65_spill] sm:$0xff] }
 0x5fc   : > { %v2299_v45 = vpack.c.bf16 %v4332_v19, %v4320_v37  ;;  %3261 = vtanh.f32 %v2495_v44  ;;  %v2130_v2 = vadd.f32 %v2098_v0, %v4590_v11  ;;  %v2242_v8 = vmul.f32 0.5, %v2210_v34  ;;  %v5073_v44 = vld [vmem:[#allocation45_spill] sm:$0xff] }
 0x5fd   : > { %v2369_v38 = vmul.f32 %v4622_v43, %v4622_v43  ;;  %v3252_v47 = vpop.eup %3251  ;;  %v2432_v1 = vmul.f32 0.044715, %v2400_v4  ;;  %v2272_v12 = vmul.f32 %v2240_v58, %v5071_v46  ;;  %v4633_v50 = vadd.f32 %v5072_v14, %v5066_v24  ;;  %v5075_v14 = vld [vmem:[#allocation32_spill] sm:$0xff] }
 0x5fe   : > { %v2544_v6 = vadd.f32 1.0, %v4344_v41  ;;  %v4636_v36 = vpop.eup %3253  ;;  %v2557_v37 = vadd.f32 1.0, %v3252_v47  ;;  %v2162_v19 = vmul.f32 0.7978846, %v2130_v2  ;;  %v2274_v29 = vmul.f32 %v2242_v8, %v5073_v44  ;;  %v5076_v44 = vld [vmem:[#allocation30_spill] sm:$0xff] }
 0x5ff   : > { %v2401_v27 = vmul.f32 %v2369_v38, %v4622_v43  ;;  %v2464_v53 = vadd.f32 %v2432_v1, %v4607_v23  ;;  %v2370_v0 = vmul.f32 %v4633_v50, %v4633_v50  ;;  %v2546_v34 = vadd.f32 1.0, %v4387_v42  ;;  %v5074_v1 = vld [vmem:[#allocation47_spill] sm:$0xff] }
 0x600   : > { %v2576_v52 = vmul.f32 0.5, %v2544_v6  ;;  %v2589_v24 = vmul.f32 0.5, %v2557_v37  ;;  %3263 = vtanh.f32 %v2160_v13  ;;  %v2300_v4 = vpack.c.bf16 %v2274_v29, %v2272_v12 }
 0x601   : > { %v2433_v41 = vmul.f32 0.044715, %v2401_v27  ;;  %v4644_v58 = vpop.eup %3255  ;;  %3265 = vtanh.f32 %v2162_v19  ;;  %v2496_v2 = vmul.f32 0.7978846, %v2464_v53  ;;  %v2402_v8 = vmul.f32 %v2370_v0, %v4633_v50 }
 0x602   : > { %v2578_v47 = vmul.f32 0.5, %v2546_v34  ;;  %2652 = vmatprep.subr.bf16.mxu0 %v2300_v4  ;;  %v2608_v46 = vmul.f32 %v2576_v52, %v5074_v1  ;;  %v2635_v42 = vpack.c.bf16 %v4399_v32, %v4347_v17  ;;  %v4653_v13 = vadd.f32 %v4306_v31, %v5075_v14  ;;  %v5077_v32 = vld [vmem:[#allocation29_spill] sm:$0xff] }
 0x603   : > { %v2465_v38 = vadd.f32 %v2433_v41, %v4622_v43  ;;  %v4656_v6 = vmul.f32 %v2589_v24, %v4532_v15  ;;  %2653 = vmatpush1.bf16.msra.mxu0 %v2299_v45  ;;  %v2434_v37 = vmul.f32 0.044715, %v2402_v8  ;;  %v4661_v29 = vadd.f32 %v4311_v25, %v5076_v44 }
 0x604   : > { %v3258_v12 = vpop.eup %3257  ;;  %v2610_v19 = vmul.f32 %v2578_v47, %v4233_v49  ;;  %v2035_v17 = vmul.f32 %v4653_v13, %v4653_v13  ;;  %v4667_v31 = vadd.f32 %v4317_v21, %v5077_v32  ;;  %v4674_v25 = vadd.f32 %v4313_v40, %v5075_v14 }
 0x605   : > { %v2223_v27 = vadd.f32 1.0, %v3258_v12  ;;  %v2497_v53 = vmul.f32 0.7978846, %v2465_v38  ;;  %v3260_v0 = vpop.eup %3259  ;;  %v2466_v15 = vadd.f32 %v2434_v37, %v4633_v50  ;;  %v2036_v49 = vmul.f32 %v4661_v29, %v4661_v29 }
 0x606   : > { %v2636_v45 = vpack.c.bf16 %v2610_v19, %v2608_v46  ;;  %v3262_v34 = vpop.eup %3261  ;;  %v2225_v24 = vadd.f32 1.0, %v3260_v0  ;;  %v2067_v4 = vmul.f32 %v2035_v17, %v4653_v13  ;;  %v2037_v47 = vmul.f32 %v4667_v31, %v4667_v31 }
 0x607   : > { %v2255_v52 = vmul.f32 0.5, %v2223_v27  ;;  %3267 = vtanh.f32 %v2497_v53  ;;  %v2559_v41 = vadd.f32 1.0, %v3262_v34  ;;  %v2498_v21 = vmul.f32 0.7978846, %v2466_v15 }
 0x608   : > { %2693 = vmatprep.subr.bf16.mxu1 %v2636_v45  ;;  %v2068_v8 = vmul.f32 %v2036_v49, %v4661_v29  ;;  %v2257_v38 = vmul.f32 0.5, %v2225_v24  ;;  %3269 = vtanh.f32 %v2496_v2  ;;  %v2099_v1 = vmul.f32 0.044715, %v2067_v4  ;;  %v5078_v2 = vld [vmem:[#allocation31_spill] sm:$0xff]  ;;  %v5080_v49 = vld [vmem:[#allocation69_spill] sm:$0xff] }
 0x609   : > { %2694 = vmatpush1.bf16.msra.mxu1 %v2635_v42  ;;  %v2371_v40 = vmul.f32 %v4674_v25, %v4674_v25  ;;  %v4683_v46 = vmul.f32 %v2255_v52, %v4558_v33  ;;  %v2591_v14 = vmul.f32 0.5, %v2559_v41  ;;  %v2069_v37 = vmul.f32 %v2037_v47, %v4667_v31  ;;  %v5079_v42 = vld [vmem:[#allocation68_spill] sm:$0xff] }
 0x60a   : > { %v2100_v12 = vmul.f32 0.044715, %v2068_v8  ;;  %v4686_v19 = vpop.eup %3263  ;;  %3271 = vtanh.f32 %v2498_v21  ;;  %v2131_v27 = vadd.f32 %v2099_v1, %v4653_v13  ;;  %v4692_v17 = vadd.f32 %v5079_v42, %v5078_v2 }
 0x60b   : > { %v2403_v53 = vmul.f32 %v2371_v40, %v4674_v25  ;;  %v4694_v0 = vpop.eup %3265  ;;  %v4697_v33 = vmul.f32 %v2257_v38, %v4568_v20  ;;  %v2101_v45 = vmul.f32 0.044715, %v2069_v37  ;;  %v4702_v34 = vadd.f32 %v5080_v49, %v5076_v44 }
 0x60c   : > { %v2132_v15 = vadd.f32 %v2100_v12, %v4661_v29  ;;  %v2163_v52 = vmul.f32 0.7978846, %v2131_v27  ;;  %v2038_v4 = vmul.f32 %v4692_v17, %v4692_v17  ;;  %v2212_v41 = vadd.f32 1.0, %v4392_v18 }
 0x60d   : > { %v2435_v24 = vmul.f32 0.044715, %v2403_v53  ;;  %v4708_v21 = vmul.f32 %v2591_v14, %v4572_v54  ;;  %v2133_v20 = vadd.f32 %v2101_v45, %v4667_v31  ;;  %v2372_v8 = vmul.f32 %v4702_v34, %v4702_v34  ;;  %v5081_v53 = vld [vmem:[#allocation55_spill] sm:$0xff]  ;;  %v5082_v45 = vld [vmem:[#allocation70_spill] sm:$0xff] }
 0x60e   : > { %v2214_v47 = vadd.f32 1.0, %v4421_v5  ;;  %3273 = vtanh.f32 %v2163_v52  ;;  %v2070_v38 = vmul.f32 %v2038_v4, %v4692_v17  ;;  %v2244_v1 = vmul.f32 0.5, %v2212_v41 }
 0x60f   : > { %v2467_v44 = vadd.f32 %v2435_v24, %v4674_v25  ;;  %v2164_v40 = vmul.f32 0.7978846, %v2132_v15  ;;  %v2165_v12 = vmul.f32 0.7978846, %v2133_v20  ;;  %v2404_v18 = vmul.f32 %v2372_v8, %v4702_v34  ;;  %v5083_v24 = vld [vmem:[#allocation60_spill] sm:$0xff] }
 0x610   : > { %v2246_v37 = vmul.f32 0.5, %v2214_v47  ;;  %v2102_v27 = vmul.f32 0.044715, %v2070_v38  ;;  %v2276_v42 = vmul.f32 %v2244_v1, %v5081_v53  ;;  %v4720_v49 = vadd.f32 %v5082_v45, %v5077_v32 }
 0x611   : > { %v3268_v54 = vpop.eup %3267  ;;  %v2499_v14 = vmul.f32 0.7978846, %v2467_v44  ;;  %3275 = vtanh.f32 %v2165_v12  ;;  %v2436_v52 = vmul.f32 0.044715, %v2404_v18  ;;  %v2301_v8 = vpack.c.bf16 %v4415_v59, %v4402_v9  ;;  %v5084_v44 = vld [vmem:[#allocation71_spill] sm:$0xff] }
 0x612   : > { %v2561_v5 = vadd.f32 1.0, %v3268_v54  ;;  %v2278_v4 = vmul.f32 %v2246_v37, %v5083_v24  ;;  %v4723_v41 = vpop.eup %3269  ;;  %v2134_v15 = vadd.f32 %v2102_v27, %v4692_v17  ;;  %v2373_v20 = vmul.f32 %v4720_v49, %v4720_v49 }
 0x613   : > { %3277 = vtanh.f32 %v2499_v14  ;;  %v2468_v32 = vadd.f32 %v2436_v52, %v4702_v34  ;;  %v4733_v38 = vadd.f32 %v5084_v44, %v5078_v2  ;;  %v2548_v37 = vadd.f32 1.0, %v4442_v60  ;;  %v5085_v52 = vld [vmem:[#allocation67_spill] sm:$0xff] }
 0x614   : > { %3279 = vtanh.f32 %v2164_v40  ;;  %v2302_v47 = vpack.c.bf16 %v2278_v4, %v2276_v42  ;;  %v4735_v1 = vpop.eup %3271  ;;  %v2166_v12 = vmul.f32 0.7978846, %v2134_v15  ;;  %v2405_v18 = vmul.f32 %v2373_v20, %v4720_v49 }
 0x615   : > { %v2550_v54 = vadd.f32 1.0, %v4452_v26  ;;  %v2593_v14 = vmul.f32 0.5, %v2561_v5  ;;  %v2500_v27 = vmul.f32 0.7978846, %v2468_v32  ;;  %v2374_v9 = vmul.f32 %v4733_v38, %v4733_v38 }
 0x616   : > { %2654 = vmatprep.subr.bf16.mxu0 %v2302_v47  ;;  %v2637_v59 = vpack.c.bf16 %v4472_v35, %v4455_v61  ;;  %3281 = vtanh.f32 %v2166_v12  ;;  %v2437_v2 = vmul.f32 0.044715, %v2405_v18  ;;  %v2580_v40 = vmul.f32 0.5, %v2548_v37 }
 0x617   : > { %2655 = vmatpush1.bf16.msra.mxu0 %v2301_v8  ;;  %v2582_v53 = vmul.f32 0.5, %v2550_v54  ;;  %3283 = vtanh.f32 %v2500_v27  ;;  %v2406_v42 = vmul.f32 %v2374_v9, %v4733_v38  ;;  %v2216_v60 = vadd.f32 1.0, %v4457_v39 }
 0x618   : > { %v2218_v26 = vadd.f32 1.0, %v4517_v63  ;;  %v3274_v45 = vpop.eup %3273  ;;  %v2469_v5 = vadd.f32 %v2437_v2, %v4720_v49  ;;  %v2612_v24 = vmul.f32 %v2580_v40, %v5085_v52  ;;  %v2303_v61 = vpack.c.bf16 %v4491_v57, %v4488_v51 }
 0x619   : > { %v2614_v4 = vmul.f32 %v2582_v53, %v4340_v28  ;;  %v2227_v35 = vadd.f32 1.0, %v3274_v45  ;;  %v2438_v15 = vmul.f32 0.044715, %v2406_v42  ;;  %v2248_v20 = vmul.f32 0.5, %v2216_v60  ;;  %v5086_v42 = vld [vmem:[#allocation72_spill] sm:$0xff]  ;;  %v5089_v45 = vld [vmem:[#allocation46_spill] sm:$0xff] }
 0x61a   : > { %v2250_v8 = vmul.f32 0.5, %v2218_v26  ;;  %v2501_v32 = vmul.f32 0.7978846, %v2469_v5  ;;  %v2552_v39 = vadd.f32 1.0, %v4524_v10  ;;  %v2554_v63 = vadd.f32 1.0, %v4545_v48 }
 0x61b   : > { %v2638_v47 = vpack.c.bf16 %v2614_v4, %v2612_v24  ;;  %v3276_v44 = vpop.eup %3275  ;;  %v2259_v12 = vmul.f32 0.5, %v2227_v35  ;;  %v2470_v18 = vadd.f32 %v2438_v15, %v4733_v38  ;;  %v2280_v37 = vmul.f32 %v2248_v20, %v4363_v16  ;;  %v5087_v16 = vld [vmem:[#allocation73_spill] sm:$0xff] }
 0x61c   : > { %v2282_v28 = vmul.f32 %v2250_v8, %v4406_v56  ;;  %v2229_v51 = vadd.f32 1.0, %v3276_v44  ;;  %3285 = vtanh.f32 %v2501_v32  ;;  %v2584_v57 = vmul.f32 0.5, %v2552_v39  ;;  %v5088_v56 = vld [vmem:[#allocation42_spill] sm:$0xff] }
 0x61d   : > { %v3278_v54 = vpop.eup %3277  ;;  %2695 = vmatprep.subr.bf16.mxu1 %v2638_v47  ;;  %v2586_v27 = vmul.f32 0.5, %v2554_v63  ;;  %v4758_v2 = vmul.f32 %v2593_v14, %v4622_v43  ;;  %v2502_v48 = vmul.f32 0.7978846, %v2470_v18  ;;  %v2639_v5 = vpack.c.bf16 %v5089_v45, %v5088_v56 }
 0x61e   : > { %v3280_v9 = vpop.eup %3279  ;;  %v2563_v10 = vadd.f32 1.0, %v3278_v54  ;;  %2696 = vmatpush1.bf16.msra.mxu1 %v2637_v59  ;;  %v2304_v40 = vpack.c.bf16 %v2282_v28, %v2280_v37  ;;  %v2261_v53 = vmul.f32 0.5, %v2229_v51  ;;  %v2616_v60 = vmul.f32 %v2584_v57, %v5086_v42 }
 0x61f   : > { %v2618_v26 = vmul.f32 %v2586_v27, %v5087_v16  ;;  %v4765_v52 = vmul.f32 %v2259_v12, %v4653_v13  ;;  %3287 = vtanh.f32 %v2502_v48  ;;  %v2220_v43 = vadd.f32 1.0, %v4592_v62  ;;  %v5092_v12 = vld [vmem:[#allocation34_spill] sm:$0xff] }
 0x620   : > { %2656 = vmatprep.subr.bf16.mxu0 %v2304_v40  ;;  %v2222_v14 = vadd.f32 1.0, %v4598_v7  ;;  %v3282_v24 = vpop.eup %3281  ;;  %v2595_v59 = vmul.f32 0.5, %v2563_v10  ;;  %v2305_v35 = vpack.c.bf16 %v4610_v22, %v4595_v55  ;;  %v2556_v15 = vadd.f32 1.0, %v4636_v36  ;;  %v5090_v55 = vld [vmem:[#allocation33_spill] sm:$0xff] }
 0x621   : > { %2657 = vmatpush1.bf16.msra.mxu0 %v2303_v61  ;;  %v2640_v4 = vpack.c.bf16 %v2618_v26, %v2616_v60  ;;  %v3284_v20 = vpop.eup %3283  ;;  %v2293_v8 = vmul.f32 %v2261_v53, %v4667_v31  ;;  %v2252_v13 = vmul.f32 0.5, %v2220_v43  ;;  %v2558_v47 = vadd.f32 1.0, %v4644_v58  ;;  %v5091_v36 = vld [vmem:[#allocation41_spill] sm:$0xff] }
 0x622   : > { %v2254_v32 = vmul.f32 0.5, %v2222_v14  ;;  %v2588_v62 = vmul.f32 0.5, %v2556_v15  ;;  %v2641_v7 = vpack.c.bf16 %v4656_v6, %v4613_v30  ;;  %v2224_v61 = vadd.f32 1.0, %v4686_v19  ;;  %v5093_v6 = vld [vmem:[#allocation44_spill] sm:$0xff] }
 0x623   : > { %2697 = vmatprep.subr.bf16.mxu1 %v2640_v4  ;;  %v2226_v39 = vadd.f32 1.0, %v4694_v0  ;;  %v2284_v22 = vmul.f32 %v2252_v13, %v5090_v55  ;;  %v2590_v44 = vmul.f32 0.5, %v2558_v47  ;;  %v2307_v31 = vpack.c.bf16 %v4697_v33, %v4683_v46 }
 0x624   : > { %2698 = vmatpush1.bf16.msra.mxu1 %v2639_v5  ;;  %v2286_v63 = vmul.f32 %v2254_v32, %v5091_v36  ;;  %v2620_v58 = vmul.f32 %v2588_v62, %v5092_v12  ;;  %v2256_v18 = vmul.f32 0.5, %v2224_v61  ;;  %v2560_v28 = vadd.f32 1.0, %v4723_v41  ;;  %v5095_v12 = vld [vmem:[#allocation20_spill] sm:$0xff] }
 0x625   : > { %v2258_v37 = vmul.f32 0.5, %v2226_v39  ;;  %v2622_v19 = vmul.f32 %v2590_v44, %v5093_v6  ;;  %v2562_v0 = vadd.f32 1.0, %v4735_v1  ;;  %v2643_v54 = vpack.c.bf16 %v4758_v2, %v4708_v21  ;;  %v2742_v39 = vpop.permute.xlu0 %2741 }
 0x626   : > { %v2306_v30 = vpack.c.bf16 %v2286_v63, %v2284_v22  ;;  %v3286_v51 = vpop.eup %3285  ;;  %v2288_v57 = vmul.f32 %v2256_v18, %v4562_v3  ;;  %v2592_v46 = vmul.f32 0.5, %v2560_v28  ;;  %v2228_v33 = vadd.f32 1.0, %v3280_v9 }
 0x627   : > { %v2290_v27 = vmul.f32 %v2258_v37, %v4590_v11  ;;  %v2565_v10 = vadd.f32 1.0, %v3286_v51  ;;  %v2642_v48 = vpack.c.bf16 %v2622_v19, %v2620_v58  ;;  %v2594_v40 = vmul.f32 0.5, %v2562_v0 }
 0x628   : > { %2658 = vmatprep.subr.bf16.mxu0 %v2306_v30  ;;  %v2230_v41 = vadd.f32 1.0, %v3282_v24  ;;  %v2624_v42 = vmul.f32 %v2592_v46, %v4607_v23  ;;  %v2260_v1 = vmul.f32 0.5, %v2228_v33  ;;  %v2309_v60 = vpack.c.bf16 %v2293_v8, %v4765_v52 }
 0x629   : > { %2659 = vmatpush1.bf16.msra.mxu0 %v2305_v35  ;;  %v2308_v53 = vpack.c.bf16 %v2290_v27, %v2288_v57  ;;  %v3288_v21 = vpop.eup %3287  ;;  %v2597_v2 = vmul.f32 0.5, %v2565_v10  ;;  %2699 = vmatprep.subr.bf16.mxu1 %v2642_v48  ;;  %v2626_v3 = vmul.f32 %v2594_v40, %v4633_v50  ;;  %v2564_v16 = vadd.f32 1.0, %v3284_v20 }
 0x62a   : > { %v2262_v11 = vmul.f32 0.5, %v2230_v41  ;;  %v2627_v9 = vmul.f32 %v2595_v59, %v4674_v25  ;;  %2700 = vmatpush1.bf16.msra.mxu1 %v2641_v7  ;;  %v2292_v26 = vmul.f32 %v2260_v1, %v4661_v29  ;;  %v2566_v56 = vadd.f32 1.0, %v3288_v21 }
 0x62b   : > { %2660 = vmatprep.subr.bf16.mxu0 %v2308_v53  ;;  %v2629_v45 = vmul.f32 %v2597_v2, %v4720_v49  ;;  %v2644_v23 = vpack.c.bf16 %v2626_v3, %v2624_v42  ;;  %v2596_v52 = vmul.f32 0.5, %v2564_v16  ;;  %v2730_v49 = vstv %s1256_s12 }
 0x62c   : > { %v2294_v5 = vmul.f32 %v2262_v11, %v4692_v17  ;;  %v2598_v43 = vmul.f32 0.5, %v2566_v56  ;;  %v2647_v17 = vld [vmem:[%s5094_s23] sm:$0x3]  ;;  %v2733_v59 = vstv %s1258_s22  ;;  %v2748_v55 = vstv %s3593_s9  ;;  %s5099_s9 = smov %s5098_s20  ;;  %s3310_s23 = scalar_lea.vmem %s3309_s19, 512 }
 0x62d   : > { %2661 = vmatpush1.bf16.msra.mxu0 %v2307_v31  ;;  %2701 = vmatprep.subr.bf16.mxu1 %v2644_v23  ;;  %v2645_v14 = vpack.c.bf16 %v2629_v45, %v2627_v9  ;;  %v2628_v25 = vmul.f32 %v2596_v52, %v4702_v34  ;;  %v2746_v36 = vstv %s3590_s24  ;;  %p3312_p2 = scmp.lt.s32.totalorder %s3310_s23, %s3304_s10 }
 0x62e   : > { %v2310_v50 = vpack.c.bf16 %v2294_v5, %v2292_v26  ;;  %2702 = vmatpush1.bf16.msra.mxu1 %v2643_v54  ;;  %v2630_v24 = vmul.f32 %v2598_v43, %v4733_v38  ;;  %v2747_v58 = vmul.f32 %v2746_v36, %v5095_v12 }
 0x62f   : > { %p3313_p4 = por %p3312_p2, %p3311_p1 }
 0x630   : > { %2662 = vmatprep.subr.bf16.mxu0 %v2310_v50  ;;  %v2646_v29 = vpack.c.bf16 %v2630_v24, %v2628_v25 }
 0x631   : > { %2663 = vmatpush1.bf16.msra.mxu0 %v2309_v60  ;;  %p3314_p5 = pnand %p3313_p4, %p3307_p0 }
 0x632   : > { %2703 = vmatprep.subr.bf16.mxu1 %v2646_v29 }
 0x633   : > { %2704 = vmatpush1.bf16.msra.mxu1 %v2645_v14 }
 0x634   : > { %2681 = vmatmul.mubr.bf16.vlgmr.msra.gmra.mrb[100].mxu0 %v2647_v17 }
 0x636   : > { %2722 = vmatmul.mubr.bf16.vlgmr.msra.gmra.mrb[100].mxu1 %v2647_v17 }
 0x707   : > { %v2682_v34 = vpop.f32.mrb[100].mxu0 }
 0x708   : > { %v2684_v38 = vpop.f32.mrb[101].mxu0  ;;  %v2731_v4 = vmul.f32 %v2730_v49, %v2682_v34 }
 0x709   : > { %v2686_v35 = vpop.f32.mrb[102].mxu0  ;;  %v2723_v15 = vpop.f32.mrb[100].mxu1  ;;  %v2732_v20 = vmul.f32 %v2730_v49, %v2684_v38 }
 0x70a   : > { %v2687_v8 = vpop.f32.mrb[103].mxu0  ;;  %v2734_v13 = vmul.f32 %v2733_v59, %v2723_v15  ;;  %v2725_v32 = vpop.f32.mrb[101].mxu1 }
 0x70b   : > { %v2735_v47 = vmul.f32 %v2733_v59, %v2725_v32  ;;  %v2727_v62 = vpop.f32.mrb[102].mxu1 }
 0x70c   : > { %v2736_v7 = vadd.f32 %v2734_v13, %v2731_v4  ;;  %v2728_v61 = vpop.f32.mrb[103].mxu1 }
 0x70d   : > { %v2737_v22 = vadd.f32 %v2735_v47, %v2732_v20 }
 0x70e   : > { %v2744_v63 = vadd.f32 %v2742_v39, %v2736_v7 }
 0x70f   : > { %v2745_v44 = vadd.f32 %v2742_v39, %v2737_v22 }
 0x710   : > { %v2749_v31 = vmul.f32 %v2748_v55, %v2744_v63 }
 0x711   : > { %v2750_v18 = vmul.f32 %v2748_v55, %v2745_v44 }
 0x713   : > { %v2753_v37 = vcombine.low %v2749_v31, %v2750_v18 }
 0x715   : > { %v2755_v28 = vadd.f32 %v2753_v37, %v2747_v58 }
 0x717   : > { %v2757_v30 = vcombine.low %v2755_v28, %v2755_v28  ;;  %v2760_v6 = vsel %vm688_vm0, %v2745_v44, %v2755_v28  ;;  %2763 = vst [vmem:[#allocation2] sm:$0xff] %v2755_v28 }
 0x718   : > { %2762 = vst [vmem:[%s3595_s28 + $0x8] sm:$0xff] %v2760_v6 }
 0x719   : > { %v2759_v19 = vsel %vm688_vm0, %v2744_v63, %v2757_v30 }
 0x71a   : > { %2761 = vst [vmem:[%s3595_s28] sm:$0xff] %v2759_v19 }
 0x71b   : > { %3317 = shalt.err (!%p3314_p5)
}
 0x71c   : > { %s3318_s28 = scalar_lea.hbm %s4815_s25, 256  ;;  %s3322_s12 = scalar_lea.hbm %s5099_s9, 1024 }
 0x71d   : > { %p3319_p6 = scmp.ne.s32.totalorder %s4815_s25, %s3318_s28  ;;  %p3323_p8 = scmp.lt.u32.totalorder %s4815_s25, %s5099_s9 }
 0x71e   : > { %p3324_p11 = scmp.lt.u32.totalorder %s3322_s12, %s3318_s28  ;;  %p3326_p12 = scmp.lt.u32.totalorder %s3318_s28, %s4815_s25 }
 0x71f   : > { %p3320_p7 = pnand %p3319_p6, %p3520_p3 }
 0x720   : > { %p3325_p10 = por %p3324_p11, %p3323_p8 }
 0x721   : > { %p3321_p9 = pneg %p3320_p7 }
 0x722   : > { %p3327_p13 = por %p3326_p12, %p3325_p10 }
 0x724   : > { %p3328_p0 = pnand %p3327_p13, %p3321_p9 }
 0x726   : > { %3331 = shalt.err (!%p3328_p0)
}
 0x727   : > { %3022 = dma.vmem_to_hbm [thread:$0]  (%p3520_p3), %s4817_s30, 256, %s4815_s25, %s2765_s11  }
 0x728 PF: > { %s5101_s13 = sld [smem:[#allocation14_spill]]  ;;  %s5102_s26 = sld [smem:[#allocation9_spill]] }
 0x729   : > { %s5103_s15 = sld [smem:[#allocation18_spill]] }
 0x72e   : > { %p3034_p1 = scmp.ge.s32.totalorder %s5101_s13, 2  ;;  %s2793_s27 = sand.u32 1, %s5102_s26  }
 0x72f   : > { %p5104_p2 = scmp.ne.s32.totalorder %s5103_s15, 0  ;;  %s2794_s24 = scalar_lea.sflag [#allocation4], %s2793_s27 }
 0x731   : > { %p3029_p4 = pnand %p3034_p1, %p5104_p2 }
 0x733   : > { %3369 = dma.done.wait (!%p3029_p4), %s2794_s24, 256  }
 0x734   : > { %3371 = vsyncadd (!%p3029_p4), %s2794_s24, 4294967040  ;;  %s25_s24 = sadd.s32 1, %s5101_s13   ;;  %s5105_s17 = sld [smem:[#allocation10_spill]] }
 0x735   : > { %p22_p5 = scmp.ge.s32.totalorder %s25_s24, 6   ;;  %s5106_s18 = sld [smem:[#allocation11_spill]] }
 0x736   : > { %s5107_s19 = sld [smem:[#allocation19_spill]]  ;;  %s5108_s20 = sld [smem:[#allocation12_spill]] }
 0x737   : > { %s5109_s21 = sld [smem:[#allocation13_spill]]  ;;  %s5110_s22 = sld [smem:[#allocation15_spill]] }
 0x738   : > { %s5111_s23 = sld [smem:[#allocation17_spill]]  ;;  %24 = sbr.rel (!%p22_p5) target bundleno = 14 (0xe), region = 117 }
 0x73f   :  { %2799 = vsyncpa [#allocation4], 1 }
 0x740   :  { %2801 = vsyncpa [#allocation4 + $0x1], 1 }
 0x741   :  { %2802 = vsyncpa [#allocation5], 1 }
 0x742   :  { %2804 = vsyncpa [#allocation5 + $0x1], 1 }

</bundles_post_ra>
